<compile_context>
chip_gen: v7x
topology: tpu7x:2x2x1
jax: 0.10.0
libtpu: 0.0.40
codegen_flags: <defaults>
</compile_context>

<pallas_src>
import functools

import numpy as np
import jax
import jax.numpy as jnp
from jax import lax
from jax.experimental import pallas as pl
from jax.experimental.pallas import tpu as pltpu

_VMEM_LIMIT = 32 * 1024 * 1024     # explicit scoped-VMEM budget (safe v5e..v7x)


def _round_up(x, m):
    return (x + m - 1) // m * m


# -----------------------------------------------------------------------------
# Tiled, pipelined matmul kernel:  out = mask(cols @ W + b)  [+ fused BN stats]
#   grid = (M/TM, N/TN, K/TK), f32 VMEM accumulator, pl.when init/finalize,
#   ("parallel","parallel","arbitrary") dimension semantics.
# -----------------------------------------------------------------------------
def _matmul_kernel(x_ref, w_ref, b_ref, *rest, m_real, tm, collect_stats,
                   out_dtype):
    if collect_stats:
        o_ref, stats_ref, acc_ref = rest
    else:
        (o_ref, acc_ref), stats_ref = rest, None

    # Hoisted out of the pl.when bodies (interpret/cond-branch limitation).
    k = pl.program_id(2)
    k_is_last = k == pl.num_programs(2) - 1
    row0 = pl.program_id(0) * tm

    @pl.when(k == 0)
    def _():
        acc_ref[...] = jnp.zeros_like(acc_ref)

    acc_ref[...] += jnp.dot(x_ref[...], w_ref[...],
                            preferred_element_type=jnp.float32)

    @pl.when(k_is_last)
    def _():
        y = acc_ref[...] + b_ref[...]
        if m_real is not None:
            # Light mask: (TM,1) iota broadcast across lanes.
            rows = row0 + lax.broadcasted_iota(jnp.int32, (tm, 1), 0)
            y = jnp.where(rows < m_real, y, 0.0)
        if collect_stats:
            tn = y.shape[1]
            s = jnp.sum(y, axis=0, keepdims=True)
            ss = jnp.sum(y * y, axis=0, keepdims=True)
            rid = lax.broadcasted_iota(jnp.int32, (8, tn), 0)
            blk = jnp.where(rid == 0, s, 0.0)
            blk = jnp.where(rid == 1, ss, blk)
            stats_ref[...] = blk            # row 0 = sum, row 1 = sum of squares
        o_ref[...] = y.astype(out_dtype)


def _choose_tiles(m, k, n):
    for cand in (512, 256):
        if m >= cand:
            tm, mpad = cand, _round_up(m, cand)
            break
    else:
        tm = _round_up(max(m, 1), 16)       # bf16 sublane-pack friendly minimum
        mpad = tm
    kpad = _round_up(k, 128)
    npad = _round_up(n, 128)
    tk = max(t for t in (1024, 512, 256, 128) if kpad % t == 0)
    tn = max(t for t in (512, 256, 128) if npad % t == 0)
    return tm, mpad, tk, kpad, tn, npad


def fused_matmul(cols, wmat, bias, *, collect_stats=False,
                 out_dtype=jnp.bfloat16):
    """cols (M,K) @ wmat (K,N) + bias.  Returns padded (Mpad,Npad) result whose
    padded rows/cols are exactly zero; if collect_stats, also per-M-tile column
    sum / sum-of-squares (rows 0/1 of an (Mpad//TM, 8, Npad) f32 array)."""
    m, k = cols.shape
    n = wmat.shape[1]
    tm, mpad, tk, kpad, tn, npad = _choose_tiles(m, k, n)

    x = jnp.pad(cols.astype(jnp.bfloat16), ((0, mpad - m), (0, kpad - k)))
    w = jnp.pad(wmat.astype(jnp.bfloat16), ((0, kpad - k), (0, npad - n)))
    b = jnp.pad(bias.astype(jnp.float32), (0, npad - n)).reshape(1, npad)

    kern = functools.partial(_matmul_kernel,
                             m_real=(m if mpad != m else None), tm=tm,
                             collect_stats=collect_stats, out_dtype=out_dtype)

    out_shape = jax.ShapeDtypeStruct((mpad, npad), out_dtype)
    out_spec = pl.BlockSpec((tm, tn), lambda i, j, kk: (i, j))
    if collect_stats:
        out_shape = (out_shape,
                     jax.ShapeDtypeStruct((mpad // tm, 8, npad), jnp.float32))
        out_spec = (out_spec,
                    pl.BlockSpec((None, 8, tn), lambda i, j, kk: (i, 0, j)))

    nbytes = int(mpad * kpad * 2 + kpad * npad * 2
                 + mpad * npad * np.dtype(out_dtype).itemsize)
    cost = pl.CostEstimate(flops=2 * mpad * npad * kpad, transcendentals=0,
                           bytes_accessed=nbytes)

    return pl.pallas_call(
        kern,
        out_shape=out_shape,
        grid_spec=pltpu.PrefetchScalarGridSpec(
            num_scalar_prefetch=0,
            grid=(mpad // tm, npad // tn, kpad // tk),
            in_specs=[
                pl.BlockSpec((tm, tk), lambda i, j, kk: (i, kk)),
                pl.BlockSpec((tk, tn), lambda i, j, kk: (kk, j)),
                pl.BlockSpec((1, tn), lambda i, j, kk: (0, j)),
            ],
            out_specs=out_spec,
            scratch_shapes=[pltpu.VMEM((tm, tn), jnp.float32)],
        ),
        compiler_params=pltpu.CompilerParams(
            dimension_semantics=("parallel", "parallel", "arbitrary"),
            vmem_limit_bytes=_VMEM_LIMIT),
        cost_estimate=cost,
    )(x, w, b)


# -----------------------------------------------------------------------------
# Training-mode BatchNorm helpers (Pallas cross-tile reduction + apply).
# -----------------------------------------------------------------------------
def _row_tile(r):
    for t in (1024, 512, 256):
        if r % t == 0:
            return t
    return r


def _bn_stats_kernel(y_ref, s_ref, ss_ref):
    @pl.when(pl.program_id(0) == 0)
    def _():
        s_ref[...] = jnp.zeros_like(s_ref)
        ss_ref[...] = jnp.zeros_like(ss_ref)
    y = y_ref[...].astype(jnp.float32)
    s_ref[...] += jnp.sum(y, axis=0, keepdims=True)
    ss_ref[...] += jnp.sum(y * y, axis=0, keepdims=True)


def _bn_stats(y):
    r, c = y.shape
    tm = _row_tile(r)
    return pl.pallas_call(
        _bn_stats_kernel,
        out_shape=(jax.ShapeDtypeStruct((1, c), jnp.float32),
                   jax.ShapeDtypeStruct((1, c), jnp.float32)),
        grid_spec=pltpu.PrefetchScalarGridSpec(
            num_scalar_prefetch=0, grid=(r // tm,),
            in_specs=[pl.BlockSpec((tm, c), lambda i: (i, 0))],
            out_specs=(pl.BlockSpec((1, c), lambda i: (0, 0)),
                       pl.BlockSpec((1, c), lambda i: (0, 0))),
        ),
        compiler_params=pltpu.CompilerParams(
            dimension_semantics=("arbitrary",),
            vmem_limit_bytes=_VMEM_LIMIT),
    )(y)


def _bn_apply_kernel(y_ref, sc_ref, sh_ref, o_ref):
    y = y_ref[...].astype(jnp.float32)
    o_ref[...] = (y * sc_ref[...] + sh_ref[...]).astype(o_ref.dtype)


def _bn_apply(y, scale, shift, out_dtype=jnp.bfloat16):
    r, c = y.shape
    tm = _row_tile(r)
    return pl.pallas_call(
        _bn_apply_kernel,
        out_shape=jax.ShapeDtypeStruct((r, c), out_dtype),
        grid_spec=pltpu.PrefetchScalarGridSpec(
            num_scalar_prefetch=0, grid=(r // tm,),
            in_specs=[pl.BlockSpec((tm, c), lambda i: (i, 0)),
                      pl.BlockSpec((1, c), lambda i: (0, 0)),
                      pl.BlockSpec((1, c), lambda i: (0, 0))],
            out_specs=pl.BlockSpec((tm, c), lambda i: (i, 0)),
        ),
        compiler_params=pltpu.CompilerParams(
            dimension_semantics=("parallel",),
            vmem_limit_bytes=_VMEM_LIMIT),
    )(y, scale, shift)


def _bn_scale_shift(col_sum, col_ssq, count, gamma, beta, width):
    """BatchNorm2d in training mode: biased variance, eps=1e-5."""
    # TODO(synk): E[x^2]-E[x]^2 in f32 (clamped); switch to Welford if tighter
    # tolerances are required.
    mean = col_sum / count
    var = jnp.maximum(col_ssq / count - mean * mean, 0.0)
    c = gamma.shape[0]
    g = jnp.pad(gamma.astype(jnp.float32), (0, width - c), constant_values=1.0)
    bt = jnp.pad(beta.astype(jnp.float32), (0, width - c))
    scale = g * lax.rsqrt(var + 1e-5)
    shift = bt - mean * scale
    return scale.reshape(1, width), shift.reshape(1, width)


def batchnorm_lanefolded(flat, gamma, beta):
    """Training-mode BN over rows of flat (rows, C); rows are folded into the
    lane dim so the stats/apply kernels see >=128 lanes even for small C."""
    r, c = flat.shape
    f = 1
    while c * f < 128 and r % (f * 2) == 0:
        f *= 2
    y2 = flat.reshape(r // f, f * c)
    s, ss = _bn_stats(y2)
    col_sum = s.reshape(f, c).sum(axis=0)
    col_ssq = ss.reshape(f, c).sum(axis=0)
    scale, shift = _bn_scale_shift(col_sum, col_ssq, r, gamma, beta, c)
    out = _bn_apply(y2, jnp.tile(scale, (1, f)), jnp.tile(shift, (1, f)))
    return out.reshape(r, c)


# -----------------------------------------------------------------------------
# Conv2d(4, s=2, p=1) [+ fused-stats BatchNorm] via im2col + Pallas matmul.
# -----------------------------------------------------------------------------
def _extract_patches(xp, k, s, oh, ow):
    # TODO(synk): for large spatial sizes build patches in-kernel (pl.ANY +
    # manual DMA double-buffer) to avoid the 4x im2col blow-up in HBM; kept as
    # an XLA gather fusion here.
    n, _, _, c = xp.shape
    parts = []
    for i in range(k):
        for j in range(k):
            parts.append(xp[:, i: i + (oh - 1) * s + 1: s,
                             j: j + (ow - 1) * s + 1: s, :])
    return jnp.stack(parts, axis=3).reshape(n * oh * ow, k * k * c)


def conv2d_s2(x, w, b, bn):
    """x NHWC, w torch layout (Cout, Cin, 4, 4).  Returns NHWC bf16."""
    n, h, wd, cin = x.shape
    cout = w.shape[0]
    oh, ow = h // 2, wd // 2
    m = n * oh * ow
    xp = jnp.pad(x.astype(jnp.bfloat16), ((0, 0), (1, 1), (1, 1), (0, 0)))
    cols = _extract_patches(xp, 4, 2, oh, ow)                   # (M, 16*Cin)
    wm = jnp.transpose(w, (2, 3, 1, 0)).reshape(16 * cin, cout)
    if bn is None:
        y = fused_matmul(cols, wm, b)
        return y[:m, :cout].reshape(n, oh, ow, cout)
    # BN sums come fused out of the matmul epilogue (no extra HBM pass).
    y, stats = fused_matmul(cols, wm, b, collect_stats=True)
    col_sum = jnp.sum(stats[:, 0, :], axis=0)
    col_ssq = jnp.sum(stats[:, 1, :], axis=0)
    scale, shift = _bn_scale_shift(col_sum, col_ssq, m,
                                   bn["gamma"], bn["beta"], y.shape[1])
    y = _bn_apply(y, scale, shift)
    return y[:m, :cout].reshape(n, oh, ow, cout)


# -----------------------------------------------------------------------------
# ConvTranspose2d(4, s=2, p=1): single lane-dense GEMM + parity overlap-add.
#   output row 2m   <- Y[iy=m,   ky=1] + Y[iy=m-1, ky=3]
#   output row 2m+1 <- Y[iy=m+1, ky=0] + Y[iy=m,   ky=2]
# (offsets below index Y padded by 1 along H and W)
# -----------------------------------------------------------------------------
_PARITY_TAPS = (((1, 1), (0, 3)),     # even output index: (pad_offset, ktap)
                ((2, 0), (1, 2)))     # odd  output index


def conv_transpose2d_s2(x, w, b, bn, tanh):
    """x NHWC, w torch layout (Cin, Cout, 4, 4)."""
    n, h, wd, cin = x.shape
    cout = w.shape[1]
    m = n * h * wd
    x2 = x.reshape(m, cin)
    wm = jnp.transpose(w, (0, 2, 3, 1)).reshape(cin, 16 * cout)
    y = fused_matmul(x2, wm, jnp.zeros((16 * cout,), jnp.float32))
    y = y[:m, :16 * cout].astype(jnp.float32).reshape(n, h, wd, 4, 4, cout)
    yp = jnp.pad(y, ((0, 0), (1, 1), (1, 1), (0, 0), (0, 0), (0, 0)))

    def parity(py, px):
        acc = None
        for oy, ky in _PARITY_TAPS[py]:
            for ox, kx in _PARITY_TAPS[px]:
                t = yp[:, oy:oy + h, ox:ox + wd, ky, kx, :]
                acc = t if acc is None else acc + t
        return acc                                              # (n,h,wd,cout)

    row0 = jnp.stack([parity(0, 0), parity(0, 1)], axis=3)      # px on axis 3
    row1 = jnp.stack([parity(1, 0), parity(1, 1)], axis=3)
    out = jnp.stack([row0, row1], axis=2)                       # (n,h,2,wd,2,c)
    out = out.reshape(n, 2 * h, 2 * wd, cout) + b.astype(jnp.float32)

    if tanh:
        return jnp.tanh(out)                                    # outermost
    if bn is None:
        return out.astype(jnp.bfloat16)
    flat = out.astype(jnp.bfloat16).reshape(n * 4 * h * wd, cout)
    flat = batchnorm_lanefolded(flat, bn["gamma"], bn["beta"])
    return flat.reshape(n, 2 * h, 2 * wd, cout)


# -----------------------------------------------------------------------------
# Parameter construction (deterministic, mirrors UnetGenerator.__init__)
# -----------------------------------------------------------------------------
def build_unet_params(key, input_nc, output_nc, num_downs, ngf):
    keys = iter(jax.random.split(key, 512))

    def conv_p(cin, cout, bias):
        w = 0.05 * jax.random.normal(next(keys), (cout, cin, 4, 4), jnp.float32)
        b = (0.05 * jax.random.normal(next(keys), (cout,), jnp.float32)
             if bias else jnp.zeros((cout,), jnp.float32))
        return {"w": w, "b": b}

    def convT_p(cin, cout, bias):
        w = 0.05 * jax.random.normal(next(keys), (cin, cout, 4, 4), jnp.float32)
        b = (0.05 * jax.random.normal(next(keys), (cout,), jnp.float32)
             if bias else jnp.zeros((cout,), jnp.float32))
        return {"w": w, "b": b}

    def bn_p(c):
        return {"gamma": 1.0 + 0.1 * jax.random.normal(next(keys), (c,), jnp.float32),
                "beta": 0.1 * jax.random.normal(next(keys), (c,), jnp.float32)}

    def make_block(outer_nc, inner_nc, input_nc=None, sub=None,
                   outermost=False, innermost=False):
        if input_nc is None:
            input_nc = outer_nc
        blk = {"outermost": outermost, "innermost": innermost, "sub": sub,
               "down": conv_p(input_nc, inner_nc, bias=False)}
        if (not outermost) and (not innermost):
            blk["downnorm"] = bn_p(inner_nc)
        if outermost:
            blk["up"] = convT_p(inner_nc * 2, outer_nc, bias=True)
        elif innermost:
            blk["up"] = convT_p(inner_nc, outer_nc, bias=False)
            blk["upnorm"] = bn_p(outer_nc)
        else:
            blk["up"] = convT_p(inner_nc * 2, outer_nc, bias=False)
            blk["upnorm"] = bn_p(outer_nc)
        return blk

    blk = make_block(ngf * 8, ngf * 8, innermost=True)
    for _ in range(num_downs - 5):
        # TODO(synk): use_dropout path not implemented (constructor default False)
        blk = make_block(ngf * 8, ngf * 8, sub=blk)
    blk = make_block(ngf * 4, ngf * 8, sub=blk)
    blk = make_block(ngf * 2, ngf * 4, sub=blk)
    blk = make_block(ngf, ngf * 2, sub=blk)
    blk = make_block(output_nc, ngf, input_nc=input_nc, sub=blk, outermost=True)
    return blk


# -----------------------------------------------------------------------------
# Forward (mirrors UnetSkipConnectionBlock.forward, NHWC internally)
# -----------------------------------------------------------------------------
def _leaky_relu(x):
    return jnp.where(x >= 0, x, 0.2 * x)


def unet_block_forward(blk, x):
    outermost, innermost = blk["outermost"], blk["innermost"]

    # down: [ (LeakyReLU), Conv4x4/s2, (BN) ] -- the activation is applied once
    # in jnp so XLA fuses it with the im2col gather (act(0)==0 keeps pad exact).
    xin = x if outermost else _leaky_relu(x)
    d = conv2d_s2(xin, blk["down"]["w"], blk["down"]["b"], blk.get("downnorm"))

    mid = d if innermost else unet_block_forward(blk["sub"], d)

    # up: [ ReLU, ConvTranspose4x4/s2, (BN | Tanh) ]; the ReLU + bf16 cast fuse
    # with the reshape feeding the single convT GEMM.
    u = conv_transpose2d_s2(jnp.maximum(mid, 0.0), blk["up"]["w"],
                            blk["up"]["b"], blk.get("upnorm"), tanh=outermost)
    if outermost:
        return u
    # TODO(synk): the skip concat could be removed entirely by feeding the up
    # GEMM two disjoint K-range operands (d and u) instead of one cols buffer.
    return jnp.concatenate([x.astype(u.dtype), u], axis=-1)


def unet_generator_forward(params, x_nchw):
    x_nhwc = jnp.transpose(x_nchw, (0, 2, 3, 1))
    y_nhwc = unet_block_forward(params, x_nhwc)
    return jnp.transpose(y_nhwc, (0, 3, 1, 2)).astype(jnp.float32)


# -----------------------------------------------------------------------------
if __name__ == "__main__":
    # UnetGenerator(input_nc=3, output_nc=3, num_downs=5, ngf=8)
    # -> 32x32 input so the bottleneck reaches 1x1.
    input_nc, output_nc, num_downs, ngf = 3, 3, 5, 8
    key = jax.random.PRNGKey(0)
    kx, kp = jax.random.split(key)

    x = jax.random.normal(kx, (2, input_nc, 32, 32), jnp.float32)   # NCHW
    params = build_unet_params(kp, input_nc, output_nc, num_downs, ngf)

    fwd = jax.jit(lambda xx: unet_generator_forward(params, xx))
    out = jax.block_until_ready(fwd(x))

    assert out.shape == (2, output_nc, 32, 32), out.shape
    assert bool(jnp.all(jnp.isfinite(out)))
    assert bool(jnp.all(jnp.abs(out) <= 1.0 + 1e-6))   # outermost Tanh
    print("KERNEL_OK")
</pallas_src>

<mosaic_0001>
module attributes {stable_mosaic.version = 11 : i64} {
  func.func @_matmul_kernel(%arg0: i32, %arg1: i32, %arg2: i32, %arg3: memref<512x128xbf16, #tpu.memory_space<vmem>>, %arg4: memref<128x128xbf16, #tpu.memory_space<vmem>>, %arg5: memref<1x128xf32, #tpu.memory_space<vmem>>, %arg6: memref<512x128xbf16, #tpu.memory_space<vmem>>, %arg7: memref<512x128xf32, #tpu.memory_space<vmem>>) attributes {dimension_semantics = [#tpu.dimension_semantics<parallel>, #tpu.dimension_semantics<parallel>, #tpu.dimension_semantics<arbitrary>], iteration_bounds = array<i64: 1, 1, 1>, scalar_prefetch = 0 : i64, scratch_operands = 1 : i64, tpu.core_type = #tpu.core_type<tc>, window_params = [{transform_indices = @transform_0, window_bounds = array<i64: 512, 128>}, {transform_indices = @transform_1, window_bounds = array<i64: 128, 128>}, {transform_indices = @transform_2, window_bounds = array<i64: 1, 128>}, {transform_indices = @transform_3, window_bounds = array<i64: 512, 128>}]} {
    %c0_i32 = arith.constant 0 : i32
    %0 = arith.cmpi eq, %arg2, %c0_i32 : i32
    %c0_i32_0 = arith.constant 0 : i32
    %1 = arith.cmpi eq, %arg2, %c0_i32_0 : i32
    %2 = arith.extui %1 : i1 to i32
    %c0_i32_1 = arith.constant 0 : i32
    %3 = arith.cmpi ne, %2, %c0_i32_1 : i32
    scf.if %3 {
      %cst_10 = arith.constant 0.000000e+00 : f32
      %12 = vector.broadcast %cst_10 : f32 to vector<512x128xf32>
      %c0_11 = arith.constant 0 : index
      %c0_12 = arith.constant 0 : index
      %13 = vector.load %arg7[%c0_11, %c0_12] : memref<512x128xf32, #tpu.memory_space<vmem>>, vector<512x128xf32>
      tpu.vector_store %arg7[%c0_11, %c0_12], %12 {strides = array<i32>} : memref<512x128xf32, #tpu.memory_space<vmem>>, vector<512x128xf32>,
    } else {
    }
    %c0 = arith.constant 0 : index
    %c0_2 = arith.constant 0 : index
    %4 = vector.load %arg7[%c0, %c0_2] : memref<512x128xf32, #tpu.memory_space<vmem>>, vector<512x128xf32>
    %c0_3 = arith.constant 0 : index
    %c0_4 = arith.constant 0 : index
    %5 = vector.load %arg3[%c0_3, %c0_4] : memref<512x128xbf16, #tpu.memory_space<vmem>>, vector<512x128xbf16>
    %c0_5 = arith.constant 0 : index
    %c0_6 = arith.constant 0 : index
    %6 = vector.load %arg4[%c0_5, %c0_6] : memref<128x128xbf16, #tpu.memory_space<vmem>>, vector<128x128xbf16>
    %cst = arith.constant dense<0.000000e+00> : vector<512x128xf32>
    %7 = tpu.matmul %5, %6, %cst {dimension_numbers = #tpu.dot_dimension_numbers<[1], [0], [0], [1], [0, 0, 1, 1], [], []>} : vector<512x128xbf16>, vector<128x128xbf16>, vector<512x128xf32> -> vector<512x128xf32>
    %8 = arith.addf %4, %7 : vector<512x128xf32>
    %c0_7 = arith.constant 0 : index
    %c0_8 = arith.constant 0 : index
    %9 = vector.load %arg7[%c0_7, %c0_8] : memref<512x128xf32, #tpu.memory_space<vmem>>, vector<512x128xf32>
    tpu.vector_store %arg7[%c0_7, %c0_8], %8 {strides = array<i32>} : memref<512x128xf32, #tpu.memory_space<vmem>>, vector<512x128xf32>,
    %10 = arith.extui %0 : i1 to i32
    %c0_i32_9 = arith.constant 0 : i32
    %11 = arith.cmpi ne, %10, %c0_i32_9 : i32
    scf.if %11 {
      %c0_10 = arith.constant 0 : index
      %c0_11 = arith.constant 0 : index
      %12 = vector.load %arg7[%c0_10, %c0_11] : memref<512x128xf32, #tpu.memory_space<vmem>>, vector<512x128xf32>
      %c0_12 = arith.constant 0 : index
      %c0_13 = arith.constant 0 : index
      %13 = vector.load %arg5[%c0_12, %c0_13] : memref<1x128xf32, #tpu.memory_space<vmem>>, vector<1x128xf32>
      %14 = vector.broadcast %13 : vector<1x128xf32> to vector<512x128xf32>
      %15 = arith.addf %12, %14 : vector<512x128xf32>
      %16 = arith.truncf %15 : vector<512x128xf32> to vector<512x128xbf16>
      %c0_14 = arith.constant 0 : index
      %c0_15 = arith.constant 0 : index
      %17 = vector.load %arg6[%c0_14, %c0_15] : memref<512x128xbf16, #tpu.memory_space<vmem>>, vector<512x128xbf16>
      tpu.vector_store %arg6[%c0_14, %c0_15], %16 {strides = array<i32>} : memref<512x128xbf16, #tpu.memory_space<vmem>>, vector<512x128xbf16>,
    } else {
    }
    return
  }
  func.func @transform_0(%arg0: i32, %arg1: i32, %arg2: i32) -> (i32, i32) {
    %c0_i32 = arith.constant 0 : i32
    return %arg0, %arg2 : i32, i32
  }
  func.func @transform_1(%arg0: i32, %arg1: i32, %arg2: i32) -> (i32, i32) {
    %c0_i32 = arith.constant 0 : i32
    return %arg2, %arg1 : i32, i32
  }
  func.func @transform_2(%arg0: i32, %arg1: i32, %arg2: i32) -> (i32, i32) {
    %c0_i32 = arith.constant 0 : i32
    %c0_i32_0 = arith.constant 0 : i32
    return %c0_i32, %arg1 : i32, i32
  }
  func.func @transform_3(%arg0: i32, %arg1: i32, %arg2: i32) -> (i32, i32) {
    %c0_i32 = arith.constant 0 : i32
    return %arg0, %arg1 : i32, i32
  }
}

module attributes {stable_mosaic.version = 11 : i64} {
  func.func @_matmul_kernel(%arg0: i32, %arg1: i32, %arg2: i32, %arg3: memref<128x128xbf16, #tpu.memory_space<vmem>>, %arg4: memref<128x128xbf16, #tpu.memory_space<vmem>>, %arg5: memref<1x128xf32, #tpu.memory_space<vmem>>, %arg6: memref<128x128xbf16, #tpu.memory_space<vmem>>, %arg7: memref<1x8x128xf32, #tpu.memory_space<vmem>>, %arg8: memref<128x128xf32, #tpu.memory_space<vmem>>) attributes {dimension_semantics = [#tpu.dimension_semantics<parallel>, #tpu.dimension_semantics<parallel>, #tpu.dimension_semantics<arbitrary>], iteration_bounds = array<i64: 1, 1, 1>, scalar_prefetch = 0 : i64, scratch_operands = 1 : i64, tpu.core_type = #tpu.core_type<tc>, window_params = [{transform_indices = @transform_0, window_bounds = array<i64: 128, 128>}, {transform_indices = @transform_1, window_bounds = array<i64: 128, 128>}, {transform_indices = @transform_2, window_bounds = array<i64: 1, 128>}, {transform_indices = @transform_3, window_bounds = array<i64: 128, 128>}, {transform_indices = @transform_4, window_bounds = array<i64: 1, 8, 128>}]} {
    %c0_i32 = arith.constant 0 : i32
    %0 = arith.cmpi eq, %arg2, %c0_i32 : i32
    %c0_i32_0 = arith.constant 0 : i32
    %1 = arith.cmpi eq, %arg2, %c0_i32_0 : i32
    %2 = arith.extui %1 : i1 to i32
    %c0_i32_1 = arith.constant 0 : i32
    %3 = arith.cmpi ne, %2, %c0_i32_1 : i32
    scf.if %3 {
      %cst_10 = arith.constant 0.000000e+00 : f32
      %12 = vector.broadcast %cst_10 : f32 to vector<128x128xf32>
      %c0_11 = arith.constant 0 : index
      %c0_12 = arith.constant 0 : index
      %13 = vector.load %arg8[%c0_11, %c0_12] : memref<128x128xf32, #tpu.memory_space<vmem>>, vector<128x128xf32>
      tpu.vector_store %arg8[%c0_11, %c0_12], %12 {strides = array<i32>} : memref<128x128xf32, #tpu.memory_space<vmem>>, vector<128x128xf32>,
    } else {
    }
    %c0 = arith.constant 0 : index
    %c0_2 = arith.constant 0 : index
    %4 = vector.load %arg8[%c0, %c0_2] : memref<128x128xf32, #tpu.memory_space<vmem>>, vector<128x128xf32>
    %c0_3 = arith.constant 0 : index
    %c0_4 = arith.constant 0 : index
    %5 = vector.load %arg3[%c0_3, %c0_4] : memref<128x128xbf16, #tpu.memory_space<vmem>>, vector<128x128xbf16>
    %c0_5 = arith.constant 0 : index
    %c0_6 = arith.constant 0 : index
    %6 = vector.load %arg4[%c0_5, %c0_6] : memref<128x128xbf16, #tpu.memory_space<vmem>>, vector<128x128xbf16>
    %cst = arith.constant dense<0.000000e+00> : vector<128x128xf32>
    %7 = tpu.matmul %5, %6, %cst {dimension_numbers = #tpu.dot_dimension_numbers<[1], [0], [0], [1], [0, 0, 1, 1], [], []>} : vector<128x128xbf16>, vector<128x128xbf16>, vector<128x128xf32> -> vector<128x128xf32>
    %8 = arith.addf %4, %7 : vector<128x128xf32>
    %c0_7 = arith.constant 0 : index
    %c0_8 = arith.constant 0 : index
    %9 = vector.load %arg8[%c0_7, %c0_8] : memref<128x128xf32, #tpu.memory_space<vmem>>, vector<128x128xf32>
    tpu.vector_store %arg8[%c0_7, %c0_8], %8 {strides = array<i32>} : memref<128x128xf32, #tpu.memory_space<vmem>>, vector<128x128xf32>,
    %10 = arith.extui %0 : i1 to i32
    %c0_i32_9 = arith.constant 0 : i32
    %11 = arith.cmpi ne, %10, %c0_i32_9 : i32
    scf.if %11 {
      %c0_10 = arith.constant 0 : index
      %c0_11 = arith.constant 0 : index
      %12 = vector.load %arg8[%c0_10, %c0_11] : memref<128x128xf32, #tpu.memory_space<vmem>>, vector<128x128xf32>
      %c0_12 = arith.constant 0 : index
      %c0_13 = arith.constant 0 : index
      %13 = vector.load %arg5[%c0_12, %c0_13] : memref<1x128xf32, #tpu.memory_space<vmem>>, vector<1x128xf32>
      %14 = vector.broadcast %13 : vector<1x128xf32> to vector<128x128xf32>
      %15 = arith.addf %12, %14 : vector<128x128xf32>
      %cst_14 = arith.constant dense<0.000000e+00> : vector<128xf32>
      %16 = vector.multi_reduction <add>, %15, %cst_14 [0] : vector<128x128xf32> to vector<128xf32>
      %17 = vector.shape_cast %16 : vector<128xf32> to vector<1x128xf32>
      %18 = arith.mulf %15, %15 : vector<128x128xf32>
      %cst_15 = arith.constant dense<0.000000e+00> : vector<128xf32>
      %19 = vector.multi_reduction <add>, %18, %cst_15 [0] : vector<128x128xf32> to vector<128xf32>
      %20 = vector.shape_cast %19 : vector<128xf32> to vector<1x128xf32>
      %21 = tpu.iota {dimensions = array<i32: 0>} : vector<8x128xi32>
      %c0_i32_16 = arith.constant 0 : i32
      %22 = vector.broadcast %c0_i32_16 : i32 to vector<8x128xi32>
      %23 = arith.cmpi eq, %21, %22 : vector<8x128xi32>
      %cst_17 = arith.constant 0.000000e+00 : f32
      %24 = vector.shape_cast %17 : vector<1x128xf32> to vector<1x128xf32>
      %25 = vector.broadcast %24 : vector<1x128xf32> to vector<8x128xf32>
      %26 = vector.broadcast %cst_17 : f32 to vector<8x128xf32>
      %27 = arith.select %23, %25, %26 : vector<8x128xi1>, vector<8x128xf32>
      %c1_i32 = arith.constant 1 : i32
      %28 = vector.broadcast %c1_i32 : i32 to vector<8x128xi32>
      %29 = arith.cmpi eq, %21, %28 : vector<8x128xi32>
      %30 = vector.shape_cast %20 : vector<1x128xf32> to vector<1x128xf32>
      %31 = vector.broadcast %30 : vector<1x128xf32> to vector<8x128xf32>
      %32 = arith.select %29, %31, %27 : vector<8x128xi1>, vector<8x128xf32>
      %c0_18 = arith.constant 0 : index
      %c0_19 = arith.constant 0 : index
      %c0_20 = arith.constant 0 : index
      %33 = vector.load %arg7[%c0_18, %c0_19, %c0_20] : memref<1x8x128xf32, #tpu.memory_space<vmem>>, vector<1x8x128xf32>
      %34 = vector.shape_cast %33 : vector<1x8x128xf32> to vector<8x128xf32>
      %35 = vector.shape_cast %32 : vector<8x128xf32> to vector<1x8x128xf32>
      tpu.vector_store %arg7[%c0_18, %c0_19, %c0_20], %35 {strides = array<i32>} : memref<1x8x128xf32, #tpu.memory_space<vmem>>, vector<1x8x128xf32>,
      %36 = arith.truncf %15 : vector<128x128xf32> to vector<128x128xbf16>
      %c0_21 = arith.constant 0 : index
      %c0_22 = arith.constant 0 : index
      %37 = vector.load %arg6[%c0_21, %c0_22] : memref<128x128xbf16, #tpu.memory_space<vmem>>, vector<128x128xbf16>
      tpu.vector_store %arg6[%c0_21, %c0_22], %36 {strides = array<i32>} : memref<128x128xbf16, #tpu.memory_space<vmem>>, vector<128x128xbf16>,
    } else {
    }
    return
  }
  func.func @transform_0(%arg0: i32, %arg1: i32, %arg2: i32) -> (i32, i32) {
    %c0_i32 = arith.constant 0 : i32
    return %arg0, %arg2 : i32, i32
  }
  func.func @transform_1(%arg0: i32, %arg1: i32, %arg2: i32) -> (i32, i32) {
    %c0_i32 = arith.constant 0 : i32
    return %arg2, %arg1 : i32, i32
  }
  func.func @transform_2(%arg0: i32, %arg1: i32, %arg2: i32) -> (i32, i32) {
    %c0_i32 = arith.constant 0 : i32
    %c0_i32_0 = arith.constant 0 : i32
    return %c0_i32, %arg1 : i32, i32
  }
  func.func @transform_3(%arg0: i32, %arg1: i32, %arg2: i32) -> (i32, i32) {
    %c0_i32 = arith.constant 0 : i32
    return %arg0, %arg1 : i32, i32
  }
  func.func @transform_4(%arg0: i32, %arg1: i32, %arg2: i32) -> (i32, i32, i32) {
    %c0_i32 = arith.constant 0 : i32
    %c0_i32_0 = arith.constant 0 : i32
    return %arg0, %c0_i32, %arg1 : i32, i32, i32
  }
}

module attributes {stable_mosaic.version = 11 : i64} {
  func.func @_bn_apply_kernel(%arg0: i32, %arg1: memref<128x128xbf16, #tpu.memory_space<vmem>>, %arg2: memref<1x128xf32, #tpu.memory_space<vmem>>, %arg3: memref<1x128xf32, #tpu.memory_space<vmem>>, %arg4: memref<128x128xbf16, #tpu.memory_space<vmem>>) attributes {dimension_semantics = [#tpu.dimension_semantics<parallel>], iteration_bounds = array<i64: 1>, scalar_prefetch = 0 : i64, scratch_operands = 0 : i64, tpu.core_type = #tpu.core_type<tc>, window_params = [{transform_indices = @transform_0, window_bounds = array<i64: 128, 128>}, {pipeline_mode = #tpu.pipeline_mode<synchronous>, transform_indices = @transform_1, window_bounds = array<i64: 1, 128>}, {pipeline_mode = #tpu.pipeline_mode<synchronous>, transform_indices = @transform_2, window_bounds = array<i64: 1, 128>}, {transform_indices = @transform_3, window_bounds = array<i64: 128, 128>}]} {
    %c0 = arith.constant 0 : index
    %c0_0 = arith.constant 0 : index
    %0 = vector.load %arg1[%c0, %c0_0] : memref<128x128xbf16, #tpu.memory_space<vmem>>, vector<128x128xbf16>
    %1 = arith.extf %0 : vector<128x128xbf16> to vector<128x128xf32>
    %c0_1 = arith.constant 0 : index
    %c0_2 = arith.constant 0 : index
    %2 = vector.load %arg2[%c0_1, %c0_2] : memref<1x128xf32, #tpu.memory_space<vmem>>, vector<1x128xf32>
    %3 = vector.broadcast %2 : vector<1x128xf32> to vector<128x128xf32>
    %4 = arith.mulf %1, %3 : vector<128x128xf32>
    %c0_3 = arith.constant 0 : index
    %c0_4 = arith.constant 0 : index
    %5 = vector.load %arg3[%c0_3, %c0_4] : memref<1x128xf32, #tpu.memory_space<vmem>>, vector<1x128xf32>
    %6 = vector.broadcast %5 : vector<1x128xf32> to vector<128x128xf32>
    %7 = arith.addf %4, %6 : vector<128x128xf32>
    %8 = arith.truncf %7 : vector<128x128xf32> to vector<128x128xbf16>
    %c0_5 = arith.constant 0 : index
    %c0_6 = arith.constant 0 : index
    %9 = vector.load %arg4[%c0_5, %c0_6] : memref<128x128xbf16, #tpu.memory_space<vmem>>, vector<128x128xbf16>
    tpu.vector_store %arg4[%c0_5, %c0_6], %8 {strides = array<i32>} : memref<128x128xbf16, #tpu.memory_space<vmem>>, vector<128x128xbf16>,
    return
  }
  func.func @transform_0(%arg0: i32) -> (i32, i32) {
    %c0_i32 = arith.constant 0 : i32
    %c0_i32_0 = arith.constant 0 : i32
    return %arg0, %c0_i32 : i32, i32
  }
  func.func @transform_1(%arg0: i32) -> (i32, i32) {
    %c0_i32 = arith.constant 0 : i32
    %c0_i32_0 = arith.constant 0 : i32
    %c0_i32_1 = arith.constant 0 : i32
    return %c0_i32, %c0_i32_0 : i32, i32
  }
  func.func @transform_2(%arg0: i32) -> (i32, i32) {
    %c0_i32 = arith.constant 0 : i32
    %c0_i32_0 = arith.constant 0 : i32
    %c0_i32_1 = arith.constant 0 : i32
    return %c0_i32, %c0_i32_0 : i32, i32
  }
  func.func @transform_3(%arg0: i32) -> (i32, i32) {
    %c0_i32 = arith.constant 0 : i32
    %c0_i32_0 = arith.constant 0 : i32
    return %arg0, %c0_i32 : i32, i32
  }
}

module attributes {stable_mosaic.version = 11 : i64} {
  func.func @_bn_apply_kernel(%arg0: i32, %arg1: memref<32x128xbf16, #tpu.memory_space<vmem>>, %arg2: memref<1x128xf32, #tpu.memory_space<vmem>>, %arg3: memref<1x128xf32, #tpu.memory_space<vmem>>, %arg4: memref<32x128xbf16, #tpu.memory_space<vmem>>) attributes {dimension_semantics = [#tpu.dimension_semantics<parallel>], iteration_bounds = array<i64: 1>, scalar_prefetch = 0 : i64, scratch_operands = 0 : i64, tpu.core_type = #tpu.core_type<tc>, window_params = [{transform_indices = @transform_0, window_bounds = array<i64: 32, 128>}, {pipeline_mode = #tpu.pipeline_mode<synchronous>, transform_indices = @transform_1, window_bounds = array<i64: 1, 128>}, {pipeline_mode = #tpu.pipeline_mode<synchronous>, transform_indices = @transform_2, window_bounds = array<i64: 1, 128>}, {transform_indices = @transform_3, window_bounds = array<i64: 32, 128>}]} {
    %c0 = arith.constant 0 : index
    %c0_0 = arith.constant 0 : index
    %0 = vector.load %arg1[%c0, %c0_0] : memref<32x128xbf16, #tpu.memory_space<vmem>>, vector<32x128xbf16>
    %1 = arith.extf %0 : vector<32x128xbf16> to vector<32x128xf32>
    %c0_1 = arith.constant 0 : index
    %c0_2 = arith.constant 0 : index
    %2 = vector.load %arg2[%c0_1, %c0_2] : memref<1x128xf32, #tpu.memory_space<vmem>>, vector<1x128xf32>
    %3 = vector.broadcast %2 : vector<1x128xf32> to vector<32x128xf32>
    %4 = arith.mulf %1, %3 : vector<32x128xf32>
    %c0_3 = arith.constant 0 : index
    %c0_4 = arith.constant 0 : index
    %5 = vector.load %arg3[%c0_3, %c0_4] : memref<1x128xf32, #tpu.memory_space<vmem>>, vector<1x128xf32>
    %6 = vector.broadcast %5 : vector<1x128xf32> to vector<32x128xf32>
    %7 = arith.addf %4, %6 : vector<32x128xf32>
    %8 = arith.truncf %7 : vector<32x128xf32> to vector<32x128xbf16>
    %c0_5 = arith.constant 0 : index
    %c0_6 = arith.constant 0 : index
    %9 = vector.load %arg4[%c0_5, %c0_6] : memref<32x128xbf16, #tpu.memory_space<vmem>>, vector<32x128xbf16>
    tpu.vector_store %arg4[%c0_5, %c0_6], %8 {strides = array<i32>} : memref<32x128xbf16, #tpu.memory_space<vmem>>, vector<32x128xbf16>,
    return
  }
  func.func @transform_0(%arg0: i32) -> (i32, i32) {
    %c0_i32 = arith.constant 0 : i32
    %c0_i32_0 = arith.constant 0 : i32
    return %arg0, %c0_i32 : i32, i32
  }
  func.func @transform_1(%arg0: i32) -> (i32, i32) {
    %c0_i32 = arith.constant 0 : i32
    %c0_i32_0 = arith.constant 0 : i32
    %c0_i32_1 = arith.constant 0 : i32
    return %c0_i32, %c0_i32_0 : i32, i32
  }
  func.func @transform_2(%arg0: i32) -> (i32, i32) {
    %c0_i32 = arith.constant 0 : i32
    %c0_i32_0 = arith.constant 0 : i32
    %c0_i32_1 = arith.constant 0 : i32
    return %c0_i32, %c0_i32_0 : i32, i32
  }
  func.func @transform_3(%arg0: i32) -> (i32, i32) {
    %c0_i32 = arith.constant 0 : i32
    %c0_i32_0 = arith.constant 0 : i32
    return %arg0, %c0_i32 : i32, i32
  }
}

module attributes {stable_mosaic.version = 11 : i64} {
  func.func @_matmul_kernel(%arg0: i32, %arg1: i32, %arg2: i32, %arg3: memref<32x256xbf16, #tpu.memory_space<vmem>>, %arg4: memref<256x128xbf16, #tpu.memory_space<vmem>>, %arg5: memref<1x128xf32, #tpu.memory_space<vmem>>, %arg6: memref<32x128xbf16, #tpu.memory_space<vmem>>, %arg7: memref<1x8x128xf32, #tpu.memory_space<vmem>>, %arg8: memref<32x128xf32, #tpu.memory_space<vmem>>) attributes {dimension_semantics = [#tpu.dimension_semantics<parallel>, #tpu.dimension_semantics<parallel>, #tpu.dimension_semantics<arbitrary>], iteration_bounds = array<i64: 1, 1, 1>, scalar_prefetch = 0 : i64, scratch_operands = 1 : i64, tpu.core_type = #tpu.core_type<tc>, window_params = [{transform_indices = @transform_0, window_bounds = array<i64: 32, 256>}, {transform_indices = @transform_1, window_bounds = array<i64: 256, 128>}, {transform_indices = @transform_2, window_bounds = array<i64: 1, 128>}, {transform_indices = @transform_3, window_bounds = array<i64: 32, 128>}, {transform_indices = @transform_4, window_bounds = array<i64: 1, 8, 128>}]} {
    %c0_i32 = arith.constant 0 : i32
    %0 = arith.cmpi eq, %arg2, %c0_i32 : i32
    %c0_i32_0 = arith.constant 0 : i32
    %1 = arith.cmpi eq, %arg2, %c0_i32_0 : i32
    %2 = arith.extui %1 : i1 to i32
    %c0_i32_1 = arith.constant 0 : i32
    %3 = arith.cmpi ne, %2, %c0_i32_1 : i32
    scf.if %3 {
      %cst_10 = arith.constant 0.000000e+00 : f32
      %12 = vector.broadcast %cst_10 : f32 to vector<32x128xf32>
      %c0_11 = arith.constant 0 : index
      %c0_12 = arith.constant 0 : index
      %13 = vector.load %arg8[%c0_11, %c0_12] : memref<32x128xf32, #tpu.memory_space<vmem>>, vector<32x128xf32>
      tpu.vector_store %arg8[%c0_11, %c0_12], %12 {strides = array<i32>} : memref<32x128xf32, #tpu.memory_space<vmem>>, vector<32x128xf32>,
    } else {
    }
    %c0 = arith.constant 0 : index
    %c0_2 = arith.constant 0 : index
    %4 = vector.load %arg8[%c0, %c0_2] : memref<32x128xf32, #tpu.memory_space<vmem>>, vector<32x128xf32>
    %c0_3 = arith.constant 0 : index
    %c0_4 = arith.constant 0 : index
    %5 = vector.load %arg3[%c0_3, %c0_4] : memref<32x256xbf16, #tpu.memory_space<vmem>>, vector<32x256xbf16>
    %c0_5 = arith.constant 0 : index
    %c0_6 = arith.constant 0 : index
    %6 = vector.load %arg4[%c0_5, %c0_6] : memref<256x128xbf16, #tpu.memory_space<vmem>>, vector<256x128xbf16>
    %cst = arith.constant dense<0.000000e+00> : vector<32x128xf32>
    %7 = tpu.matmul %5, %6, %cst {dimension_numbers = #tpu.dot_dimension_numbers<[1], [0], [0], [1], [0, 0, 1, 1], [], []>} : vector<32x256xbf16>, vector<256x128xbf16>, vector<32x128xf32> -> vector<32x128xf32>
    %8 = arith.addf %4, %7 : vector<32x128xf32>
    %c0_7 = arith.constant 0 : index
    %c0_8 = arith.constant 0 : index
    %9 = vector.load %arg8[%c0_7, %c0_8] : memref<32x128xf32, #tpu.memory_space<vmem>>, vector<32x128xf32>
    tpu.vector_store %arg8[%c0_7, %c0_8], %8 {strides = array<i32>} : memref<32x128xf32, #tpu.memory_space<vmem>>, vector<32x128xf32>,
    %10 = arith.extui %0 : i1 to i32
    %c0_i32_9 = arith.constant 0 : i32
    %11 = arith.cmpi ne, %10, %c0_i32_9 : i32
    scf.if %11 {
      %c0_10 = arith.constant 0 : index
      %c0_11 = arith.constant 0 : index
      %12 = vector.load %arg8[%c0_10, %c0_11] : memref<32x128xf32, #tpu.memory_space<vmem>>, vector<32x128xf32>
      %c0_12 = arith.constant 0 : index
      %c0_13 = arith.constant 0 : index
      %13 = vector.load %arg5[%c0_12, %c0_13] : memref<1x128xf32, #tpu.memory_space<vmem>>, vector<1x128xf32>
      %14 = vector.broadcast %13 : vector<1x128xf32> to vector<32x128xf32>
      %15 = arith.addf %12, %14 : vector<32x128xf32>
      %cst_14 = arith.constant dense<0.000000e+00> : vector<128xf32>
      %16 = vector.multi_reduction <add>, %15, %cst_14 [0] : vector<32x128xf32> to vector<128xf32>
      %17 = vector.shape_cast %16 : vector<128xf32> to vector<1x128xf32>
      %18 = arith.mulf %15, %15 : vector<32x128xf32>
      %cst_15 = arith.constant dense<0.000000e+00> : vector<128xf32>
      %19 = vector.multi_reduction <add>, %18, %cst_15 [0] : vector<32x128xf32> to vector<128xf32>
      %20 = vector.shape_cast %19 : vector<128xf32> to vector<1x128xf32>
      %21 = tpu.iota {dimensions = array<i32: 0>} : vector<8x128xi32>
      %c0_i32_16 = arith.constant 0 : i32
      %22 = vector.broadcast %c0_i32_16 : i32 to vector<8x128xi32>
      %23 = arith.cmpi eq, %21, %22 : vector<8x128xi32>
      %cst_17 = arith.constant 0.000000e+00 : f32
      %24 = vector.shape_cast %17 : vector<1x128xf32> to vector<1x128xf32>
      %25 = vector.broadcast %24 : vector<1x128xf32> to vector<8x128xf32>
      %26 = vector.broadcast %cst_17 : f32 to vector<8x128xf32>
      %27 = arith.select %23, %25, %26 : vector<8x128xi1>, vector<8x128xf32>
      %c1_i32 = arith.constant 1 : i32
      %28 = vector.broadcast %c1_i32 : i32 to vector<8x128xi32>
      %29 = arith.cmpi eq, %21, %28 : vector<8x128xi32>
      %30 = vector.shape_cast %20 : vector<1x128xf32> to vector<1x128xf32>
      %31 = vector.broadcast %30 : vector<1x128xf32> to vector<8x128xf32>
      %32 = arith.select %29, %31, %27 : vector<8x128xi1>, vector<8x128xf32>
      %c0_18 = arith.constant 0 : index
      %c0_19 = arith.constant 0 : index
      %c0_20 = arith.constant 0 : index
      %33 = vector.load %arg7[%c0_18, %c0_19, %c0_20] : memref<1x8x128xf32, #tpu.memory_space<vmem>>, vector<1x8x128xf32>
      %34 = vector.shape_cast %33 : vector<1x8x128xf32> to vector<8x128xf32>
      %35 = vector.shape_cast %32 : vector<8x128xf32> to vector<1x8x128xf32>
      tpu.vector_store %arg7[%c0_18, %c0_19, %c0_20], %35 {strides = array<i32>} : memref<1x8x128xf32, #tpu.memory_space<vmem>>, vector<1x8x128xf32>,
      %36 = arith.truncf %15 : vector<32x128xf32> to vector<32x128xbf16>
      %c0_21 = arith.constant 0 : index
      %c0_22 = arith.constant 0 : index
      %37 = vector.load %arg6[%c0_21, %c0_22] : memref<32x128xbf16, #tpu.memory_space<vmem>>, vector<32x128xbf16>
      tpu.vector_store %arg6[%c0_21, %c0_22], %36 {strides = array<i32>} : memref<32x128xbf16, #tpu.memory_space<vmem>>, vector<32x128xbf16>,
    } else {
    }
    return
  }
  func.func @transform_0(%arg0: i32, %arg1: i32, %arg2: i32) -> (i32, i32) {
    %c0_i32 = arith.constant 0 : i32
    return %arg0, %arg2 : i32, i32
  }
  func.func @transform_1(%arg0: i32, %arg1: i32, %arg2: i32) -> (i32, i32) {
    %c0_i32 = arith.constant 0 : i32
    return %arg2, %arg1 : i32, i32
  }
  func.func @transform_2(%arg0: i32, %arg1: i32, %arg2: i32) -> (i32, i32) {
    %c0_i32 = arith.constant 0 : i32
    %c0_i32_0 = arith.constant 0 : i32
    return %c0_i32, %arg1 : i32, i32
  }
  func.func @transform_3(%arg0: i32, %arg1: i32, %arg2: i32) -> (i32, i32) {
    %c0_i32 = arith.constant 0 : i32
    return %arg0, %arg1 : i32, i32
  }
  func.func @transform_4(%arg0: i32, %arg1: i32, %arg2: i32) -> (i32, i32, i32) {
    %c0_i32 = arith.constant 0 : i32
    %c0_i32_0 = arith.constant 0 : i32
    return %arg0, %c0_i32, %arg1 : i32, i32, i32
  }
}

module attributes {stable_mosaic.version = 11 : i64} {
  func.func @_matmul_kernel(%arg0: i32, %arg1: i32, %arg2: i32, %arg3: memref<16x512xbf16, #tpu.memory_space<vmem>>, %arg4: memref<512x128xbf16, #tpu.memory_space<vmem>>, %arg5: memref<1x128xf32, #tpu.memory_space<vmem>>, %arg6: memref<16x128xbf16, #tpu.memory_space<vmem>>, %arg7: memref<1x8x128xf32, #tpu.memory_space<vmem>>, %arg8: memref<16x128xf32, #tpu.memory_space<vmem>>) attributes {dimension_semantics = [#tpu.dimension_semantics<parallel>, #tpu.dimension_semantics<parallel>, #tpu.dimension_semantics<arbitrary>], iteration_bounds = array<i64: 1, 1, 1>, scalar_prefetch = 0 : i64, scratch_operands = 1 : i64, tpu.core_type = #tpu.core_type<tc>, window_params = [{transform_indices = @transform_0, window_bounds = array<i64: 16, 512>}, {transform_indices = @transform_1, window_bounds = array<i64: 512, 128>}, {transform_indices = @transform_2, window_bounds = array<i64: 1, 128>}, {transform_indices = @transform_3, window_bounds = array<i64: 16, 128>}, {transform_indices = @transform_4, window_bounds = array<i64: 1, 8, 128>}]} {
    %c0_i32 = arith.constant 0 : i32
    %0 = arith.cmpi eq, %arg2, %c0_i32 : i32
    %c16_i32 = arith.constant 16 : i32
    %1 = arith.muli %arg0, %c16_i32 : i32
    %c0_i32_0 = arith.constant 0 : i32
    %2 = arith.cmpi eq, %arg2, %c0_i32_0 : i32
    %3 = arith.extui %2 : i1 to i32
    %c0_i32_1 = arith.constant 0 : i32
    %4 = arith.cmpi ne, %3, %c0_i32_1 : i32
    scf.if %4 {
      %cst_10 = arith.constant 0.000000e+00 : f32
      %13 = vector.broadcast %cst_10 : f32 to vector<16x128xf32>
      %c0_11 = arith.constant 0 : index
      %c0_12 = arith.constant 0 : index
      %14 = vector.load %arg8[%c0_11, %c0_12] : memref<16x128xf32, #tpu.memory_space<vmem>>, vector<16x128xf32>
      tpu.vector_store %arg8[%c0_11, %c0_12], %13 {strides = array<i32>} : memref<16x128xf32, #tpu.memory_space<vmem>>, vector<16x128xf32>,
    } else {
    }
    %c0 = arith.constant 0 : index
    %c0_2 = arith.constant 0 : index
    %5 = vector.load %arg8[%c0, %c0_2] : memref<16x128xf32, #tpu.memory_space<vmem>>, vector<16x128xf32>
    %c0_3 = arith.constant 0 : index
    %c0_4 = arith.constant 0 : index
    %6 = vector.load %arg3[%c0_3, %c0_4] : memref<16x512xbf16, #tpu.memory_space<vmem>>, vector<16x512xbf16>
    %c0_5 = arith.constant 0 : index
    %c0_6 = arith.constant 0 : index
    %7 = vector.load %arg4[%c0_5, %c0_6] : memref<512x128xbf16, #tpu.memory_space<vmem>>, vector<512x128xbf16>
    %cst = arith.constant dense<0.000000e+00> : vector<16x128xf32>
    %8 = tpu.matmul %6, %7, %cst {dimension_numbers = #tpu.dot_dimension_numbers<[1], [0], [0], [1], [0, 0, 1, 1], [], []>} : vector<16x512xbf16>, vector<512x128xbf16>, vector<16x128xf32> -> vector<16x128xf32>
    %9 = arith.addf %5, %8 : vector<16x128xf32>
    %c0_7 = arith.constant 0 : index
    %c0_8 = arith.constant 0 : index
    %10 = vector.load %arg8[%c0_7, %c0_8] : memref<16x128xf32, #tpu.memory_space<vmem>>, vector<16x128xf32>
    tpu.vector_store %arg8[%c0_7, %c0_8], %9 {strides = array<i32>} : memref<16x128xf32, #tpu.memory_space<vmem>>, vector<16x128xf32>,
    %11 = arith.extui %0 : i1 to i32
    %c0_i32_9 = arith.constant 0 : i32
    %12 = arith.cmpi ne, %11, %c0_i32_9 : i32
    scf.if %12 {
      %c0_10 = arith.constant 0 : index
      %c0_11 = arith.constant 0 : index
      %13 = vector.load %arg8[%c0_10, %c0_11] : memref<16x128xf32, #tpu.memory_space<vmem>>, vector<16x128xf32>
      %c0_12 = arith.constant 0 : index
      %c0_13 = arith.constant 0 : index
      %14 = vector.load %arg5[%c0_12, %c0_13] : memref<1x128xf32, #tpu.memory_space<vmem>>, vector<1x128xf32>
      %15 = vector.broadcast %14 : vector<1x128xf32> to vector<16x128xf32>
      %16 = arith.addf %13, %15 : vector<16x128xf32>
      %17 = tpu.iota {dimensions = array<i32: 0>} : vector<16x1xi32>
      %18 = vector.broadcast %1 : i32 to vector<16x1xi32>
      %19 = arith.addi %18, %17 : vector<16x1xi32>
      %c8_i32 = arith.constant 8 : i32
      %20 = vector.broadcast %c8_i32 : i32 to vector<16x1xi32>
      %21 = arith.cmpi slt, %19, %20 : vector<16x1xi32>
      %cst_14 = arith.constant 0.000000e+00 : f32
      %22 = vector.shape_cast %21 : vector<16x1xi1> to vector<16x1xi1>
      %23 = vector.broadcast %22 : vector<16x1xi1> to vector<16x128xi1>
      %24 = vector.broadcast %cst_14 : f32 to vector<16x128xf32>
      %25 = arith.select %23, %16, %24 : vector<16x128xi1>, vector<16x128xf32>
      %cst_15 = arith.constant dense<0.000000e+00> : vector<128xf32>
      %26 = vector.multi_reduction <add>, %25, %cst_15 [0] : vector<16x128xf32> to vector<128xf32>
      %27 = vector.shape_cast %26 : vector<128xf32> to vector<1x128xf32>
      %28 = arith.mulf %25, %25 : vector<16x128xf32>
      %cst_16 = arith.constant dense<0.000000e+00> : vector<128xf32>
      %29 = vector.multi_reduction <add>, %28, %cst_16 [0] : vector<16x128xf32> to vector<128xf32>
      %30 = vector.shape_cast %29 : vector<128xf32> to vector<1x128xf32>
      %31 = tpu.iota {dimensions = array<i32: 0>} : vector<8x128xi32>
      %c0_i32_17 = arith.constant 0 : i32
      %32 = vector.broadcast %c0_i32_17 : i32 to vector<8x128xi32>
      %33 = arith.cmpi eq, %31, %32 : vector<8x128xi32>
      %cst_18 = arith.constant 0.000000e+00 : f32
      %34 = vector.shape_cast %27 : vector<1x128xf32> to vector<1x128xf32>
      %35 = vector.broadcast %34 : vector<1x128xf32> to vector<8x128xf32>
      %36 = vector.broadcast %cst_18 : f32 to vector<8x128xf32>
      %37 = arith.select %33, %35, %36 : vector<8x128xi1>, vector<8x128xf32>
      %c1_i32 = arith.constant 1 : i32
      %38 = vector.broadcast %c1_i32 : i32 to vector<8x128xi32>
      %39 = arith.cmpi eq, %31, %38 : vector<8x128xi32>
      %40 = vector.shape_cast %30 : vector<1x128xf32> to vector<1x128xf32>
      %41 = vector.broadcast %40 : vector<1x128xf32> to vector<8x128xf32>
      %42 = arith.select %39, %41, %37 : vector<8x128xi1>, vector<8x128xf32>
      %c0_19 = arith.constant 0 : index
      %c0_20 = arith.constant 0 : index
      %c0_21 = arith.constant 0 : index
      %43 = vector.load %arg7[%c0_19, %c0_20, %c0_21] : memref<1x8x128xf32, #tpu.memory_space<vmem>>, vector<1x8x128xf32>
      %44 = vector.shape_cast %43 : vector<1x8x128xf32> to vector<8x128xf32>
      %45 = vector.shape_cast %42 : vector<8x128xf32> to vector<1x8x128xf32>
      tpu.vector_store %arg7[%c0_19, %c0_20, %c0_21], %45 {strides = array<i32>} : memref<1x8x128xf32, #tpu.memory_space<vmem>>, vector<1x8x128xf32>,
      %46 = arith.truncf %25 : vector<16x128xf32> to vector<16x128xbf16>
      %c0_22 = arith.constant 0 : index
      %c0_23 = arith.constant 0 : index
      %47 = vector.load %arg6[%c0_22, %c0_23] : memref<16x128xbf16, #tpu.memory_space<vmem>>, vector<16x128xbf16>
      tpu.vector_store %arg6[%c0_22, %c0_23], %46 {strides = array<i32>} : memref<16x128xbf16, #tpu.memory_space<vmem>>, vector<16x128xbf16>,
    } else {
    }
    return
  }
  func.func @transform_0(%arg0: i32, %arg1: i32, %arg2: i32) -> (i32, i32) {
    %c0_i32 = arith.constant 0 : i32
    return %arg0, %arg2 : i32, i32
  }
  func.func @transform_1(%arg0: i32, %arg1: i32, %arg2: i32) -> (i32, i32) {
    %c0_i32 = arith.constant 0 : i32
    return %arg2, %arg1 : i32, i32
  }
  func.func @transform_2(%arg0: i32, %arg1: i32, %arg2: i32) -> (i32, i32) {
    %c0_i32 = arith.constant 0 : i32
    %c0_i32_0 = arith.constant 0 : i32
    return %c0_i32, %arg1 : i32, i32
  }
  func.func @transform_3(%arg0: i32, %arg1: i32, %arg2: i32) -> (i32, i32) {
    %c0_i32 = arith.constant 0 : i32
    return %arg0, %arg1 : i32, i32
  }
  func.func @transform_4(%arg0: i32, %arg1: i32, %arg2: i32) -> (i32, i32, i32) {
    %c0_i32 = arith.constant 0 : i32
    %c0_i32_0 = arith.constant 0 : i32
    return %arg0, %c0_i32, %arg1 : i32, i32, i32
  }
}

module attributes {stable_mosaic.version = 11 : i64} {
  func.func @_bn_apply_kernel(%arg0: i32, %arg1: memref<16x128xbf16, #tpu.memory_space<vmem>>, %arg2: memref<1x128xf32, #tpu.memory_space<vmem>>, %arg3: memref<1x128xf32, #tpu.memory_space<vmem>>, %arg4: memref<16x128xbf16, #tpu.memory_space<vmem>>) attributes {dimension_semantics = [#tpu.dimension_semantics<parallel>], iteration_bounds = array<i64: 1>, scalar_prefetch = 0 : i64, scratch_operands = 0 : i64, tpu.core_type = #tpu.core_type<tc>, window_params = [{transform_indices = @transform_0, window_bounds = array<i64: 16, 128>}, {pipeline_mode = #tpu.pipeline_mode<synchronous>, transform_indices = @transform_1, window_bounds = array<i64: 1, 128>}, {pipeline_mode = #tpu.pipeline_mode<synchronous>, transform_indices = @transform_2, window_bounds = array<i64: 1, 128>}, {transform_indices = @transform_3, window_bounds = array<i64: 16, 128>}]} {
    %c0 = arith.constant 0 : index
    %c0_0 = arith.constant 0 : index
    %0 = vector.load %arg1[%c0, %c0_0] : memref<16x128xbf16, #tpu.memory_space<vmem>>, vector<16x128xbf16>
    %1 = arith.extf %0 : vector<16x128xbf16> to vector<16x128xf32>
    %c0_1 = arith.constant 0 : index
    %c0_2 = arith.constant 0 : index
    %2 = vector.load %arg2[%c0_1, %c0_2] : memref<1x128xf32, #tpu.memory_space<vmem>>, vector<1x128xf32>
    %3 = vector.broadcast %2 : vector<1x128xf32> to vector<16x128xf32>
    %4 = arith.mulf %1, %3 : vector<16x128xf32>
    %c0_3 = arith.constant 0 : index
    %c0_4 = arith.constant 0 : index
    %5 = vector.load %arg3[%c0_3, %c0_4] : memref<1x128xf32, #tpu.memory_space<vmem>>, vector<1x128xf32>
    %6 = vector.broadcast %5 : vector<1x128xf32> to vector<16x128xf32>
    %7 = arith.addf %4, %6 : vector<16x128xf32>
    %8 = arith.truncf %7 : vector<16x128xf32> to vector<16x128xbf16>
    %c0_5 = arith.constant 0 : index
    %c0_6 = arith.constant 0 : index
    %9 = vector.load %arg4[%c0_5, %c0_6] : memref<16x128xbf16, #tpu.memory_space<vmem>>, vector<16x128xbf16>
    tpu.vector_store %arg4[%c0_5, %c0_6], %8 {strides = array<i32>} : memref<16x128xbf16, #tpu.memory_space<vmem>>, vector<16x128xbf16>,
    return
  }
  func.func @transform_0(%arg0: i32) -> (i32, i32) {
    %c0_i32 = arith.constant 0 : i32
    %c0_i32_0 = arith.constant 0 : i32
    return %arg0, %c0_i32 : i32, i32
  }
  func.func @transform_1(%arg0: i32) -> (i32, i32) {
    %c0_i32 = arith.constant 0 : i32
    %c0_i32_0 = arith.constant 0 : i32
    %c0_i32_1 = arith.constant 0 : i32
    return %c0_i32, %c0_i32_0 : i32, i32
  }
  func.func @transform_2(%arg0: i32) -> (i32, i32) {
    %c0_i32 = arith.constant 0 : i32
    %c0_i32_0 = arith.constant 0 : i32
    %c0_i32_1 = arith.constant 0 : i32
    return %c0_i32, %c0_i32_0 : i32, i32
  }
  func.func @transform_3(%arg0: i32) -> (i32, i32) {
    %c0_i32 = arith.constant 0 : i32
    %c0_i32_0 = arith.constant 0 : i32
    return %arg0, %c0_i32 : i32, i32
  }
}

module attributes {stable_mosaic.version = 11 : i64} {
  func.func @_matmul_kernel(%arg0: i32, %arg1: i32, %arg2: i32, %arg3: memref<16x1024xbf16, #tpu.memory_space<vmem>>, %arg4: memref<1024x128xbf16, #tpu.memory_space<vmem>>, %arg5: memref<1x128xf32, #tpu.memory_space<vmem>>, %arg6: memref<16x128xbf16, #tpu.memory_space<vmem>>, %arg7: memref<16x128xf32, #tpu.memory_space<vmem>>) attributes {dimension_semantics = [#tpu.dimension_semantics<parallel>, #tpu.dimension_semantics<parallel>, #tpu.dimension_semantics<arbitrary>], iteration_bounds = array<i64: 1, 1, 1>, scalar_prefetch = 0 : i64, scratch_operands = 1 : i64, tpu.core_type = #tpu.core_type<tc>, window_params = [{transform_indices = @transform_0, window_bounds = array<i64: 16, 1024>}, {transform_indices = @transform_1, window_bounds = array<i64: 1024, 128>}, {transform_indices = @transform_2, window_bounds = array<i64: 1, 128>}, {transform_indices = @transform_3, window_bounds = array<i64: 16, 128>}]} {
    %c0_i32 = arith.constant 0 : i32
    %0 = arith.cmpi eq, %arg2, %c0_i32 : i32
    %c16_i32 = arith.constant 16 : i32
    %1 = arith.muli %arg0, %c16_i32 : i32
    %c0_i32_0 = arith.constant 0 : i32
    %2 = arith.cmpi eq, %arg2, %c0_i32_0 : i32
    %3 = arith.extui %2 : i1 to i32
    %c0_i32_1 = arith.constant 0 : i32
    %4 = arith.cmpi ne, %3, %c0_i32_1 : i32
    scf.if %4 {
      %cst_10 = arith.constant 0.000000e+00 : f32
      %13 = vector.broadcast %cst_10 : f32 to vector<16x128xf32>
      %c0_11 = arith.constant 0 : index
      %c0_12 = arith.constant 0 : index
      %14 = vector.load %arg7[%c0_11, %c0_12] : memref<16x128xf32, #tpu.memory_space<vmem>>, vector<16x128xf32>
      tpu.vector_store %arg7[%c0_11, %c0_12], %13 {strides = array<i32>} : memref<16x128xf32, #tpu.memory_space<vmem>>, vector<16x128xf32>,
    } else {
    }
    %c0 = arith.constant 0 : index
    %c0_2 = arith.constant 0 : index
    %5 = vector.load %arg7[%c0, %c0_2] : memref<16x128xf32, #tpu.memory_space<vmem>>, vector<16x128xf32>
    %c0_3 = arith.constant 0 : index
    %c0_4 = arith.constant 0 : index
    %6 = vector.load %arg3[%c0_3, %c0_4] : memref<16x1024xbf16, #tpu.memory_space<vmem>>, vector<16x1024xbf16>
    %c0_5 = arith.constant 0 : index
    %c0_6 = arith.constant 0 : index
    %7 = vector.load %arg4[%c0_5, %c0_6] : memref<1024x128xbf16, #tpu.memory_space<vmem>>, vector<1024x128xbf16>
    %cst = arith.constant dense<0.000000e+00> : vector<16x128xf32>
    %8 = tpu.matmul %6, %7, %cst {dimension_numbers = #tpu.dot_dimension_numbers<[1], [0], [0], [1], [0, 0, 1, 1], [], []>} : vector<16x1024xbf16>, vector<1024x128xbf16>, vector<16x128xf32> -> vector<16x128xf32>
    %9 = arith.addf %5, %8 : vector<16x128xf32>
    %c0_7 = arith.constant 0 : index
    %c0_8 = arith.constant 0 : index
    %10 = vector.load %arg7[%c0_7, %c0_8] : memref<16x128xf32, #tpu.memory_space<vmem>>, vector<16x128xf32>
    tpu.vector_store %arg7[%c0_7, %c0_8], %9 {strides = array<i32>} : memref<16x128xf32, #tpu.memory_space<vmem>>, vector<16x128xf32>,
    %11 = arith.extui %0 : i1 to i32
    %c0_i32_9 = arith.constant 0 : i32
    %12 = arith.cmpi ne, %11, %c0_i32_9 : i32
    scf.if %12 {
      %c0_10 = arith.constant 0 : index
      %c0_11 = arith.constant 0 : index
      %13 = vector.load %arg7[%c0_10, %c0_11] : memref<16x128xf32, #tpu.memory_space<vmem>>, vector<16x128xf32>
      %c0_12 = arith.constant 0 : index
      %c0_13 = arith.constant 0 : index
      %14 = vector.load %arg5[%c0_12, %c0_13] : memref<1x128xf32, #tpu.memory_space<vmem>>, vector<1x128xf32>
      %15 = vector.broadcast %14 : vector<1x128xf32> to vector<16x128xf32>
      %16 = arith.addf %13, %15 : vector<16x128xf32>
      %17 = tpu.iota {dimensions = array<i32: 0>} : vector<16x1xi32>
      %18 = vector.broadcast %1 : i32 to vector<16x1xi32>
      %19 = arith.addi %18, %17 : vector<16x1xi32>
      %c2_i32 = arith.constant 2 : i32
      %20 = vector.broadcast %c2_i32 : i32 to vector<16x1xi32>
      %21 = arith.cmpi slt, %19, %20 : vector<16x1xi32>
      %cst_14 = arith.constant 0.000000e+00 : f32
      %22 = vector.shape_cast %21 : vector<16x1xi1> to vector<16x1xi1>
      %23 = vector.broadcast %22 : vector<16x1xi1> to vector<16x128xi1>
      %24 = vector.broadcast %cst_14 : f32 to vector<16x128xf32>
      %25 = arith.select %23, %16, %24 : vector<16x128xi1>, vector<16x128xf32>
      %26 = arith.truncf %25 : vector<16x128xf32> to vector<16x128xbf16>
      %c0_15 = arith.constant 0 : index
      %c0_16 = arith.constant 0 : index
      %27 = vector.load %arg6[%c0_15, %c0_16] : memref<16x128xbf16, #tpu.memory_space<vmem>>, vector<16x128xbf16>
      tpu.vector_store %arg6[%c0_15, %c0_16], %26 {strides = array<i32>} : memref<16x128xbf16, #tpu.memory_space<vmem>>, vector<16x128xbf16>,
    } else {
    }
    return
  }
  func.func @transform_0(%arg0: i32, %arg1: i32, %arg2: i32) -> (i32, i32) {
    %c0_i32 = arith.constant 0 : i32
    return %arg0, %arg2 : i32, i32
  }
  func.func @transform_1(%arg0: i32, %arg1: i32, %arg2: i32) -> (i32, i32) {
    %c0_i32 = arith.constant 0 : i32
    return %arg2, %arg1 : i32, i32
  }
  func.func @transform_2(%arg0: i32, %arg1: i32, %arg2: i32) -> (i32, i32) {
    %c0_i32 = arith.constant 0 : i32
    %c0_i32_0 = arith.constant 0 : i32
    return %c0_i32, %arg1 : i32, i32
  }
  func.func @transform_3(%arg0: i32, %arg1: i32, %arg2: i32) -> (i32, i32) {
    %c0_i32 = arith.constant 0 : i32
    return %arg0, %arg1 : i32, i32
  }
}

module attributes {stable_mosaic.version = 11 : i64} {
  func.func @_matmul_kernel(%arg0: i32, %arg1: i32, %arg2: i32, %arg3: memref<16x128xbf16, #tpu.memory_space<vmem>>, %arg4: memref<128x512xbf16, #tpu.memory_space<vmem>>, %arg5: memref<1x512xf32, #tpu.memory_space<vmem>>, %arg6: memref<16x512xbf16, #tpu.memory_space<vmem>>, %arg7: memref<16x512xf32, #tpu.memory_space<vmem>>) attributes {dimension_semantics = [#tpu.dimension_semantics<parallel>, #tpu.dimension_semantics<parallel>, #tpu.dimension_semantics<arbitrary>], iteration_bounds = array<i64: 1, 2, 1>, scalar_prefetch = 0 : i64, scratch_operands = 1 : i64, tpu.core_type = #tpu.core_type<tc>, window_params = [{transform_indices = @transform_0, window_bounds = array<i64: 16, 128>}, {transform_indices = @transform_1, window_bounds = array<i64: 128, 512>}, {transform_indices = @transform_2, window_bounds = array<i64: 1, 512>}, {transform_indices = @transform_3, window_bounds = array<i64: 16, 512>}]} {
    %c0_i32 = arith.constant 0 : i32
    %0 = arith.cmpi eq, %arg2, %c0_i32 : i32
    %c16_i32 = arith.constant 16 : i32
    %1 = arith.muli %arg0, %c16_i32 : i32
    %c0_i32_0 = arith.constant 0 : i32
    %2 = arith.cmpi eq, %arg2, %c0_i32_0 : i32
    %3 = arith.extui %2 : i1 to i32
    %c0_i32_1 = arith.constant 0 : i32
    %4 = arith.cmpi ne, %3, %c0_i32_1 : i32
    scf.if %4 {
      %cst_10 = arith.constant 0.000000e+00 : f32
      %13 = vector.broadcast %cst_10 : f32 to vector<16x512xf32>
      %c0_11 = arith.constant 0 : index
      %c0_12 = arith.constant 0 : index
      %14 = vector.load %arg7[%c0_11, %c0_12] : memref<16x512xf32, #tpu.memory_space<vmem>>, vector<16x512xf32>
      tpu.vector_store %arg7[%c0_11, %c0_12], %13 {strides = array<i32>} : memref<16x512xf32, #tpu.memory_space<vmem>>, vector<16x512xf32>,
    } else {
    }
    %c0 = arith.constant 0 : index
    %c0_2 = arith.constant 0 : index
    %5 = vector.load %arg7[%c0, %c0_2] : memref<16x512xf32, #tpu.memory_space<vmem>>, vector<16x512xf32>
    %c0_3 = arith.constant 0 : index
    %c0_4 = arith.constant 0 : index
    %6 = vector.load %arg3[%c0_3, %c0_4] : memref<16x128xbf16, #tpu.memory_space<vmem>>, vector<16x128xbf16>
    %c0_5 = arith.constant 0 : index
    %c0_6 = arith.constant 0 : index
    %7 = vector.load %arg4[%c0_5, %c0_6] : memref<128x512xbf16, #tpu.memory_space<vmem>>, vector<128x512xbf16>
    %cst = arith.constant dense<0.000000e+00> : vector<16x512xf32>
    %8 = tpu.matmul %6, %7, %cst {dimension_numbers = #tpu.dot_dimension_numbers<[1], [0], [0], [1], [0, 0, 1, 1], [], []>} : vector<16x128xbf16>, vector<128x512xbf16>, vector<16x512xf32> -> vector<16x512xf32>
    %9 = arith.addf %5, %8 : vector<16x512xf32>
    %c0_7 = arith.constant 0 : index
    %c0_8 = arith.constant 0 : index
    %10 = vector.load %arg7[%c0_7, %c0_8] : memref<16x512xf32, #tpu.memory_space<vmem>>, vector<16x512xf32>
    tpu.vector_store %arg7[%c0_7, %c0_8], %9 {strides = array<i32>} : memref<16x512xf32, #tpu.memory_space<vmem>>, vector<16x512xf32>,
    %11 = arith.extui %0 : i1 to i32
    %c0_i32_9 = arith.constant 0 : i32
    %12 = arith.cmpi ne, %11, %c0_i32_9 : i32
    scf.if %12 {
      %c0_10 = arith.constant 0 : index
      %c0_11 = arith.constant 0 : index
      %13 = vector.load %arg7[%c0_10, %c0_11] : memref<16x512xf32, #tpu.memory_space<vmem>>, vector<16x512xf32>
      %c0_12 = arith.constant 0 : index
      %c0_13 = arith.constant 0 : index
      %14 = vector.load %arg5[%c0_12, %c0_13] : memref<1x512xf32, #tpu.memory_space<vmem>>, vector<1x512xf32>
      %15 = vector.broadcast %14 : vector<1x512xf32> to vector<16x512xf32>
      %16 = arith.addf %13, %15 : vector<16x512xf32>
      %17 = tpu.iota {dimensions = array<i32: 0>} : vector<16x1xi32>
      %18 = vector.broadcast %1 : i32 to vector<16x1xi32>
      %19 = arith.addi %18, %17 : vector<16x1xi32>
      %c2_i32 = arith.constant 2 : i32
      %20 = vector.broadcast %c2_i32 : i32 to vector<16x1xi32>
      %21 = arith.cmpi slt, %19, %20 : vector<16x1xi32>
      %cst_14 = arith.constant 0.000000e+00 : f32
      %22 = vector.shape_cast %21 : vector<16x1xi1> to vector<16x1xi1>
      %23 = vector.broadcast %22 : vector<16x1xi1> to vector<16x512xi1>
      %24 = vector.broadcast %cst_14 : f32 to vector<16x512xf32>
      %25 = arith.select %23, %16, %24 : vector<16x512xi1>, vector<16x512xf32>
      %26 = arith.truncf %25 : vector<16x512xf32> to vector<16x512xbf16>
      %c0_15 = arith.constant 0 : index
      %c0_16 = arith.constant 0 : index
      %27 = vector.load %arg6[%c0_15, %c0_16] : memref<16x512xbf16, #tpu.memory_space<vmem>>, vector<16x512xbf16>
      tpu.vector_store %arg6[%c0_15, %c0_16], %26 {strides = array<i32>} : memref<16x512xbf16, #tpu.memory_space<vmem>>, vector<16x512xbf16>,
    } else {
    }
    return
  }
  func.func @transform_0(%arg0: i32, %arg1: i32, %arg2: i32) -> (i32, i32) {
    %c0_i32 = arith.constant 0 : i32
    return %arg0, %arg2 : i32, i32
  }
  func.func @transform_1(%arg0: i32, %arg1: i32, %arg2: i32) -> (i32, i32) {
    %c0_i32 = arith.constant 0 : i32
    return %arg2, %arg1 : i32, i32
  }
  func.func @transform_2(%arg0: i32, %arg1: i32, %arg2: i32) -> (i32, i32) {
    %c0_i32 = arith.constant 0 : i32
    %c0_i32_0 = arith.constant 0 : i32
    return %c0_i32, %arg1 : i32, i32
  }
  func.func @transform_3(%arg0: i32, %arg1: i32, %arg2: i32) -> (i32, i32) {
    %c0_i32 = arith.constant 0 : i32
    return %arg0, %arg1 : i32, i32
  }
}

module attributes {stable_mosaic.version = 11 : i64} {
  func.func @_bn_stats_kernel(%arg0: i32, %arg1: memref<4x128xbf16, #tpu.memory_space<vmem>>, %arg2: memref<1x128xf32, #tpu.memory_space<vmem>>, %arg3: memref<1x128xf32, #tpu.memory_space<vmem>>) attributes {dimension_semantics = [#tpu.dimension_semantics<arbitrary>], iteration_bounds = array<i64: 1>, scalar_prefetch = 0 : i64, scratch_operands = 0 : i64, tpu.core_type = #tpu.core_type<tc>, window_params = [{transform_indices = @transform_0, window_bounds = array<i64: 4, 128>}, {pipeline_mode = #tpu.pipeline_mode<synchronous>, transform_indices = @transform_1, window_bounds = array<i64: 1, 128>}, {pipeline_mode = #tpu.pipeline_mode<synchronous>, transform_indices = @transform_2, window_bounds = array<i64: 1, 128>}]} {
    %c0_i32 = arith.constant 0 : i32
    %0 = arith.cmpi eq, %arg0, %c0_i32 : i32
    %1 = arith.extui %0 : i1 to i32
    %c0_i32_0 = arith.constant 0 : i32
    %2 = arith.cmpi ne, %1, %c0_i32_0 : i32
    scf.if %2 {
      %cst_11 = arith.constant 0.000000e+00 : f32
      %16 = vector.broadcast %cst_11 : f32 to vector<1x128xf32>
      %c0_12 = arith.constant 0 : index
      %c0_13 = arith.constant 0 : index
      %17 = vector.load %arg2[%c0_12, %c0_13] : memref<1x128xf32, #tpu.memory_space<vmem>>, vector<1x128xf32>
      tpu.vector_store %arg2[%c0_12, %c0_13], %16 {strides = array<i32>} : memref<1x128xf32, #tpu.memory_space<vmem>>, vector<1x128xf32>,
      %cst_14 = arith.constant 0.000000e+00 : f32
      %18 = vector.broadcast %cst_14 : f32 to vector<1x128xf32>
      %c0_15 = arith.constant 0 : index
      %c0_16 = arith.constant 0 : index
      %19 = vector.load %arg3[%c0_15, %c0_16] : memref<1x128xf32, #tpu.memory_space<vmem>>, vector<1x128xf32>
      tpu.vector_store %arg3[%c0_15, %c0_16], %18 {strides = array<i32>} : memref<1x128xf32, #tpu.memory_space<vmem>>, vector<1x128xf32>,
    } else {
    }
    %c0 = arith.constant 0 : index
    %c0_1 = arith.constant 0 : index
    %3 = vector.load %arg1[%c0, %c0_1] : memref<4x128xbf16, #tpu.memory_space<vmem>>, vector<4x128xbf16>
    %4 = arith.extf %3 : vector<4x128xbf16> to vector<4x128xf32>
    %c0_2 = arith.constant 0 : index
    %c0_3 = arith.constant 0 : index
    %5 = vector.load %arg2[%c0_2, %c0_3] : memref<1x128xf32, #tpu.memory_space<vmem>>, vector<1x128xf32>
    %cst = arith.constant dense<0.000000e+00> : vector<128xf32>
    %6 = vector.multi_reduction <add>, %4, %cst [0] : vector<4x128xf32> to vector<128xf32>
    %7 = vector.shape_cast %6 : vector<128xf32> to vector<1x128xf32>
    %8 = arith.addf %5, %7 : vector<1x128xf32>
    %c0_4 = arith.constant 0 : index
    %c0_5 = arith.constant 0 : index
    %9 = vector.load %arg2[%c0_4, %c0_5] : memref<1x128xf32, #tpu.memory_space<vmem>>, vector<1x128xf32>
    tpu.vector_store %arg2[%c0_4, %c0_5], %8 {strides = array<i32>} : memref<1x128xf32, #tpu.memory_space<vmem>>, vector<1x128xf32>,
    %c0_6 = arith.constant 0 : index
    %c0_7 = arith.constant 0 : index
    %10 = vector.load %arg3[%c0_6, %c0_7] : memref<1x128xf32, #tpu.memory_space<vmem>>, vector<1x128xf32>
    %11 = arith.mulf %4, %4 : vector<4x128xf32>
    %cst_8 = arith.constant dense<0.000000e+00> : vector<128xf32>
    %12 = vector.multi_reduction <add>, %11, %cst_8 [0] : vector<4x128xf32> to vector<128xf32>
    %13 = vector.shape_cast %12 : vector<128xf32> to vector<1x128xf32>
    %14 = arith.addf %10, %13 : vector<1x128xf32>
    %c0_9 = arith.constant 0 : index
    %c0_10 = arith.constant 0 : index
    %15 = vector.load %arg3[%c0_9, %c0_10] : memref<1x128xf32, #tpu.memory_space<vmem>>, vector<1x128xf32>
    tpu.vector_store %arg3[%c0_9, %c0_10], %14 {strides = array<i32>} : memref<1x128xf32, #tpu.memory_space<vmem>>, vector<1x128xf32>,
    return
  }
  func.func @transform_0(%arg0: i32) -> (i32, i32) {
    %c0_i32 = arith.constant 0 : i32
    %c0_i32_0 = arith.constant 0 : i32
    return %arg0, %c0_i32 : i32, i32
  }
  func.func @transform_1(%arg0: i32) -> (i32, i32) {
    %c0_i32 = arith.constant 0 : i32
    %c0_i32_0 = arith.constant 0 : i32
    %c0_i32_1 = arith.constant 0 : i32
    return %c0_i32, %c0_i32_0 : i32, i32
  }
  func.func @transform_2(%arg0: i32) -> (i32, i32) {
    %c0_i32 = arith.constant 0 : i32
    %c0_i32_0 = arith.constant 0 : i32
    %c0_i32_1 = arith.constant 0 : i32
    return %c0_i32, %c0_i32_0 : i32, i32
  }
}

module attributes {stable_mosaic.version = 11 : i64} {
  func.func @_bn_apply_kernel(%arg0: i32, %arg1: memref<4x128xbf16, #tpu.memory_space<vmem>>, %arg2: memref<1x128xf32, #tpu.memory_space<vmem>>, %arg3: memref<1x128xf32, #tpu.memory_space<vmem>>, %arg4: memref<4x128xbf16, #tpu.memory_space<vmem>>) attributes {dimension_semantics = [#tpu.dimension_semantics<parallel>], iteration_bounds = array<i64: 1>, scalar_prefetch = 0 : i64, scratch_operands = 0 : i64, tpu.core_type = #tpu.core_type<tc>, window_params = [{transform_indices = @transform_0, window_bounds = array<i64: 4, 128>}, {pipeline_mode = #tpu.pipeline_mode<synchronous>, transform_indices = @transform_1, window_bounds = array<i64: 1, 128>}, {pipeline_mode = #tpu.pipeline_mode<synchronous>, transform_indices = @transform_2, window_bounds = array<i64: 1, 128>}, {transform_indices = @transform_3, window_bounds = array<i64: 4, 128>}]} {
    %c0 = arith.constant 0 : index
    %c0_0 = arith.constant 0 : index
    %0 = vector.load %arg1[%c0, %c0_0] : memref<4x128xbf16, #tpu.memory_space<vmem>>, vector<4x128xbf16>
    %1 = arith.extf %0 : vector<4x128xbf16> to vector<4x128xf32>
    %c0_1 = arith.constant 0 : index
    %c0_2 = arith.constant 0 : index
    %2 = vector.load %arg2[%c0_1, %c0_2] : memref<1x128xf32, #tpu.memory_space<vmem>>, vector<1x128xf32>
    %3 = vector.broadcast %2 : vector<1x128xf32> to vector<4x128xf32>
    %4 = arith.mulf %1, %3 : vector<4x128xf32>
    %c0_3 = arith.constant 0 : index
    %c0_4 = arith.constant 0 : index
    %5 = vector.load %arg3[%c0_3, %c0_4] : memref<1x128xf32, #tpu.memory_space<vmem>>, vector<1x128xf32>
    %6 = vector.broadcast %5 : vector<1x128xf32> to vector<4x128xf32>
    %7 = arith.addf %4, %6 : vector<4x128xf32>
    %8 = arith.truncf %7 : vector<4x128xf32> to vector<4x128xbf16>
    %c0_5 = arith.constant 0 : index
    %c0_6 = arith.constant 0 : index
    %9 = vector.load %arg4[%c0_5, %c0_6] : memref<4x128xbf16, #tpu.memory_space<vmem>>, vector<4x128xbf16>
    tpu.vector_store %arg4[%c0_5, %c0_6], %8 {strides = array<i32>} : memref<4x128xbf16, #tpu.memory_space<vmem>>, vector<4x128xbf16>,
    return
  }
  func.func @transform_0(%arg0: i32) -> (i32, i32) {
    %c0_i32 = arith.constant 0 : i32
    %c0_i32_0 = arith.constant 0 : i32
    return %arg0, %c0_i32 : i32, i32
  }
  func.func @transform_1(%arg0: i32) -> (i32, i32) {
    %c0_i32 = arith.constant 0 : i32
    %c0_i32_0 = arith.constant 0 : i32
    %c0_i32_1 = arith.constant 0 : i32
    return %c0_i32, %c0_i32_0 : i32, i32
  }
  func.func @transform_2(%arg0: i32) -> (i32, i32) {
    %c0_i32 = arith.constant 0 : i32
    %c0_i32_0 = arith.constant 0 : i32
    %c0_i32_1 = arith.constant 0 : i32
    return %c0_i32, %c0_i32_0 : i32, i32
  }
  func.func @transform_3(%arg0: i32) -> (i32, i32) {
    %c0_i32 = arith.constant 0 : i32
    %c0_i32_0 = arith.constant 0 : i32
    return %arg0, %c0_i32 : i32, i32
  }
}

module attributes {stable_mosaic.version = 11 : i64} {
  func.func @_matmul_kernel(%arg0: i32, %arg1: i32, %arg2: i32, %arg3: memref<16x128xbf16, #tpu.memory_space<vmem>>, %arg4: memref<128x512xbf16, #tpu.memory_space<vmem>>, %arg5: memref<1x512xf32, #tpu.memory_space<vmem>>, %arg6: memref<16x512xbf16, #tpu.memory_space<vmem>>, %arg7: memref<16x512xf32, #tpu.memory_space<vmem>>) attributes {dimension_semantics = [#tpu.dimension_semantics<parallel>, #tpu.dimension_semantics<parallel>, #tpu.dimension_semantics<arbitrary>], iteration_bounds = array<i64: 1, 1, 1>, scalar_prefetch = 0 : i64, scratch_operands = 1 : i64, tpu.core_type = #tpu.core_type<tc>, window_params = [{transform_indices = @transform_0, window_bounds = array<i64: 16, 128>}, {transform_indices = @transform_1, window_bounds = array<i64: 128, 512>}, {transform_indices = @transform_2, window_bounds = array<i64: 1, 512>}, {transform_indices = @transform_3, window_bounds = array<i64: 16, 512>}]} {
    %c0_i32 = arith.constant 0 : i32
    %0 = arith.cmpi eq, %arg2, %c0_i32 : i32
    %c16_i32 = arith.constant 16 : i32
    %1 = arith.muli %arg0, %c16_i32 : i32
    %c0_i32_0 = arith.constant 0 : i32
    %2 = arith.cmpi eq, %arg2, %c0_i32_0 : i32
    %3 = arith.extui %2 : i1 to i32
    %c0_i32_1 = arith.constant 0 : i32
    %4 = arith.cmpi ne, %3, %c0_i32_1 : i32
    scf.if %4 {
      %cst_10 = arith.constant 0.000000e+00 : f32
      %13 = vector.broadcast %cst_10 : f32 to vector<16x512xf32>
      %c0_11 = arith.constant 0 : index
      %c0_12 = arith.constant 0 : index
      %14 = vector.load %arg7[%c0_11, %c0_12] : memref<16x512xf32, #tpu.memory_space<vmem>>, vector<16x512xf32>
      tpu.vector_store %arg7[%c0_11, %c0_12], %13 {strides = array<i32>} : memref<16x512xf32, #tpu.memory_space<vmem>>, vector<16x512xf32>,
    } else {
    }
    %c0 = arith.constant 0 : index
    %c0_2 = arith.constant 0 : index
    %5 = vector.load %arg7[%c0, %c0_2] : memref<16x512xf32, #tpu.memory_space<vmem>>, vector<16x512xf32>
    %c0_3 = arith.constant 0 : index
    %c0_4 = arith.constant 0 : index
    %6 = vector.load %arg3[%c0_3, %c0_4] : memref<16x128xbf16, #tpu.memory_space<vmem>>, vector<16x128xbf16>
    %c0_5 = arith.constant 0 : index
    %c0_6 = arith.constant 0 : index
    %7 = vector.load %arg4[%c0_5, %c0_6] : memref<128x512xbf16, #tpu.memory_space<vmem>>, vector<128x512xbf16>
    %cst = arith.constant dense<0.000000e+00> : vector<16x512xf32>
    %8 = tpu.matmul %6, %7, %cst {dimension_numbers = #tpu.dot_dimension_numbers<[1], [0], [0], [1], [0, 0, 1, 1], [], []>} : vector<16x128xbf16>, vector<128x512xbf16>, vector<16x512xf32> -> vector<16x512xf32>
    %9 = arith.addf %5, %8 : vector<16x512xf32>
    %c0_7 = arith.constant 0 : index
    %c0_8 = arith.constant 0 : index
    %10 = vector.load %arg7[%c0_7, %c0_8] : memref<16x512xf32, #tpu.memory_space<vmem>>, vector<16x512xf32>
    tpu.vector_store %arg7[%c0_7, %c0_8], %9 {strides = array<i32>} : memref<16x512xf32, #tpu.memory_space<vmem>>, vector<16x512xf32>,
    %11 = arith.extui %0 : i1 to i32
    %c0_i32_9 = arith.constant 0 : i32
    %12 = arith.cmpi ne, %11, %c0_i32_9 : i32
    scf.if %12 {
      %c0_10 = arith.constant 0 : index
      %c0_11 = arith.constant 0 : index
      %13 = vector.load %arg7[%c0_10, %c0_11] : memref<16x512xf32, #tpu.memory_space<vmem>>, vector<16x512xf32>
      %c0_12 = arith.constant 0 : index
      %c0_13 = arith.constant 0 : index
      %14 = vector.load %arg5[%c0_12, %c0_13] : memref<1x512xf32, #tpu.memory_space<vmem>>, vector<1x512xf32>
      %15 = vector.broadcast %14 : vector<1x512xf32> to vector<16x512xf32>
      %16 = arith.addf %13, %15 : vector<16x512xf32>
      %17 = tpu.iota {dimensions = array<i32: 0>} : vector<16x1xi32>
      %18 = vector.broadcast %1 : i32 to vector<16x1xi32>
      %19 = arith.addi %18, %17 : vector<16x1xi32>
      %c8_i32 = arith.constant 8 : i32
      %20 = vector.broadcast %c8_i32 : i32 to vector<16x1xi32>
      %21 = arith.cmpi slt, %19, %20 : vector<16x1xi32>
      %cst_14 = arith.constant 0.000000e+00 : f32
      %22 = vector.shape_cast %21 : vector<16x1xi1> to vector<16x1xi1>
      %23 = vector.broadcast %22 : vector<16x1xi1> to vector<16x512xi1>
      %24 = vector.broadcast %cst_14 : f32 to vector<16x512xf32>
      %25 = arith.select %23, %16, %24 : vector<16x512xi1>, vector<16x512xf32>
      %26 = arith.truncf %25 : vector<16x512xf32> to vector<16x512xbf16>
      %c0_15 = arith.constant 0 : index
      %c0_16 = arith.constant 0 : index
      %27 = vector.load %arg6[%c0_15, %c0_16] : memref<16x512xbf16, #tpu.memory_space<vmem>>, vector<16x512xbf16>
      tpu.vector_store %arg6[%c0_15, %c0_16], %26 {strides = array<i32>} : memref<16x512xbf16, #tpu.memory_space<vmem>>, vector<16x512xbf16>,
    } else {
    }
    return
  }
  func.func @transform_0(%arg0: i32, %arg1: i32, %arg2: i32) -> (i32, i32) {
    %c0_i32 = arith.constant 0 : i32
    return %arg0, %arg2 : i32, i32
  }
  func.func @transform_1(%arg0: i32, %arg1: i32, %arg2: i32) -> (i32, i32) {
    %c0_i32 = arith.constant 0 : i32
    return %arg2, %arg1 : i32, i32
  }
  func.func @transform_2(%arg0: i32, %arg1: i32, %arg2: i32) -> (i32, i32) {
    %c0_i32 = arith.constant 0 : i32
    %c0_i32_0 = arith.constant 0 : i32
    return %c0_i32, %arg1 : i32, i32
  }
  func.func @transform_3(%arg0: i32, %arg1: i32, %arg2: i32) -> (i32, i32) {
    %c0_i32 = arith.constant 0 : i32
    return %arg0, %arg1 : i32, i32
  }
}

module attributes {stable_mosaic.version = 11 : i64} {
  func.func @_bn_apply_kernel(%arg0: i32, %arg1: memref<8x128xbf16, #tpu.memory_space<vmem>>, %arg2: memref<1x128xf32, #tpu.memory_space<vmem>>, %arg3: memref<1x128xf32, #tpu.memory_space<vmem>>, %arg4: memref<8x128xbf16, #tpu.memory_space<vmem>>) attributes {dimension_semantics = [#tpu.dimension_semantics<parallel>], iteration_bounds = array<i64: 1>, scalar_prefetch = 0 : i64, scratch_operands = 0 : i64, tpu.core_type = #tpu.core_type<tc>, window_params = [{transform_indices = @transform_0, window_bounds = array<i64: 8, 128>}, {pipeline_mode = #tpu.pipeline_mode<synchronous>, transform_indices = @transform_1, window_bounds = array<i64: 1, 128>}, {pipeline_mode = #tpu.pipeline_mode<synchronous>, transform_indices = @transform_2, window_bounds = array<i64: 1, 128>}, {transform_indices = @transform_3, window_bounds = array<i64: 8, 128>}]} {
    %c0 = arith.constant 0 : index
    %c0_0 = arith.constant 0 : index
    %0 = vector.load %arg1[%c0, %c0_0] : memref<8x128xbf16, #tpu.memory_space<vmem>>, vector<8x128xbf16>
    %1 = arith.extf %0 : vector<8x128xbf16> to vector<8x128xf32>
    %c0_1 = arith.constant 0 : index
    %c0_2 = arith.constant 0 : index
    %2 = vector.load %arg2[%c0_1, %c0_2] : memref<1x128xf32, #tpu.memory_space<vmem>>, vector<1x128xf32>
    %3 = vector.broadcast %2 : vector<1x128xf32> to vector<8x128xf32>
    %4 = arith.mulf %1, %3 : vector<8x128xf32>
    %c0_3 = arith.constant 0 : index
    %c0_4 = arith.constant 0 : index
    %5 = vector.load %arg3[%c0_3, %c0_4] : memref<1x128xf32, #tpu.memory_space<vmem>>, vector<1x128xf32>
    %6 = vector.broadcast %5 : vector<1x128xf32> to vector<8x128xf32>
    %7 = arith.addf %4, %6 : vector<8x128xf32>
    %8 = arith.truncf %7 : vector<8x128xf32> to vector<8x128xbf16>
    %c0_5 = arith.constant 0 : index
    %c0_6 = arith.constant 0 : index
    %9 = vector.load %arg4[%c0_5, %c0_6] : memref<8x128xbf16, #tpu.memory_space<vmem>>, vector<8x128xbf16>
    tpu.vector_store %arg4[%c0_5, %c0_6], %8 {strides = array<i32>} : memref<8x128xbf16, #tpu.memory_space<vmem>>, vector<8x128xbf16>,
    return
  }
  func.func @transform_0(%arg0: i32) -> (i32, i32) {
    %c0_i32 = arith.constant 0 : i32
    %c0_i32_0 = arith.constant 0 : i32
    return %arg0, %c0_i32 : i32, i32
  }
  func.func @transform_1(%arg0: i32) -> (i32, i32) {
    %c0_i32 = arith.constant 0 : i32
    %c0_i32_0 = arith.constant 0 : i32
    %c0_i32_1 = arith.constant 0 : i32
    return %c0_i32, %c0_i32_0 : i32, i32
  }
  func.func @transform_2(%arg0: i32) -> (i32, i32) {
    %c0_i32 = arith.constant 0 : i32
    %c0_i32_0 = arith.constant 0 : i32
    %c0_i32_1 = arith.constant 0 : i32
    return %c0_i32, %c0_i32_0 : i32, i32
  }
  func.func @transform_3(%arg0: i32) -> (i32, i32) {
    %c0_i32 = arith.constant 0 : i32
    %c0_i32_0 = arith.constant 0 : i32
    return %arg0, %c0_i32 : i32, i32
  }
}

module attributes {stable_mosaic.version = 11 : i64} {
  func.func @_bn_stats_kernel(%arg0: i32, %arg1: memref<8x128xbf16, #tpu.memory_space<vmem>>, %arg2: memref<1x128xf32, #tpu.memory_space<vmem>>, %arg3: memref<1x128xf32, #tpu.memory_space<vmem>>) attributes {dimension_semantics = [#tpu.dimension_semantics<arbitrary>], iteration_bounds = array<i64: 1>, scalar_prefetch = 0 : i64, scratch_operands = 0 : i64, tpu.core_type = #tpu.core_type<tc>, window_params = [{transform_indices = @transform_0, window_bounds = array<i64: 8, 128>}, {pipeline_mode = #tpu.pipeline_mode<synchronous>, transform_indices = @transform_1, window_bounds = array<i64: 1, 128>}, {pipeline_mode = #tpu.pipeline_mode<synchronous>, transform_indices = @transform_2, window_bounds = array<i64: 1, 128>}]} {
    %c0_i32 = arith.constant 0 : i32
    %0 = arith.cmpi eq, %arg0, %c0_i32 : i32
    %1 = arith.extui %0 : i1 to i32
    %c0_i32_0 = arith.constant 0 : i32
    %2 = arith.cmpi ne, %1, %c0_i32_0 : i32
    scf.if %2 {
      %cst_11 = arith.constant 0.000000e+00 : f32
      %16 = vector.broadcast %cst_11 : f32 to vector<1x128xf32>
      %c0_12 = arith.constant 0 : index
      %c0_13 = arith.constant 0 : index
      %17 = vector.load %arg2[%c0_12, %c0_13] : memref<1x128xf32, #tpu.memory_space<vmem>>, vector<1x128xf32>
      tpu.vector_store %arg2[%c0_12, %c0_13], %16 {strides = array<i32>} : memref<1x128xf32, #tpu.memory_space<vmem>>, vector<1x128xf32>,
      %cst_14 = arith.constant 0.000000e+00 : f32
      %18 = vector.broadcast %cst_14 : f32 to vector<1x128xf32>
      %c0_15 = arith.constant 0 : index
      %c0_16 = arith.constant 0 : index
      %19 = vector.load %arg3[%c0_15, %c0_16] : memref<1x128xf32, #tpu.memory_space<vmem>>, vector<1x128xf32>
      tpu.vector_store %arg3[%c0_15, %c0_16], %18 {strides = array<i32>} : memref<1x128xf32, #tpu.memory_space<vmem>>, vector<1x128xf32>,
    } else {
    }
    %c0 = arith.constant 0 : index
    %c0_1 = arith.constant 0 : index
    %3 = vector.load %arg1[%c0, %c0_1] : memref<8x128xbf16, #tpu.memory_space<vmem>>, vector<8x128xbf16>
    %4 = arith.extf %3 : vector<8x128xbf16> to vector<8x128xf32>
    %c0_2 = arith.constant 0 : index
    %c0_3 = arith.constant 0 : index
    %5 = vector.load %arg2[%c0_2, %c0_3] : memref<1x128xf32, #tpu.memory_space<vmem>>, vector<1x128xf32>
    %cst = arith.constant dense<0.000000e+00> : vector<128xf32>
    %6 = vector.multi_reduction <add>, %4, %cst [0] : vector<8x128xf32> to vector<128xf32>
    %7 = vector.shape_cast %6 : vector<128xf32> to vector<1x128xf32>
    %8 = arith.addf %5, %7 : vector<1x128xf32>
    %c0_4 = arith.constant 0 : index
    %c0_5 = arith.constant 0 : index
    %9 = vector.load %arg2[%c0_4, %c0_5] : memref<1x128xf32, #tpu.memory_space<vmem>>, vector<1x128xf32>
    tpu.vector_store %arg2[%c0_4, %c0_5], %8 {strides = array<i32>} : memref<1x128xf32, #tpu.memory_space<vmem>>, vector<1x128xf32>,
    %c0_6 = arith.constant 0 : index
    %c0_7 = arith.constant 0 : index
    %10 = vector.load %arg3[%c0_6, %c0_7] : memref<1x128xf32, #tpu.memory_space<vmem>>, vector<1x128xf32>
    %11 = arith.mulf %4, %4 : vector<8x128xf32>
    %cst_8 = arith.constant dense<0.000000e+00> : vector<128xf32>
    %12 = vector.multi_reduction <add>, %11, %cst_8 [0] : vector<8x128xf32> to vector<128xf32>
    %13 = vector.shape_cast %12 : vector<128xf32> to vector<1x128xf32>
    %14 = arith.addf %10, %13 : vector<1x128xf32>
    %c0_9 = arith.constant 0 : index
    %c0_10 = arith.constant 0 : index
    %15 = vector.load %arg3[%c0_9, %c0_10] : memref<1x128xf32, #tpu.memory_space<vmem>>, vector<1x128xf32>
    tpu.vector_store %arg3[%c0_9, %c0_10], %14 {strides = array<i32>} : memref<1x128xf32, #tpu.memory_space<vmem>>, vector<1x128xf32>,
    return
  }
  func.func @transform_0(%arg0: i32) -> (i32, i32) {
    %c0_i32 = arith.constant 0 : i32
    %c0_i32_0 = arith.constant 0 : i32
    return %arg0, %c0_i32 : i32, i32
  }
  func.func @transform_1(%arg0: i32) -> (i32, i32) {
    %c0_i32 = arith.constant 0 : i32
    %c0_i32_0 = arith.constant 0 : i32
    %c0_i32_1 = arith.constant 0 : i32
    return %c0_i32, %c0_i32_0 : i32, i32
  }
  func.func @transform_2(%arg0: i32) -> (i32, i32) {
    %c0_i32 = arith.constant 0 : i32
    %c0_i32_0 = arith.constant 0 : i32
    %c0_i32_1 = arith.constant 0 : i32
    return %c0_i32, %c0_i32_0 : i32, i32
  }
}

module attributes {stable_mosaic.version = 11 : i64} {
  func.func @_matmul_kernel(%arg0: i32, %arg1: i32, %arg2: i32, %arg3: memref<32x128xbf16, #tpu.memory_space<vmem>>, %arg4: memref<128x256xbf16, #tpu.memory_space<vmem>>, %arg5: memref<1x256xf32, #tpu.memory_space<vmem>>, %arg6: memref<32x256xbf16, #tpu.memory_space<vmem>>, %arg7: memref<32x256xf32, #tpu.memory_space<vmem>>) attributes {dimension_semantics = [#tpu.dimension_semantics<parallel>, #tpu.dimension_semantics<parallel>, #tpu.dimension_semantics<arbitrary>], iteration_bounds = array<i64: 1, 1, 1>, scalar_prefetch = 0 : i64, scratch_operands = 1 : i64, tpu.core_type = #tpu.core_type<tc>, window_params = [{transform_indices = @transform_0, window_bounds = array<i64: 32, 128>}, {transform_indices = @transform_1, window_bounds = array<i64: 128, 256>}, {transform_indices = @transform_2, window_bounds = array<i64: 1, 256>}, {transform_indices = @transform_3, window_bounds = array<i64: 32, 256>}]} {
    %c0_i32 = arith.constant 0 : i32
    %0 = arith.cmpi eq, %arg2, %c0_i32 : i32
    %c0_i32_0 = arith.constant 0 : i32
    %1 = arith.cmpi eq, %arg2, %c0_i32_0 : i32
    %2 = arith.extui %1 : i1 to i32
    %c0_i32_1 = arith.constant 0 : i32
    %3 = arith.cmpi ne, %2, %c0_i32_1 : i32
    scf.if %3 {
      %cst_10 = arith.constant 0.000000e+00 : f32
      %12 = vector.broadcast %cst_10 : f32 to vector<32x256xf32>
      %c0_11 = arith.constant 0 : index
      %c0_12 = arith.constant 0 : index
      %13 = vector.load %arg7[%c0_11, %c0_12] : memref<32x256xf32, #tpu.memory_space<vmem>>, vector<32x256xf32>
      tpu.vector_store %arg7[%c0_11, %c0_12], %12 {strides = array<i32>} : memref<32x256xf32, #tpu.memory_space<vmem>>, vector<32x256xf32>,
    } else {
    }
    %c0 = arith.constant 0 : index
    %c0_2 = arith.constant 0 : index
    %4 = vector.load %arg7[%c0, %c0_2] : memref<32x256xf32, #tpu.memory_space<vmem>>, vector<32x256xf32>
    %c0_3 = arith.constant 0 : index
    %c0_4 = arith.constant 0 : index
    %5 = vector.load %arg3[%c0_3, %c0_4] : memref<32x128xbf16, #tpu.memory_space<vmem>>, vector<32x128xbf16>
    %c0_5 = arith.constant 0 : index
    %c0_6 = arith.constant 0 : index
    %6 = vector.load %arg4[%c0_5, %c0_6] : memref<128x256xbf16, #tpu.memory_space<vmem>>, vector<128x256xbf16>
    %cst = arith.constant dense<0.000000e+00> : vector<32x256xf32>
    %7 = tpu.matmul %5, %6, %cst {dimension_numbers = #tpu.dot_dimension_numbers<[1], [0], [0], [1], [0, 0, 1, 1], [], []>} : vector<32x128xbf16>, vector<128x256xbf16>, vector<32x256xf32> -> vector<32x256xf32>
    %8 = arith.addf %4, %7 : vector<32x256xf32>
    %c0_7 = arith.constant 0 : index
    %c0_8 = arith.constant 0 : index
    %9 = vector.load %arg7[%c0_7, %c0_8] : memref<32x256xf32, #tpu.memory_space<vmem>>, vector<32x256xf32>
    tpu.vector_store %arg7[%c0_7, %c0_8], %8 {strides = array<i32>} : memref<32x256xf32, #tpu.memory_space<vmem>>, vector<32x256xf32>,
    %10 = arith.extui %0 : i1 to i32
    %c0_i32_9 = arith.constant 0 : i32
    %11 = arith.cmpi ne, %10, %c0_i32_9 : i32
    scf.if %11 {
      %c0_10 = arith.constant 0 : index
      %c0_11 = arith.constant 0 : index
      %12 = vector.load %arg7[%c0_10, %c0_11] : memref<32x256xf32, #tpu.memory_space<vmem>>, vector<32x256xf32>
      %c0_12 = arith.constant 0 : index
      %c0_13 = arith.constant 0 : index
      %13 = vector.load %arg5[%c0_12, %c0_13] : memref<1x256xf32, #tpu.memory_space<vmem>>, vector<1x256xf32>
      %14 = vector.broadcast %13 : vector<1x256xf32> to vector<32x256xf32>
      %15 = arith.addf %12, %14 : vector<32x256xf32>
      %16 = arith.truncf %15 : vector<32x256xf32> to vector<32x256xbf16>
      %c0_14 = arith.constant 0 : index
      %c0_15 = arith.constant 0 : index
      %17 = vector.load %arg6[%c0_14, %c0_15] : memref<32x256xbf16, #tpu.memory_space<vmem>>, vector<32x256xbf16>
      tpu.vector_store %arg6[%c0_14, %c0_15], %16 {strides = array<i32>} : memref<32x256xbf16, #tpu.memory_space<vmem>>, vector<32x256xbf16>,
    } else {
    }
    return
  }
  func.func @transform_0(%arg0: i32, %arg1: i32, %arg2: i32) -> (i32, i32) {
    %c0_i32 = arith.constant 0 : i32
    return %arg0, %arg2 : i32, i32
  }
  func.func @transform_1(%arg0: i32, %arg1: i32, %arg2: i32) -> (i32, i32) {
    %c0_i32 = arith.constant 0 : i32
    return %arg2, %arg1 : i32, i32
  }
  func.func @transform_2(%arg0: i32, %arg1: i32, %arg2: i32) -> (i32, i32) {
    %c0_i32 = arith.constant 0 : i32
    %c0_i32_0 = arith.constant 0 : i32
    return %c0_i32, %arg1 : i32, i32
  }
  func.func @transform_3(%arg0: i32, %arg1: i32, %arg2: i32) -> (i32, i32) {
    %c0_i32 = arith.constant 0 : i32
    return %arg0, %arg1 : i32, i32
  }
}

module attributes {stable_mosaic.version = 11 : i64} {
  func.func @_bn_stats_kernel(%arg0: i32, %arg1: memref<16x128xbf16, #tpu.memory_space<vmem>>, %arg2: memref<1x128xf32, #tpu.memory_space<vmem>>, %arg3: memref<1x128xf32, #tpu.memory_space<vmem>>) attributes {dimension_semantics = [#tpu.dimension_semantics<arbitrary>], iteration_bounds = array<i64: 1>, scalar_prefetch = 0 : i64, scratch_operands = 0 : i64, tpu.core_type = #tpu.core_type<tc>, window_params = [{transform_indices = @transform_0, window_bounds = array<i64: 16, 128>}, {pipeline_mode = #tpu.pipeline_mode<synchronous>, transform_indices = @transform_1, window_bounds = array<i64: 1, 128>}, {pipeline_mode = #tpu.pipeline_mode<synchronous>, transform_indices = @transform_2, window_bounds = array<i64: 1, 128>}]} {
    %c0_i32 = arith.constant 0 : i32
    %0 = arith.cmpi eq, %arg0, %c0_i32 : i32
    %1 = arith.extui %0 : i1 to i32
    %c0_i32_0 = arith.constant 0 : i32
    %2 = arith.cmpi ne, %1, %c0_i32_0 : i32
    scf.if %2 {
      %cst_11 = arith.constant 0.000000e+00 : f32
      %16 = vector.broadcast %cst_11 : f32 to vector<1x128xf32>
      %c0_12 = arith.constant 0 : index
      %c0_13 = arith.constant 0 : index
      %17 = vector.load %arg2[%c0_12, %c0_13] : memref<1x128xf32, #tpu.memory_space<vmem>>, vector<1x128xf32>
      tpu.vector_store %arg2[%c0_12, %c0_13], %16 {strides = array<i32>} : memref<1x128xf32, #tpu.memory_space<vmem>>, vector<1x128xf32>,
      %cst_14 = arith.constant 0.000000e+00 : f32
      %18 = vector.broadcast %cst_14 : f32 to vector<1x128xf32>
      %c0_15 = arith.constant 0 : index
      %c0_16 = arith.constant 0 : index
      %19 = vector.load %arg3[%c0_15, %c0_16] : memref<1x128xf32, #tpu.memory_space<vmem>>, vector<1x128xf32>
      tpu.vector_store %arg3[%c0_15, %c0_16], %18 {strides = array<i32>} : memref<1x128xf32, #tpu.memory_space<vmem>>, vector<1x128xf32>,
    } else {
    }
    %c0 = arith.constant 0 : index
    %c0_1 = arith.constant 0 : index
    %3 = vector.load %arg1[%c0, %c0_1] : memref<16x128xbf16, #tpu.memory_space<vmem>>, vector<16x128xbf16>
    %4 = arith.extf %3 : vector<16x128xbf16> to vector<16x128xf32>
    %c0_2 = arith.constant 0 : index
    %c0_3 = arith.constant 0 : index
    %5 = vector.load %arg2[%c0_2, %c0_3] : memref<1x128xf32, #tpu.memory_space<vmem>>, vector<1x128xf32>
    %cst = arith.constant dense<0.000000e+00> : vector<128xf32>
    %6 = vector.multi_reduction <add>, %4, %cst [0] : vector<16x128xf32> to vector<128xf32>
    %7 = vector.shape_cast %6 : vector<128xf32> to vector<1x128xf32>
    %8 = arith.addf %5, %7 : vector<1x128xf32>
    %c0_4 = arith.constant 0 : index
    %c0_5 = arith.constant 0 : index
    %9 = vector.load %arg2[%c0_4, %c0_5] : memref<1x128xf32, #tpu.memory_space<vmem>>, vector<1x128xf32>
    tpu.vector_store %arg2[%c0_4, %c0_5], %8 {strides = array<i32>} : memref<1x128xf32, #tpu.memory_space<vmem>>, vector<1x128xf32>,
    %c0_6 = arith.constant 0 : index
    %c0_7 = arith.constant 0 : index
    %10 = vector.load %arg3[%c0_6, %c0_7] : memref<1x128xf32, #tpu.memory_space<vmem>>, vector<1x128xf32>
    %11 = arith.mulf %4, %4 : vector<16x128xf32>
    %cst_8 = arith.constant dense<0.000000e+00> : vector<128xf32>
    %12 = vector.multi_reduction <add>, %11, %cst_8 [0] : vector<16x128xf32> to vector<128xf32>
    %13 = vector.shape_cast %12 : vector<128xf32> to vector<1x128xf32>
    %14 = arith.addf %10, %13 : vector<1x128xf32>
    %c0_9 = arith.constant 0 : index
    %c0_10 = arith.constant 0 : index
    %15 = vector.load %arg3[%c0_9, %c0_10] : memref<1x128xf32, #tpu.memory_space<vmem>>, vector<1x128xf32>
    tpu.vector_store %arg3[%c0_9, %c0_10], %14 {strides = array<i32>} : memref<1x128xf32, #tpu.memory_space<vmem>>, vector<1x128xf32>,
    return
  }
  func.func @transform_0(%arg0: i32) -> (i32, i32) {
    %c0_i32 = arith.constant 0 : i32
    %c0_i32_0 = arith.constant 0 : i32
    return %arg0, %c0_i32 : i32, i32
  }
  func.func @transform_1(%arg0: i32) -> (i32, i32) {
    %c0_i32 = arith.constant 0 : i32
    %c0_i32_0 = arith.constant 0 : i32
    %c0_i32_1 = arith.constant 0 : i32
    return %c0_i32, %c0_i32_0 : i32, i32
  }
  func.func @transform_2(%arg0: i32) -> (i32, i32) {
    %c0_i32 = arith.constant 0 : i32
    %c0_i32_0 = arith.constant 0 : i32
    %c0_i32_1 = arith.constant 0 : i32
    return %c0_i32, %c0_i32_0 : i32, i32
  }
}

module attributes {stable_mosaic.version = 11 : i64} {
  func.func @_matmul_kernel(%arg0: i32, %arg1: i32, %arg2: i32, %arg3: memref<128x128xbf16, #tpu.memory_space<vmem>>, %arg4: memref<128x128xbf16, #tpu.memory_space<vmem>>, %arg5: memref<1x128xf32, #tpu.memory_space<vmem>>, %arg6: memref<128x128xbf16, #tpu.memory_space<vmem>>, %arg7: memref<128x128xf32, #tpu.memory_space<vmem>>) attributes {dimension_semantics = [#tpu.dimension_semantics<parallel>, #tpu.dimension_semantics<parallel>, #tpu.dimension_semantics<arbitrary>], iteration_bounds = array<i64: 1, 1, 1>, scalar_prefetch = 0 : i64, scratch_operands = 1 : i64, tpu.core_type = #tpu.core_type<tc>, window_params = [{transform_indices = @transform_0, window_bounds = array<i64: 128, 128>}, {transform_indices = @transform_1, window_bounds = array<i64: 128, 128>}, {transform_indices = @transform_2, window_bounds = array<i64: 1, 128>}, {transform_indices = @transform_3, window_bounds = array<i64: 128, 128>}]} {
    %c0_i32 = arith.constant 0 : i32
    %0 = arith.cmpi eq, %arg2, %c0_i32 : i32
    %c0_i32_0 = arith.constant 0 : i32
    %1 = arith.cmpi eq, %arg2, %c0_i32_0 : i32
    %2 = arith.extui %1 : i1 to i32
    %c0_i32_1 = arith.constant 0 : i32
    %3 = arith.cmpi ne, %2, %c0_i32_1 : i32
    scf.if %3 {
      %cst_10 = arith.constant 0.000000e+00 : f32
      %12 = vector.broadcast %cst_10 : f32 to vector<128x128xf32>
      %c0_11 = arith.constant 0 : index
      %c0_12 = arith.constant 0 : index
      %13 = vector.load %arg7[%c0_11, %c0_12] : memref<128x128xf32, #tpu.memory_space<vmem>>, vector<128x128xf32>
      tpu.vector_store %arg7[%c0_11, %c0_12], %12 {strides = array<i32>} : memref<128x128xf32, #tpu.memory_space<vmem>>, vector<128x128xf32>,
    } else {
    }
    %c0 = arith.constant 0 : index
    %c0_2 = arith.constant 0 : index
    %4 = vector.load %arg7[%c0, %c0_2] : memref<128x128xf32, #tpu.memory_space<vmem>>, vector<128x128xf32>
    %c0_3 = arith.constant 0 : index
    %c0_4 = arith.constant 0 : index
    %5 = vector.load %arg3[%c0_3, %c0_4] : memref<128x128xbf16, #tpu.memory_space<vmem>>, vector<128x128xbf16>
    %c0_5 = arith.constant 0 : index
    %c0_6 = arith.constant 0 : index
    %6 = vector.load %arg4[%c0_5, %c0_6] : memref<128x128xbf16, #tpu.memory_space<vmem>>, vector<128x128xbf16>
    %cst = arith.constant dense<0.000000e+00> : vector<128x128xf32>
    %7 = tpu.matmul %5, %6, %cst {dimension_numbers = #tpu.dot_dimension_numbers<[1], [0], [0], [1], [0, 0, 1, 1], [], []>} : vector<128x128xbf16>, vector<128x128xbf16>, vector<128x128xf32> -> vector<128x128xf32>
    %8 = arith.addf %4, %7 : vector<128x128xf32>
    %c0_7 = arith.constant 0 : index
    %c0_8 = arith.constant 0 : index
    %9 = vector.load %arg7[%c0_7, %c0_8] : memref<128x128xf32, #tpu.memory_space<vmem>>, vector<128x128xf32>
    tpu.vector_store %arg7[%c0_7, %c0_8], %8 {strides = array<i32>} : memref<128x128xf32, #tpu.memory_space<vmem>>, vector<128x128xf32>,
    %10 = arith.extui %0 : i1 to i32
    %c0_i32_9 = arith.constant 0 : i32
    %11 = arith.cmpi ne, %10, %c0_i32_9 : i32
    scf.if %11 {
      %c0_10 = arith.constant 0 : index
      %c0_11 = arith.constant 0 : index
      %12 = vector.load %arg7[%c0_10, %c0_11] : memref<128x128xf32, #tpu.memory_space<vmem>>, vector<128x128xf32>
      %c0_12 = arith.constant 0 : index
      %c0_13 = arith.constant 0 : index
      %13 = vector.load %arg5[%c0_12, %c0_13] : memref<1x128xf32, #tpu.memory_space<vmem>>, vector<1x128xf32>
      %14 = vector.broadcast %13 : vector<1x128xf32> to vector<128x128xf32>
      %15 = arith.addf %12, %14 : vector<128x128xf32>
      %16 = arith.truncf %15 : vector<128x128xf32> to vector<128x128xbf16>
      %c0_14 = arith.constant 0 : index
      %c0_15 = arith.constant 0 : index
      %17 = vector.load %arg6[%c0_14, %c0_15] : memref<128x128xbf16, #tpu.memory_space<vmem>>, vector<128x128xbf16>
      tpu.vector_store %arg6[%c0_14, %c0_15], %16 {strides = array<i32>} : memref<128x128xbf16, #tpu.memory_space<vmem>>, vector<128x128xbf16>,
    } else {
    }
    return
  }
  func.func @transform_0(%arg0: i32, %arg1: i32, %arg2: i32) -> (i32, i32) {
    %c0_i32 = arith.constant 0 : i32
    return %arg0, %arg2 : i32, i32
  }
  func.func @transform_1(%arg0: i32, %arg1: i32, %arg2: i32) -> (i32, i32) {
    %c0_i32 = arith.constant 0 : i32
    return %arg2, %arg1 : i32, i32
  }
  func.func @transform_2(%arg0: i32, %arg1: i32, %arg2: i32) -> (i32, i32) {
    %c0_i32 = arith.constant 0 : i32
    %c0_i32_0 = arith.constant 0 : i32
    return %c0_i32, %arg1 : i32, i32
  }
  func.func @transform_3(%arg0: i32, %arg1: i32, %arg2: i32) -> (i32, i32) {
    %c0_i32 = arith.constant 0 : i32
    return %arg0, %arg1 : i32, i32
  }
}

module attributes {stable_mosaic.version = 11 : i64} {
  func.func @_bn_stats_kernel(%arg0: i32, %arg1: memref<32x128xbf16, #tpu.memory_space<vmem>>, %arg2: memref<1x128xf32, #tpu.memory_space<vmem>>, %arg3: memref<1x128xf32, #tpu.memory_space<vmem>>) attributes {dimension_semantics = [#tpu.dimension_semantics<arbitrary>], iteration_bounds = array<i64: 1>, scalar_prefetch = 0 : i64, scratch_operands = 0 : i64, tpu.core_type = #tpu.core_type<tc>, window_params = [{transform_indices = @transform_0, window_bounds = array<i64: 32, 128>}, {pipeline_mode = #tpu.pipeline_mode<synchronous>, transform_indices = @transform_1, window_bounds = array<i64: 1, 128>}, {pipeline_mode = #tpu.pipeline_mode<synchronous>, transform_indices = @transform_2, window_bounds = array<i64: 1, 128>}]} {
    %c0_i32 = arith.constant 0 : i32
    %0 = arith.cmpi eq, %arg0, %c0_i32 : i32
    %1 = arith.extui %0 : i1 to i32
    %c0_i32_0 = arith.constant 0 : i32
    %2 = arith.cmpi ne, %1, %c0_i32_0 : i32
    scf.if %2 {
      %cst_11 = arith.constant 0.000000e+00 : f32
      %16 = vector.broadcast %cst_11 : f32 to vector<1x128xf32>
      %c0_12 = arith.constant 0 : index
      %c0_13 = arith.constant 0 : index
      %17 = vector.load %arg2[%c0_12, %c0_13] : memref<1x128xf32, #tpu.memory_space<vmem>>, vector<1x128xf32>
      tpu.vector_store %arg2[%c0_12, %c0_13], %16 {strides = array<i32>} : memref<1x128xf32, #tpu.memory_space<vmem>>, vector<1x128xf32>,
      %cst_14 = arith.constant 0.000000e+00 : f32
      %18 = vector.broadcast %cst_14 : f32 to vector<1x128xf32>
      %c0_15 = arith.constant 0 : index
      %c0_16 = arith.constant 0 : index
      %19 = vector.load %arg3[%c0_15, %c0_16] : memref<1x128xf32, #tpu.memory_space<vmem>>, vector<1x128xf32>
      tpu.vector_store %arg3[%c0_15, %c0_16], %18 {strides = array<i32>} : memref<1x128xf32, #tpu.memory_space<vmem>>, vector<1x128xf32>,
    } else {
    }
    %c0 = arith.constant 0 : index
    %c0_1 = arith.constant 0 : index
    %3 = vector.load %arg1[%c0, %c0_1] : memref<32x128xbf16, #tpu.memory_space<vmem>>, vector<32x128xbf16>
    %4 = arith.extf %3 : vector<32x128xbf16> to vector<32x128xf32>
    %c0_2 = arith.constant 0 : index
    %c0_3 = arith.constant 0 : index
    %5 = vector.load %arg2[%c0_2, %c0_3] : memref<1x128xf32, #tpu.memory_space<vmem>>, vector<1x128xf32>
    %cst = arith.constant dense<0.000000e+00> : vector<128xf32>
    %6 = vector.multi_reduction <add>, %4, %cst [0] : vector<32x128xf32> to vector<128xf32>
    %7 = vector.shape_cast %6 : vector<128xf32> to vector<1x128xf32>
    %8 = arith.addf %5, %7 : vector<1x128xf32>
    %c0_4 = arith.constant 0 : index
    %c0_5 = arith.constant 0 : index
    %9 = vector.load %arg2[%c0_4, %c0_5] : memref<1x128xf32, #tpu.memory_space<vmem>>, vector<1x128xf32>
    tpu.vector_store %arg2[%c0_4, %c0_5], %8 {strides = array<i32>} : memref<1x128xf32, #tpu.memory_space<vmem>>, vector<1x128xf32>,
    %c0_6 = arith.constant 0 : index
    %c0_7 = arith.constant 0 : index
    %10 = vector.load %arg3[%c0_6, %c0_7] : memref<1x128xf32, #tpu.memory_space<vmem>>, vector<1x128xf32>
    %11 = arith.mulf %4, %4 : vector<32x128xf32>
    %cst_8 = arith.constant dense<0.000000e+00> : vector<128xf32>
    %12 = vector.multi_reduction <add>, %11, %cst_8 [0] : vector<32x128xf32> to vector<128xf32>
    %13 = vector.shape_cast %12 : vector<128xf32> to vector<1x128xf32>
    %14 = arith.addf %10, %13 : vector<1x128xf32>
    %c0_9 = arith.constant 0 : index
    %c0_10 = arith.constant 0 : index
    %15 = vector.load %arg3[%c0_9, %c0_10] : memref<1x128xf32, #tpu.memory_space<vmem>>, vector<1x128xf32>
    tpu.vector_store %arg3[%c0_9, %c0_10], %14 {strides = array<i32>} : memref<1x128xf32, #tpu.memory_space<vmem>>, vector<1x128xf32>,
    return
  }
  func.func @transform_0(%arg0: i32) -> (i32, i32) {
    %c0_i32 = arith.constant 0 : i32
    %c0_i32_0 = arith.constant 0 : i32
    return %arg0, %c0_i32 : i32, i32
  }
  func.func @transform_1(%arg0: i32) -> (i32, i32) {
    %c0_i32 = arith.constant 0 : i32
    %c0_i32_0 = arith.constant 0 : i32
    %c0_i32_1 = arith.constant 0 : i32
    return %c0_i32, %c0_i32_0 : i32, i32
  }
  func.func @transform_2(%arg0: i32) -> (i32, i32) {
    %c0_i32 = arith.constant 0 : i32
    %c0_i32_0 = arith.constant 0 : i32
    %c0_i32_1 = arith.constant 0 : i32
    return %c0_i32, %c0_i32_0 : i32, i32
  }
}

</mosaic_0001>

<bundles_post_ra>
// kernel: _lambda_.21
= control target key start
LH: loop header
LB: loop body
LE: loop exit
PB: predicated region body
PF: predicated region fallthrough
CT: control target
= control target key end

     0   :  { %s2187_s1 = inlined_call_operand.vmem [shape: bf16[128,128], index: 1, kind: input, shape index: {}]   ;;  %s2188_s0 = inlined_call_operand.vmem [shape: bf16[512,128], index: 0, kind: input, shape index: {}]   ;;  %s2189_s2 = inlined_call_operand.vmem [shape: f32[1,128], index: 2, kind: input, shape index: {}]   ;;  %s2190_s3 = inlined_call_operand.vmem [shape: bf16[512,128], index: 3, kind: output, shape index: {}]  }
   0x1   :  { %v1842_v0 = vld [vmem:[%s2187_s1] sm:$0xff]   ;;  %v1843_v1 = vld [vmem:[%s2187_s1 + $0x8] sm:$0xff]   ;;  %v1844_v2 = vld [vmem:[%s2187_s1 + $0x10] sm:$0xff]  }
   0x2   :  { %1746 = vmatprep.subr.bf16.mxu0 %v1842_v0  ;;  %1826 = vmatprep.subr.bf16.mxu1 %v1842_v0  ;;  %v1845_v3 = vld [vmem:[%s2187_s1 + $0x18] sm:$0xff]   ;;  %v1850_v4 = vld [vmem:[%s2188_s0] sm:$0xff]   ;;  %v1847_v7 = vld [vmem:[%s2187_s1 + $0x28] sm:$0xff]  }
   0x3   :  { %1747 = vmatpush3.bf16.msra.mxu0 %v1842_v0  ;;  %1834 = vmatpush3.bf16.msra.mxu1 %v1842_v0  ;;  %v1851_v5 = vld [vmem:[%s2188_s0 + $0x80] sm:$0xff]   ;;  %v1848_v8 = vld [vmem:[%s2187_s1 + $0x30] sm:$0xff]   ;;  %v1849_v9 = vld [vmem:[%s2187_s1 + $0x38] sm:$0xff]  }
   0x4   :  { %1748 = vmatprep.subr.bf16.mxu0 %v1843_v1  ;;  %1827 = vmatprep.subr.bf16.mxu1 %v1843_v1  ;;  %v1846_v6 = vld [vmem:[%s2187_s1 + $0x20] sm:$0xff]   ;;  %v1852_v10 = vld [vmem:[%s2188_s0 + $0x8] sm:$0xff]   ;;  %v1854_v12 = vld [vmem:[%s2188_s0 + $0x10] sm:$0xff]  }
   0x5   :  { %1762 = vmatprep.mubr.bf16.mxu0 %v1850_v4  ;;  %1794 = vmatprep.mubr.bf16.mxu1 %v1851_v5  ;;  %v1853_v11 = vld [vmem:[%s2188_s0 + $0x88] sm:$0xff]   ;;  %v1855_v13 = vld [vmem:[%s2188_s0 + $0x90] sm:$0xff]   ;;  %v1856_v14 = vld [vmem:[%s2188_s0 + $0x18] sm:$0xff]  }
   0x6   :  { %v1857_v15 = vld [vmem:[%s2188_s0 + $0x98] sm:$0xff]   ;;  %v1858_v16 = vld [vmem:[%s2188_s0 + $0x20] sm:$0xff]   ;;  %v1860_v18 = vld [vmem:[%s2188_s0 + $0x28] sm:$0xff]  }
   0x7   :  { %1749 = vmatpush3.bf16.msra.mxu0 %v1843_v1  ;;  %1835 = vmatpush3.bf16.msra.mxu1 %v1843_v1  ;;  %v1859_v17 = vld [vmem:[%s2188_s0 + $0xa0] sm:$0xff]   ;;  %v1861_v19 = vld [vmem:[%s2188_s0 + $0xa8] sm:$0xff]   ;;  %v1862_v20 = vld [vmem:[%s2188_s0 + $0x30] sm:$0xff]  }
   0x8   :  { %1750 = vmatprep.subr.bf16.mxu0 %v1844_v2  ;;  %1828 = vmatprep.subr.bf16.mxu1 %v1844_v2  ;;  %v1863_v21 = vld [vmem:[%s2188_s0 + $0xb0] sm:$0xff]   ;;  %v1864_v22 = vld [vmem:[%s2188_s0 + $0x38] sm:$0xff]   ;;  %v1866_v24 = vld [vmem:[%s2188_s0 + $0x40] sm:$0xff]  }
   0x9   :  { %v1865_v23 = vld [vmem:[%s2188_s0 + $0xb8] sm:$0xff]   ;;  %v1867_v25 = vld [vmem:[%s2188_s0 + $0xc0] sm:$0xff]   ;;  %v1868_v26 = vld [vmem:[%s2188_s0 + $0x48] sm:$0xff]  }
   0xa   :  { %v1869_v27 = vld [vmem:[%s2188_s0 + $0xc8] sm:$0xff]   ;;  %v1870_v28 = vld [vmem:[%s2188_s0 + $0x50] sm:$0xff]   ;;  %v1872_v30 = vld [vmem:[%s2188_s0 + $0x58] sm:$0xff]  }
   0xb   :  { %1751 = vmatpush3.bf16.msra.mxu0 %v1844_v2  ;;  %1836 = vmatpush3.bf16.msra.mxu1 %v1844_v2  ;;  %v1871_v29 = vld [vmem:[%s2188_s0 + $0xd0] sm:$0xff]   ;;  %v1873_v31 = vld [vmem:[%s2188_s0 + $0xd8] sm:$0xff]   ;;  %v1874_v32 = vld [vmem:[%s2188_s0 + $0x60] sm:$0xff]  }
   0xc   :  { %1752 = vmatprep.subr.bf16.mxu0 %v1845_v3  ;;  %1829 = vmatprep.subr.bf16.mxu1 %v1845_v3  ;;  %v1875_v33 = vld [vmem:[%s2188_s0 + $0xe0] sm:$0xff]   ;;  %v1876_v34 = vld [vmem:[%s2188_s0 + $0x68] sm:$0xff]   ;;  %v1878_v36 = vld [vmem:[%s2188_s0 + $0x70] sm:$0xff]  }
   0xd   :  { %v1877_v35 = vld [vmem:[%s2188_s0 + $0xe8] sm:$0xff]   ;;  %v1879_v37 = vld [vmem:[%s2188_s0 + $0xf0] sm:$0xff]   ;;  %v1880_v38 = vld [vmem:[%s2188_s0 + $0x78] sm:$0xff]  }
   0xe   :  { %v1881_v39 = vld [vmem:[%s2188_s0 + $0xf8] sm:$0xff]   ;;  %v2025_v41 = vld [vmem:[%s2189_s2] ss:$0 sm:$0xff] }
   0xf   :  { %1753 = vmatpush3.bf16.msra.mxu0 %v1845_v3  ;;  %1837 = vmatpush3.bf16.msra.mxu1 %v1845_v3 }
  0x10   :  { %1754 = vmatprep.subr.bf16.mxu0 %v1846_v6  ;;  %1830 = vmatprep.subr.bf16.mxu1 %v1846_v6 }
  0x13   :  { %1755 = vmatpush3.bf16.msra.mxu0 %v1846_v6  ;;  %1838 = vmatpush3.bf16.msra.mxu1 %v1846_v6 }
  0x14   :  { %1756 = vmatprep.subr.bf16.mxu0 %v1847_v7  ;;  %1831 = vmatprep.subr.bf16.mxu1 %v1847_v7 }
  0x17   :  { %1757 = vmatpush3.bf16.msra.mxu0 %v1847_v7  ;;  %1839 = vmatpush3.bf16.msra.mxu1 %v1847_v7 }
  0x18   :  { %1758 = vmatprep.subr.bf16.mxu0 %v1848_v8  ;;  %1832 = vmatprep.subr.bf16.mxu1 %v1848_v8 }
  0x1b   :  { %1759 = vmatpush3.bf16.msra.mxu0 %v1848_v8  ;;  %1840 = vmatpush3.bf16.msra.mxu1 %v1848_v8 }
  0x1c   :  { %1760 = vmatprep.subr.bf16.mxu0 %v1849_v9  ;;  %1833 = vmatprep.subr.bf16.mxu1 %v1849_v9 }
  0x1f   :  { %1761 = vmatpush3.bf16.msra.mxu0 %v1849_v9  ;;  %1841 = vmatpush3.bf16.msra.mxu1 %v1849_v9 }
  0x22   :  { %1763 = vmatmul.mubr.bf16.vlgmr.msra.gmra.mrb[0].mxu0 %v1852_v10  ;;  %1795 = vmatmul.mubr.bf16.vlgmr.msra.gmra.mrb[0].mxu1 %v1853_v11 }
  0x23   :  { %1766 = vmatprep.mubr.bf16.mxu0 %v1854_v12  ;;  %1798 = vmatprep.mubr.bf16.mxu1 %v1855_v13 }
  0x2a   :  { %1767 = vmatmul.mubr.bf16.gmra.mrb[4].mxu0 %v1856_v14  ;;  %1799 = vmatmul.mubr.bf16.gmra.mrb[4].mxu1 %v1857_v15 }
  0x2b   :  { %1770 = vmatprep.mubr.bf16.mxu0 %v1858_v16  ;;  %1802 = vmatprep.mubr.bf16.mxu1 %v1859_v17 }
  0x32   :  { %1771 = vmatmul.mubr.bf16.gmra.mrb[8].mxu0 %v1860_v18  ;;  %1803 = vmatmul.mubr.bf16.gmra.mrb[8].mxu1 %v1861_v19 }
  0x33   :  { %1774 = vmatprep.mubr.bf16.mxu0 %v1862_v20  ;;  %1806 = vmatprep.mubr.bf16.mxu1 %v1863_v21 }
  0x3a   :  { %1775 = vmatmul.mubr.bf16.gmra.mrb[12].mxu0 %v1864_v22  ;;  %1807 = vmatmul.mubr.bf16.gmra.mrb[12].mxu1 %v1865_v23 }
  0x3b   :  { %1778 = vmatprep.mubr.bf16.mxu0 %v1866_v24  ;;  %1810 = vmatprep.mubr.bf16.mxu1 %v1867_v25 }
  0x42   :  { %1779 = vmatmul.mubr.bf16.gmra.mrb[16].mxu0 %v1868_v26  ;;  %1811 = vmatmul.mubr.bf16.gmra.mrb[16].mxu1 %v1869_v27 }
  0x43   :  { %1782 = vmatprep.mubr.bf16.mxu0 %v1870_v28  ;;  %1814 = vmatprep.mubr.bf16.mxu1 %v1871_v29 }
  0x4a   :  { %1783 = vmatmul.mubr.bf16.gmra.mrb[20].mxu0 %v1872_v30  ;;  %1815 = vmatmul.mubr.bf16.gmra.mrb[20].mxu1 %v1873_v31 }
  0x4b   :  { %1786 = vmatprep.mubr.bf16.mxu0 %v1874_v32  ;;  %1818 = vmatprep.mubr.bf16.mxu1 %v1875_v33 }
  0x52   :  { %1787 = vmatmul.mubr.bf16.gmra.mrb[24].mxu0 %v1876_v34  ;;  %1819 = vmatmul.mubr.bf16.gmra.mrb[24].mxu1 %v1877_v35 }
  0x53   :  { %1790 = vmatprep.mubr.bf16.mxu0 %v1878_v36  ;;  %1822 = vmatprep.mubr.bf16.mxu1 %v1879_v37 }
  0x5a   :  { %1791 = vmatmul.mubr.bf16.gmra.mrb[28].mxu0 %v1880_v38  ;;  %1823 = vmatmul.mubr.bf16.gmra.mrb[28].mxu1 %v1881_v39 }
  0xf5   :  { %v1764_v40 = vpop.f32.mrb[0].mxu0  ;;  %v1796_v42 = vpop.f32.mrb[0].mxu1 }
  0xf6   :  { %v501_v43 = vpop.f32.mrb[1].mxu0  ;;  %v629_v44 = vpop.f32.mrb[1].mxu1  ;;  %v960_v47 = vadd.f32 %v1764_v40, %v2025_v41  ;;  %v992_v48 = vadd.f32 %v1796_v42, %v2025_v41 }
  0xf7   :  { %v1765_v45 = vpop.f32.mrb[2].mxu0  ;;  %v1797_v46 = vpop.f32.mrb[2].mxu1  ;;  %v958_v53 = vadd.f32 %v2025_v41, %v501_v43  ;;  %v990_v54 = vadd.f32 %v2025_v41, %v629_v44 }
  0xf8   :  { %v961_v49 = vadd.f32 %v1765_v45, %v2025_v41  ;;  %v993_v50 = vadd.f32 %v1797_v46, %v2025_v41  ;;  %v504_v51 = vpop.f32.mrb[3].mxu0  ;;  %v632_v52 = vpop.f32.mrb[3].mxu1 }
  0xf9   :  { %v959_v55 = vadd.f32 %v2025_v41, %v504_v51  ;;  %v991_v56 = vadd.f32 %v2025_v41, %v632_v52 }
  0xfa   :  { %v1523_v57 = vpack.c.bf16 %v961_v49, %v960_v47  ;;  %v1603_v58 = vpack.c.bf16 %v993_v50, %v992_v48 }
  0xfb   :  { %v1518_v59 = vpack.c.bf16 %v959_v55, %v958_v53  ;;  %v1598_v60 = vpack.c.bf16 %v991_v56, %v990_v54 }
  0xfc   :  { %1675 = vst [vmem:[%s2190_s3 + $0x8] sm:$0xff] %v1523_v57   ;;  %1691 = vst [vmem:[%s2190_s3 + $0x88] sm:$0xff] %v1603_v58  }
  0xfd   :  { %1519 = vst [vmem:[%s2190_s3] sm:$0xff] %v1518_v59   ;;  %1690 = vst [vmem:[%s2190_s3 + $0x80] sm:$0xff] %v1598_v60   ;;  %v1768_v61 = vpop.f32.mrb[4].mxu0  ;;  %v1800_v62 = vpop.f32.mrb[4].mxu1 }
  0xfe   :  { %v517_v63 = vpop.f32.mrb[5].mxu0  ;;  %v645_v0 = vpop.f32.mrb[5].mxu1  ;;  %v964_v3 = vadd.f32 %v1768_v61, %v2025_v41  ;;  %v996_v4 = vadd.f32 %v1800_v62, %v2025_v41 }
  0xff   :  { %v1769_v1 = vpop.f32.mrb[6].mxu0  ;;  %v1801_v2 = vpop.f32.mrb[6].mxu1  ;;  %v962_v9 = vadd.f32 %v2025_v41, %v517_v63  ;;  %v994_v10 = vadd.f32 %v2025_v41, %v645_v0 }
 0x100   :  { %v965_v5 = vadd.f32 %v1769_v1, %v2025_v41  ;;  %v997_v6 = vadd.f32 %v1801_v2, %v2025_v41  ;;  %v520_v7 = vpop.f32.mrb[7].mxu0  ;;  %v648_v8 = vpop.f32.mrb[7].mxu1 }
 0x101   :  { %v963_v11 = vadd.f32 %v2025_v41, %v520_v7  ;;  %v995_v12 = vadd.f32 %v2025_v41, %v648_v8 }
 0x102   :  { %v1533_v13 = vpack.c.bf16 %v965_v5, %v964_v3  ;;  %v1613_v14 = vpack.c.bf16 %v997_v6, %v996_v4 }
 0x103   :  { %v1528_v15 = vpack.c.bf16 %v963_v11, %v962_v9  ;;  %v1608_v16 = vpack.c.bf16 %v995_v12, %v994_v10 }
 0x104   :  { %1677 = vst [vmem:[%s2190_s3 + $0x18] sm:$0xff] %v1533_v13   ;;  %1693 = vst [vmem:[%s2190_s3 + $0x98] sm:$0xff] %v1613_v14  }
 0x105   :  { %1676 = vst [vmem:[%s2190_s3 + $0x10] sm:$0xff] %v1528_v15   ;;  %1692 = vst [vmem:[%s2190_s3 + $0x90] sm:$0xff] %v1608_v16   ;;  %v1772_v17 = vpop.f32.mrb[8].mxu0  ;;  %v1804_v18 = vpop.f32.mrb[8].mxu1 }
 0x106   :  { %v533_v19 = vpop.f32.mrb[9].mxu0  ;;  %v661_v20 = vpop.f32.mrb[9].mxu1  ;;  %v968_v23 = vadd.f32 %v1772_v17, %v2025_v41  ;;  %v1000_v24 = vadd.f32 %v1804_v18, %v2025_v41 }
 0x107   :  { %v1773_v21 = vpop.f32.mrb[10].mxu0  ;;  %v1805_v22 = vpop.f32.mrb[10].mxu1  ;;  %v966_v29 = vadd.f32 %v2025_v41, %v533_v19  ;;  %v998_v30 = vadd.f32 %v2025_v41, %v661_v20 }
 0x108   :  { %v969_v25 = vadd.f32 %v1773_v21, %v2025_v41  ;;  %v1001_v26 = vadd.f32 %v1805_v22, %v2025_v41  ;;  %v536_v27 = vpop.f32.mrb[11].mxu0  ;;  %v664_v28 = vpop.f32.mrb[11].mxu1 }
 0x109   :  { %v967_v31 = vadd.f32 %v2025_v41, %v536_v27  ;;  %v999_v32 = vadd.f32 %v2025_v41, %v664_v28 }
 0x10a   :  { %v1543_v33 = vpack.c.bf16 %v969_v25, %v968_v23  ;;  %v1623_v34 = vpack.c.bf16 %v1001_v26, %v1000_v24 }
 0x10b   :  { %v1538_v35 = vpack.c.bf16 %v967_v31, %v966_v29  ;;  %v1618_v36 = vpack.c.bf16 %v999_v32, %v998_v30 }
 0x10c   :  { %1679 = vst [vmem:[%s2190_s3 + $0x28] sm:$0xff] %v1543_v33   ;;  %1695 = vst [vmem:[%s2190_s3 + $0xa8] sm:$0xff] %v1623_v34  }
 0x10d   :  { %1678 = vst [vmem:[%s2190_s3 + $0x20] sm:$0xff] %v1538_v35   ;;  %1694 = vst [vmem:[%s2190_s3 + $0xa0] sm:$0xff] %v1618_v36   ;;  %v1776_v37 = vpop.f32.mrb[12].mxu0  ;;  %v1808_v38 = vpop.f32.mrb[12].mxu1 }
 0x10e   :  { %v549_v39 = vpop.f32.mrb[13].mxu0  ;;  %v677_v40 = vpop.f32.mrb[13].mxu1  ;;  %v972_v44 = vadd.f32 %v1776_v37, %v2025_v41  ;;  %v1004_v45 = vadd.f32 %v1808_v38, %v2025_v41 }
 0x10f   :  { %v1777_v42 = vpop.f32.mrb[14].mxu0  ;;  %v1809_v43 = vpop.f32.mrb[14].mxu1  ;;  %v970_v50 = vadd.f32 %v2025_v41, %v549_v39  ;;  %v1002_v51 = vadd.f32 %v2025_v41, %v677_v40 }
 0x110   :  { %v973_v46 = vadd.f32 %v1777_v42, %v2025_v41  ;;  %v1005_v47 = vadd.f32 %v1809_v43, %v2025_v41  ;;  %v552_v48 = vpop.f32.mrb[15].mxu0  ;;  %v680_v49 = vpop.f32.mrb[15].mxu1 }
 0x111   :  { %v971_v52 = vadd.f32 %v2025_v41, %v552_v48  ;;  %v1003_v53 = vadd.f32 %v2025_v41, %v680_v49 }
 0x112   :  { %v1553_v54 = vpack.c.bf16 %v973_v46, %v972_v44  ;;  %v1633_v55 = vpack.c.bf16 %v1005_v47, %v1004_v45 }
 0x113   :  { %v1548_v56 = vpack.c.bf16 %v971_v52, %v970_v50  ;;  %v1628_v57 = vpack.c.bf16 %v1003_v53, %v1002_v51 }
 0x114   :  { %1681 = vst [vmem:[%s2190_s3 + $0x38] sm:$0xff] %v1553_v54   ;;  %1697 = vst [vmem:[%s2190_s3 + $0xb8] sm:$0xff] %v1633_v55  }
 0x115   :  { %1680 = vst [vmem:[%s2190_s3 + $0x30] sm:$0xff] %v1548_v56   ;;  %1696 = vst [vmem:[%s2190_s3 + $0xb0] sm:$0xff] %v1628_v57   ;;  %v1780_v58 = vpop.f32.mrb[16].mxu0  ;;  %v1812_v59 = vpop.f32.mrb[16].mxu1 }
 0x116   :  { %v565_v60 = vpop.f32.mrb[17].mxu0  ;;  %v693_v61 = vpop.f32.mrb[17].mxu1  ;;  %v976_v0 = vadd.f32 %v1780_v58, %v2025_v41  ;;  %v1008_v1 = vadd.f32 %v1812_v59, %v2025_v41 }
 0x117   :  { %v1781_v62 = vpop.f32.mrb[18].mxu0  ;;  %v1813_v63 = vpop.f32.mrb[18].mxu1  ;;  %v974_v6 = vadd.f32 %v2025_v41, %v565_v60  ;;  %v1006_v7 = vadd.f32 %v2025_v41, %v693_v61 }
 0x118   :  { %v977_v2 = vadd.f32 %v1781_v62, %v2025_v41  ;;  %v1009_v3 = vadd.f32 %v1813_v63, %v2025_v41  ;;  %v568_v4 = vpop.f32.mrb[19].mxu0  ;;  %v696_v5 = vpop.f32.mrb[19].mxu1 }
 0x119   :  { %v975_v8 = vadd.f32 %v2025_v41, %v568_v4  ;;  %v1007_v9 = vadd.f32 %v2025_v41, %v696_v5 }
 0x11a   :  { %v1563_v10 = vpack.c.bf16 %v977_v2, %v976_v0  ;;  %v1643_v11 = vpack.c.bf16 %v1009_v3, %v1008_v1 }
 0x11b   :  { %v1558_v12 = vpack.c.bf16 %v975_v8, %v974_v6  ;;  %v1638_v13 = vpack.c.bf16 %v1007_v9, %v1006_v7 }
 0x11c   :  { %1683 = vst [vmem:[%s2190_s3 + $0x48] sm:$0xff] %v1563_v10   ;;  %1699 = vst [vmem:[%s2190_s3 + $0xc8] sm:$0xff] %v1643_v11  }
 0x11d   :  { %1682 = vst [vmem:[%s2190_s3 + $0x40] sm:$0xff] %v1558_v12   ;;  %1698 = vst [vmem:[%s2190_s3 + $0xc0] sm:$0xff] %v1638_v13   ;;  %v1784_v14 = vpop.f32.mrb[20].mxu0  ;;  %v1816_v15 = vpop.f32.mrb[20].mxu1 }
 0x11e   :  { %v581_v16 = vpop.f32.mrb[21].mxu0  ;;  %v709_v17 = vpop.f32.mrb[21].mxu1  ;;  %v980_v20 = vadd.f32 %v1784_v14, %v2025_v41  ;;  %v1012_v21 = vadd.f32 %v1816_v15, %v2025_v41 }
 0x11f   :  { %v1785_v18 = vpop.f32.mrb[22].mxu0  ;;  %v1817_v19 = vpop.f32.mrb[22].mxu1  ;;  %v978_v26 = vadd.f32 %v2025_v41, %v581_v16  ;;  %v1010_v27 = vadd.f32 %v2025_v41, %v709_v17 }
 0x120   :  { %v981_v22 = vadd.f32 %v1785_v18, %v2025_v41  ;;  %v1013_v23 = vadd.f32 %v1817_v19, %v2025_v41  ;;  %v584_v24 = vpop.f32.mrb[23].mxu0  ;;  %v712_v25 = vpop.f32.mrb[23].mxu1 }
 0x121   :  { %v979_v28 = vadd.f32 %v2025_v41, %v584_v24  ;;  %v1011_v29 = vadd.f32 %v2025_v41, %v712_v25 }
 0x122   :  { %v1573_v30 = vpack.c.bf16 %v981_v22, %v980_v20  ;;  %v1653_v31 = vpack.c.bf16 %v1013_v23, %v1012_v21 }
 0x123   :  { %v1568_v32 = vpack.c.bf16 %v979_v28, %v978_v26  ;;  %v1648_v33 = vpack.c.bf16 %v1011_v29, %v1010_v27 }
 0x124   :  { %1685 = vst [vmem:[%s2190_s3 + $0x58] sm:$0xff] %v1573_v30   ;;  %1701 = vst [vmem:[%s2190_s3 + $0xd8] sm:$0xff] %v1653_v31  }
 0x125   :  { %1684 = vst [vmem:[%s2190_s3 + $0x50] sm:$0xff] %v1568_v32   ;;  %1700 = vst [vmem:[%s2190_s3 + $0xd0] sm:$0xff] %v1648_v33   ;;  %v1788_v34 = vpop.f32.mrb[24].mxu0  ;;  %v1820_v35 = vpop.f32.mrb[24].mxu1 }
 0x126   :  { %v597_v36 = vpop.f32.mrb[25].mxu0  ;;  %v725_v37 = vpop.f32.mrb[25].mxu1  ;;  %v984_v40 = vadd.f32 %v1788_v34, %v2025_v41  ;;  %v1016_v42 = vadd.f32 %v1820_v35, %v2025_v41 }
 0x127   :  { %v1789_v38 = vpop.f32.mrb[26].mxu0  ;;  %v1821_v39 = vpop.f32.mrb[26].mxu1  ;;  %v982_v47 = vadd.f32 %v2025_v41, %v597_v36  ;;  %v1014_v48 = vadd.f32 %v2025_v41, %v725_v37 }
 0x128   :  { %v985_v43 = vadd.f32 %v1789_v38, %v2025_v41  ;;  %v1017_v44 = vadd.f32 %v1821_v39, %v2025_v41  ;;  %v600_v45 = vpop.f32.mrb[27].mxu0  ;;  %v728_v46 = vpop.f32.mrb[27].mxu1 }
 0x129   :  { %v983_v49 = vadd.f32 %v2025_v41, %v600_v45  ;;  %v1015_v50 = vadd.f32 %v2025_v41, %v728_v46 }
 0x12a   :  { %v1583_v51 = vpack.c.bf16 %v985_v43, %v984_v40  ;;  %v1663_v52 = vpack.c.bf16 %v1017_v44, %v1016_v42 }
 0x12b   :  { %v1578_v53 = vpack.c.bf16 %v983_v49, %v982_v47  ;;  %v1658_v54 = vpack.c.bf16 %v1015_v50, %v1014_v48 }
 0x12c   :  { %1687 = vst [vmem:[%s2190_s3 + $0x68] sm:$0xff] %v1583_v51   ;;  %1703 = vst [vmem:[%s2190_s3 + $0xe8] sm:$0xff] %v1663_v52  }
 0x12d   :  { %1686 = vst [vmem:[%s2190_s3 + $0x60] sm:$0xff] %v1578_v53   ;;  %1702 = vst [vmem:[%s2190_s3 + $0xe0] sm:$0xff] %v1658_v54   ;;  %v1792_v55 = vpop.f32.mrb[28].mxu0  ;;  %v1824_v56 = vpop.f32.mrb[28].mxu1 }
 0x12e   :  { %v613_v57 = vpop.f32.mrb[29].mxu0  ;;  %v741_v58 = vpop.f32.mrb[29].mxu1  ;;  %v988_v61 = vadd.f32 %v1792_v55, %v2025_v41  ;;  %v1020_v62 = vadd.f32 %v1824_v56, %v2025_v41 }
 0x12f   :  { %v1793_v59 = vpop.f32.mrb[30].mxu0  ;;  %v1825_v60 = vpop.f32.mrb[30].mxu1  ;;  %v986_v3 = vadd.f32 %v2025_v41, %v613_v57  ;;  %v1018_v4 = vadd.f32 %v2025_v41, %v741_v58 }
 0x130   :  { %v989_v63 = vadd.f32 %v1793_v59, %v2025_v41  ;;  %v1021_v0 = vadd.f32 %v1825_v60, %v2025_v41  ;;  %v616_v1 = vpop.f32.mrb[31].mxu0  ;;  %v744_v2 = vpop.f32.mrb[31].mxu1 }
 0x131   :  { %v987_v5 = vadd.f32 %v2025_v41, %v616_v1  ;;  %v1019_v6 = vadd.f32 %v2025_v41, %v744_v2 }
 0x132   :  { %v1593_v7 = vpack.c.bf16 %v989_v63, %v988_v61  ;;  %v1673_v8 = vpack.c.bf16 %v1021_v0, %v1020_v62 }
 0x133   :  { %v1588_v9 = vpack.c.bf16 %v987_v5, %v986_v3  ;;  %v1668_v10 = vpack.c.bf16 %v1019_v6, %v1018_v4 }
 0x134   :  { %1689 = vst [vmem:[%s2190_s3 + $0x78] sm:$0xff] %v1593_v7   ;;  %1705 = vst [vmem:[%s2190_s3 + $0xf8] sm:$0xff] %v1673_v8  }
 0x135   :  { %1688 = vst [vmem:[%s2190_s3 + $0x70] sm:$0xff] %v1588_v9   ;;  %1704 = vst [vmem:[%s2190_s3 + $0xf0] sm:$0xff] %v1668_v10  }

// kernel: _lambda_.22
= control target key start
LH: loop header
LB: loop body
LE: loop exit
PB: predicated region body
PF: predicated region fallthrough
CT: control target
= control target key end

     0   :  { %s796_s1 = inlined_call_operand.vmem [shape: bf16[128,128], index: 1, kind: input, shape index: {}]   ;;  %s797_s0 = inlined_call_operand.vmem [shape: bf16[128,128], index: 0, kind: input, shape index: {}]   ;;  %s798_s2 = inlined_call_operand.vmem [shape: f32[1,128], index: 2, kind: input, shape index: {}]   ;;  %s799_s3 = inlined_call_operand.vmem [shape: bf16[128,128], index: 3, kind: output, shape index: {0}]   ;;  %s800_s4 = inlined_call_operand.vmem [shape: f32[1,8,128], index: 4, kind: output, shape index: {1}]  }
   0x1   :  { %v665_v0 = vld [vmem:[%s796_s1] sm:$0xff]   ;;  %v666_v1 = vld [vmem:[%s796_s1 + $0x8] sm:$0xff]   ;;  %v667_v2 = vld [vmem:[%s796_s1 + $0x10] sm:$0xff]  }
   0x2   :  { %617 = vmatprep.subr.bf16.mxu0 %v665_v0  ;;  %649 = vmatprep.subr.bf16.mxu1 %v665_v0  ;;  %v668_v3 = vld [vmem:[%s796_s1 + $0x18] sm:$0xff]   ;;  %v673_v4 = vld [vmem:[%s797_s0] sm:$0xff]   ;;  %v670_v7 = vld [vmem:[%s796_s1 + $0x28] sm:$0xff]  }
   0x3   :  { %618 = vmatpush3.bf16.msra.mxu0 %v665_v0  ;;  %657 = vmatpush3.bf16.msra.mxu1 %v665_v0  ;;  %v669_v5 = vld [vmem:[%s796_s1 + $0x20] sm:$0xff]   ;;  %v671_v8 = vld [vmem:[%s796_s1 + $0x30] sm:$0xff]   ;;  %v672_v9 = vld [vmem:[%s796_s1 + $0x38] sm:$0xff]  }
   0x4   :  { %619 = vmatprep.subr.bf16.mxu0 %v666_v1  ;;  %650 = vmatprep.subr.bf16.mxu1 %v666_v1  ;;  %v677_v6 = vld [vmem:[%s797_s0 + $0x20] sm:$0xff]   ;;  %v674_v10 = vld [vmem:[%s797_s0 + $0x8] sm:$0xff]   ;;  %v675_v12 = vld [vmem:[%s797_s0 + $0x10] sm:$0xff]  }
   0x5   :  { %633 = vmatprep.mubr.bf16.mxu0 %v673_v4  ;;  %641 = vmatprep.mubr.bf16.mxu1 %v677_v6  ;;  %v678_v11 = vld [vmem:[%s797_s0 + $0x28] sm:$0xff]   ;;  %v679_v13 = vld [vmem:[%s797_s0 + $0x30] sm:$0xff]   ;;  %v676_v14 = vld [vmem:[%s797_s0 + $0x18] sm:$0xff]  }
   0x6   :  { %v680_v15 = vld [vmem:[%s797_s0 + $0x38] sm:$0xff]   ;;  %v521_v16 = vld [vmem:[%s798_s2] ss:$0 sm:$0xff] }
   0x7   :  { %620 = vmatpush3.bf16.msra.mxu0 %v666_v1  ;;  %658 = vmatpush3.bf16.msra.mxu1 %v666_v1 }
   0x8   :  { %621 = vmatprep.subr.bf16.mxu0 %v667_v2  ;;  %651 = vmatprep.subr.bf16.mxu1 %v667_v2 }
   0xb   :  { %622 = vmatpush3.bf16.msra.mxu0 %v667_v2  ;;  %659 = vmatpush3.bf16.msra.mxu1 %v667_v2 }
   0xc   :  { %623 = vmatprep.subr.bf16.mxu0 %v668_v3  ;;  %652 = vmatprep.subr.bf16.mxu1 %v668_v3 }
   0xf   :  { %624 = vmatpush3.bf16.msra.mxu0 %v668_v3  ;;  %660 = vmatpush3.bf16.msra.mxu1 %v668_v3 }
  0x10   :  { %625 = vmatprep.subr.bf16.mxu0 %v669_v5  ;;  %653 = vmatprep.subr.bf16.mxu1 %v669_v5 }
  0x13   :  { %626 = vmatpush3.bf16.msra.mxu0 %v669_v5  ;;  %661 = vmatpush3.bf16.msra.mxu1 %v669_v5 }
  0x14   :  { %627 = vmatprep.subr.bf16.mxu0 %v670_v7  ;;  %654 = vmatprep.subr.bf16.mxu1 %v670_v7 }
  0x17   :  { %628 = vmatpush3.bf16.msra.mxu0 %v670_v7  ;;  %662 = vmatpush3.bf16.msra.mxu1 %v670_v7 }
  0x18   :  { %629 = vmatprep.subr.bf16.mxu0 %v671_v8  ;;  %655 = vmatprep.subr.bf16.mxu1 %v671_v8 }
  0x1b   :  { %630 = vmatpush3.bf16.msra.mxu0 %v671_v8  ;;  %663 = vmatpush3.bf16.msra.mxu1 %v671_v8 }
  0x1c   :  { %631 = vmatprep.subr.bf16.mxu0 %v672_v9  ;;  %656 = vmatprep.subr.bf16.mxu1 %v672_v9 }
  0x1f   :  { %632 = vmatpush3.bf16.msra.mxu0 %v672_v9  ;;  %664 = vmatpush3.bf16.msra.mxu1 %v672_v9 }
  0x22   :  { %634 = vmatmul.mubr.bf16.vlgmr.msra.gmra.mrb[0].mxu0 %v674_v10  ;;  %642 = vmatmul.mubr.bf16.vlgmr.msra.gmra.mrb[0].mxu1 %v678_v11 }
  0x23   :  { %637 = vmatprep.mubr.bf16.mxu0 %v675_v12  ;;  %645 = vmatprep.mubr.bf16.mxu1 %v679_v13 }
  0x2a   :  { %638 = vmatmul.mubr.bf16.gmra.mrb[4].mxu0 %v676_v14  ;;  %646 = vmatmul.mubr.bf16.gmra.mrb[4].mxu1 %v680_v15 }
  0xf5   :  { %v635_v17 = vpop.f32.mrb[0].mxu0  ;;  %v643_v18 = vpop.f32.mrb[0].mxu1 }
  0xf6   :  { %v215_v19 = vpop.f32.mrb[1].mxu0  ;;  %v757_v20 = vadd.f32 %v643_v18, %v521_v16  ;;  %v247_v21 = vpop.f32.mrb[1].mxu1  ;;  %v338_v25 = vadd.f32 %v635_v17, %v521_v16 }
  0xf7   :  { %v336_v22 = vadd.f32 %v521_v16, %v215_v19  ;;  %v636_v23 = vpop.f32.mrb[2].mxu0  ;;  %v644_v24 = vpop.f32.mrb[2].mxu1  ;;  %v344_v28 = vadd.f32 %v521_v16, %v247_v21 }
  0xf8   :  { %v339_v26 = vadd.f32 %v636_v23, %v521_v16  ;;  %v218_v27 = vpop.f32.mrb[3].mxu0  ;;  %v759_v29 = vadd.f32 %v644_v24, %v521_v16  ;;  %v250_v30 = vpop.f32.mrb[3].mxu1  ;;  %v375_v40 = vmul.f32 %v338_v25, %v338_v25  ;;  %v383_v21 = vmul.f32 %v757_v20, %v757_v20 }
  0xf9   :  { %v337_v31 = vadd.f32 %v521_v16, %v218_v27  ;;  %v345_v32 = vadd.f32 %v521_v16, %v250_v30  ;;  %v373_v35 = vmul.f32 %v336_v22, %v336_v22  ;;  %v381_v14 = vmul.f32 %v344_v28, %v344_v28 }
  0xfa   :  { %v562_v33 = vpack.c.bf16 %v339_v26, %v338_v25  ;;  %v582_v34 = vpack.c.bf16 %v759_v29, %v757_v20  ;;  %v376_v47 = vmul.f32 %v339_v26, %v339_v26  ;;  %v384_v24 = vmul.f32 %v759_v29, %v759_v29 }
  0xfb   :  { %v352_v36 = vadd.f32 %v337_v31, %v336_v22  ;;  %v374_v37 = vmul.f32 %v337_v31, %v337_v31  ;;  %v557_v38 = vpack.c.bf16 %v337_v31, %v336_v22  ;;  %v577_v39 = vpack.c.bf16 %v345_v32, %v344_v28 }
  0xfc   :  { %594 = vst [vmem:[%s799_s3 + $0x8] sm:$0xff] %v562_v33   ;;  %598 = vst [vmem:[%s799_s3 + $0x28] sm:$0xff] %v582_v34   ;;  %v382_v19 = vmul.f32 %v345_v32, %v345_v32 }
  0xfd   :  { %v353_v41 = vadd.f32 %v352_v36, %v338_v25  ;;  %v389_v42 = vadd.f32 %v374_v37, %v373_v35  ;;  %558 = vst [vmem:[%s799_s3] sm:$0xff] %v557_v38   ;;  %v639_v43 = vpop.f32.mrb[4].mxu0  ;;  %v647_v44 = vpop.f32.mrb[4].mxu1  ;;  %597 = vst [vmem:[%s799_s3 + $0x20] sm:$0xff] %v577_v39  }
  0xfe   :  { %v231_v45 = vpop.f32.mrb[5].mxu0  ;;  %v263_v46 = vpop.f32.mrb[5].mxu1  ;;  %v342_v53 = vadd.f32 %v639_v43, %v521_v16  ;;  %v350_v56 = vadd.f32 %v647_v44, %v521_v16 }
  0xff   :  { %v390_v48 = vadd.f32 %v389_v42, %v375_v40  ;;  %v340_v49 = vadd.f32 %v521_v16, %v231_v45  ;;  %v354_v50 = vadd.f32 %v353_v41, %v339_v26  ;;  %v640_v51 = vpop.f32.mrb[6].mxu0  ;;  %v648_v52 = vpop.f32.mrb[6].mxu1  ;;  %v348_v0 = vadd.f32 %v521_v16, %v263_v46 }
 0x100   :  { %v343_v54 = vadd.f32 %v640_v51, %v521_v16  ;;  %v234_v55 = vpop.f32.mrb[7].mxu0  ;;  %v351_v57 = vadd.f32 %v648_v52, %v521_v16  ;;  %v266_v58 = vpop.f32.mrb[7].mxu1  ;;  %v379_v7 = vmul.f32 %v342_v53, %v342_v53  ;;  %v387_v35 = vmul.f32 %v350_v56, %v350_v56 }
 0x101   :  { %v355_v59 = vadd.f32 %v354_v50, %v340_v49  ;;  %v377_v60 = vmul.f32 %v340_v49, %v340_v49  ;;  %v391_v61 = vadd.f32 %v390_v48, %v376_v47  ;;  %v341_v62 = vadd.f32 %v521_v16, %v234_v55 }
 0x102   :  { %v572_v63 = vpack.c.bf16 %v343_v54, %v342_v53  ;;  %v592_v5 = vpack.c.bf16 %v351_v57, %v350_v56  ;;  %v349_v6 = vadd.f32 %v521_v16, %v266_v58  ;;  %v380_v11 = vmul.f32 %v343_v54, %v343_v54 }
 0x103   :  { %v392_v1 = vadd.f32 %v391_v61, %v377_v60  ;;  %v356_v2 = vadd.f32 %v355_v59, %v341_v62  ;;  %v378_v3 = vmul.f32 %v341_v62, %v341_v62  ;;  %v567_v4 = vpack.c.bf16 %v341_v62, %v340_v49 }
 0x104   :  { %596 = vst [vmem:[%s799_s3 + $0x18] sm:$0xff] %v572_v63   ;;  %600 = vst [vmem:[%s799_s3 + $0x38] sm:$0xff] %v592_v5   ;;  %v587_v10 = vpack.c.bf16 %v349_v6, %v348_v0  ;;  %v385_v27 = vmul.f32 %v348_v0, %v348_v0  ;;  %v386_v34 = vmul.f32 %v349_v6, %v349_v6  ;;  %v410_v41 = vlaneseq }
 0x105   :  { %v357_v8 = vadd.f32 %v356_v2, %v342_v53  ;;  %v393_v9 = vadd.f32 %v392_v1, %v378_v3  ;;  %595 = vst [vmem:[%s799_s3 + $0x10] sm:$0xff] %v567_v4   ;;  %v388_v37 = vmul.f32 %v351_v57, %v351_v57 }
 0x106   :  { %599 = vst [vmem:[%s799_s3 + $0x30] sm:$0xff] %v587_v10  }
 0x107   :  { %v394_v12 = vadd.f32 %v393_v9, %v379_v7  ;;  %v358_v13 = vadd.f32 %v357_v8, %v343_v54 }
 0x109   :  { %v359_v15 = vadd.f32 %v358_v13, %v344_v28  ;;  %v395_v16 = vadd.f32 %v394_v12, %v380_v11 }
 0x10b   :  { %v396_v17 = vadd.f32 %v395_v16, %v381_v14  ;;  %v360_v18 = vadd.f32 %v359_v15, %v345_v32 }
 0x10d   :  { %v361_v22 = vadd.f32 %v360_v18, %v757_v20  ;;  %v397_v23 = vadd.f32 %v396_v17, %v382_v19 }
 0x10f   :  { %v398_v25 = vadd.f32 %v397_v23, %v383_v21  ;;  %v362_v26 = vadd.f32 %v361_v22, %v759_v29  ;;  %v411_v29 = vshrl.u32 %v410_v41, 7 }
 0x111   :  { %v363_v30 = vadd.f32 %v362_v26, %v348_v0  ;;  %v399_v31 = vadd.f32 %v398_v25, %v384_v24  ;;  %vm412_vm0 = vcmp.eq.s32.totalorder %v411_v29, 0  ;;  %vm414_vm1 = vcmp.eq.s32.totalorder %v411_v29, 1 }
 0x113   :  { %v400_v28 = vadd.f32 %v399_v31, %v385_v27  ;;  %v364_v33 = vadd.f32 %v363_v30, %v349_v6 }
 0x115   :  { %v365_v32 = vadd.f32 %v364_v33, %v350_v56  ;;  %v401_v36 = vadd.f32 %v400_v28, %v386_v34 }
 0x117   :  { %v366_v38 = vadd.f32 %v365_v32, %v351_v57  ;;  %v402_v39 = vadd.f32 %v401_v36, %v387_v35 }
 0x119   :  { %v367_v20 = vrot.slane %v366_v38, 4  ;;  %v403_v40 = vadd.f32 %v402_v39, %v388_v37 }
 0x11b   :  { %v368_v42 = vadd.f32 %v367_v20, %v366_v38  ;;  %v404_v43 = vrot.slane %v403_v40, 4 }
 0x11d   :  { %v369_v44 = vrot.slane %v368_v42, 2  ;;  %v405_v45 = vadd.f32 %v404_v43, %v403_v40 }
 0x11f   :  { %v370_v46 = vadd.f32 %v369_v44, %v368_v42  ;;  %v406_v47 = vrot.slane %v405_v45, 2 }
 0x121   :  { %v371_v48 = vrot.slane %v370_v46, 1  ;;  %v407_v49 = vadd.f32 %v406_v47, %v405_v45 }
 0x123   :  { %v372_v50 = vadd.f32 %v371_v48, %v370_v46  ;;  %v408_v51 = vrot.slane %v407_v49, 1 }
 0x125   :  { %v409_v52 = vadd.f32 %v408_v51, %v407_v49  ;;  %v413_v53 = vsel %vm412_vm0, %v372_v50, 0.0 }
 0x127   :  { %v415_v54 = vsel %vm414_vm1, %v409_v52, %v413_v53 }
 0x128   :  { %416 = vst [vmem:[%s800_s4] sm:$0xff] %v415_v54 }

// kernel: _lambda_.23
= control target key start
LH: loop header
LB: loop body
LE: loop exit
PB: predicated region body
PF: predicated region fallthrough
CT: control target
= control target key end

     0   :  { %s370_s0 = inlined_call_operand.vmem [shape: bf16[128,128], index: 0, kind: input, shape index: {}]   ;;  %s371_s1 = inlined_call_operand.vmem [shape: f32[1,128], index: 1, kind: input, shape index: {}]   ;;  %s372_s2 = inlined_call_operand.vmem [shape: f32[1,128], index: 2, kind: input, shape index: {}]   ;;  %s373_s3 = inlined_call_operand.vmem [shape: bf16[128,128], index: 3, kind: output, shape index: {}]  }
   0x1   :  { %v211_v0 = vld [vmem:[%s370_s0] sm:$0xff]   ;;  %v282_v4 = vld [vmem:[%s370_s0 + $0x8] sm:$0xff]   ;;  %v283_v5 = vld [vmem:[%s370_s0 + $0x10] sm:$0xff]  }
   0x2   :  { %v176_v1 = vld [vmem:[%s371_s1] ss:$0 sm:$0xff]  ;;  %v212_v2 = vunpack.c.l.bf16 %v211_v0  ;;  %v213_v3 = vunpack.c.h.bf16 %v211_v0  ;;  %v284_v6 = vld [vmem:[%s370_s0 + $0x18] sm:$0xff]   ;;  %v216_v8 = vunpack.c.l.bf16 %v282_v4  ;;  %v217_v9 = vunpack.c.h.bf16 %v282_v4  ;;  %v286_v25 = vld [vmem:[%s370_s0 + $0x28] sm:$0xff]  }
   0x3   :  { %v177_v7 = vld [vmem:[%s372_s2] ss:$0 sm:$0xff]  ;;  %v220_v10 = vunpack.c.l.bf16 %v283_v5  ;;  %v221_v11 = vunpack.c.h.bf16 %v283_v5  ;;  %v224_v14 = vunpack.c.l.bf16 %v284_v6  ;;  %v225_v15 = vunpack.c.h.bf16 %v284_v6  ;;  %v287_v30 = vld [vmem:[%s370_s0 + $0x30] sm:$0xff]   ;;  %v288_v35 = vld [vmem:[%s370_s0 + $0x38] sm:$0xff]  }
   0x4   :  { %v53_v12 = vmul.f32 %v212_v2, %v176_v1  ;;  %v54_v13 = vmul.f32 %v213_v3, %v176_v1  ;;  %v55_v16 = vmul.f32 %v216_v8, %v176_v1  ;;  %v56_v17 = vmul.f32 %v217_v9, %v176_v1  ;;  %v285_v20 = vld [vmem:[%s370_s0 + $0x20] sm:$0xff]  }
   0x5   :  { %v57_v18 = vmul.f32 %v220_v10, %v176_v1  ;;  %v58_v19 = vmul.f32 %v221_v11, %v176_v1  ;;  %v59_v23 = vmul.f32 %v224_v14, %v176_v1  ;;  %v60_v24 = vmul.f32 %v225_v15, %v176_v1 }
   0x6   :  { %v76_v21 = vadd.f32 %v177_v7, %v53_v12  ;;  %v77_v22 = vadd.f32 %v177_v7, %v54_v13  ;;  %v78_v26 = vadd.f32 %v177_v7, %v55_v16  ;;  %v79_v27 = vadd.f32 %v177_v7, %v56_v17 }
   0x7   :  { %v80_v28 = vadd.f32 %v177_v7, %v57_v18  ;;  %v81_v29 = vadd.f32 %v177_v7, %v58_v19  ;;  %v82_v32 = vadd.f32 %v177_v7, %v59_v23  ;;  %v83_v33 = vadd.f32 %v177_v7, %v60_v24 }
   0x8   :  { %v245_v31 = vpack.c.bf16 %v77_v22, %v76_v21  ;;  %v228_v34 = vunpack.c.l.bf16 %v285_v20  ;;  %v250_v36 = vpack.c.bf16 %v79_v27, %v78_v26  ;;  %v229_v38 = vunpack.c.h.bf16 %v285_v20 }
   0x9   :  { %v255_v37 = vpack.c.bf16 %v81_v29, %v80_v28  ;;  %v232_v39 = vunpack.c.l.bf16 %v286_v25  ;;  %v260_v40 = vpack.c.bf16 %v83_v33, %v82_v32  ;;  %v233_v42 = vunpack.c.h.bf16 %v286_v25 }
   0xa   :  { %246 = vst [vmem:[%s373_s3] sm:$0xff] %v245_v31   ;;  %v61_v41 = vmul.f32 %v228_v34, %v176_v1  ;;  %v236_v43 = vunpack.c.l.bf16 %v287_v30  ;;  %289 = vst [vmem:[%s373_s3 + $0x8] sm:$0xff] %v250_v36   ;;  %v62_v44 = vmul.f32 %v229_v38, %v176_v1  ;;  %v237_v46 = vunpack.c.h.bf16 %v287_v30 }
   0xb   :  { %290 = vst [vmem:[%s373_s3 + $0x10] sm:$0xff] %v255_v37   ;;  %v63_v45 = vmul.f32 %v232_v39, %v176_v1  ;;  %v240_v47 = vunpack.c.l.bf16 %v288_v35  ;;  %291 = vst [vmem:[%s373_s3 + $0x18] sm:$0xff] %v260_v40   ;;  %v64_v49 = vmul.f32 %v233_v42, %v176_v1  ;;  %v241_v51 = vunpack.c.h.bf16 %v288_v35 }
   0xc   :  { %v84_v48 = vadd.f32 %v177_v7, %v61_v41  ;;  %v65_v50 = vmul.f32 %v236_v43, %v176_v1  ;;  %v85_v52 = vadd.f32 %v177_v7, %v62_v44  ;;  %v66_v54 = vmul.f32 %v237_v46, %v176_v1 }
   0xd   :  { %v86_v53 = vadd.f32 %v177_v7, %v63_v45  ;;  %v67_v55 = vmul.f32 %v240_v47, %v176_v1  ;;  %v87_v56 = vadd.f32 %v177_v7, %v64_v49  ;;  %v68_v58 = vmul.f32 %v241_v51, %v176_v1 }
   0xe   :  { %v88_v57 = vadd.f32 %v177_v7, %v65_v50  ;;  %v265_v59 = vpack.c.bf16 %v85_v52, %v84_v48  ;;  %v89_v60 = vadd.f32 %v177_v7, %v66_v54 }
   0xf   :  { %v90_v61 = vadd.f32 %v177_v7, %v67_v55  ;;  %v270_v62 = vpack.c.bf16 %v87_v56, %v86_v53  ;;  %v91_v63 = vadd.f32 %v177_v7, %v68_v58 }
  0x10   :  { %292 = vst [vmem:[%s373_s3 + $0x20] sm:$0xff] %v265_v59   ;;  %v275_v0 = vpack.c.bf16 %v89_v60, %v88_v57 }
  0x11   :  { %293 = vst [vmem:[%s373_s3 + $0x28] sm:$0xff] %v270_v62   ;;  %v280_v2 = vpack.c.bf16 %v91_v63, %v90_v61 }
  0x12   :  { %294 = vst [vmem:[%s373_s3 + $0x30] sm:$0xff] %v275_v0  }
  0x13   :  { %295 = vst [vmem:[%s373_s3 + $0x38] sm:$0xff] %v280_v2  }

// kernel: _lambda_.25
= control target key start
LH: loop header
LB: loop body
LE: loop exit
PB: predicated region body
PF: predicated region fallthrough
CT: control target
= control target key end

     0   :  { %s136_s0 = inlined_call_operand.vmem [shape: bf16[32,128], index: 0, kind: input, shape index: {}]   ;;  %s137_s1 = inlined_call_operand.vmem [shape: f32[1,128], index: 1, kind: input, shape index: {}]   ;;  %s138_s2 = inlined_call_operand.vmem [shape: f32[1,128], index: 2, kind: input, shape index: {}]   ;;  %s139_s3 = inlined_call_operand.vmem [shape: bf16[32,128], index: 3, kind: output, shape index: {}]  }
   0x1   :  { %v79_v0 = vld [vmem:[%s136_s0] sm:$0xff]   ;;  %v96_v4 = vld [vmem:[%s136_s0 + $0x8] sm:$0xff]  }
   0x2   :  { %v68_v1 = vld [vmem:[%s137_s1] ss:$0 sm:$0xff]  ;;  %v80_v2 = vunpack.c.l.bf16 %v79_v0  ;;  %v81_v3 = vunpack.c.h.bf16 %v79_v0  ;;  %v84_v6 = vunpack.c.l.bf16 %v96_v4  ;;  %v85_v7 = vunpack.c.h.bf16 %v96_v4 }
   0x3   :  { %v69_v5 = vld [vmem:[%s138_s2] ss:$0 sm:$0xff] }
   0x4   :  { %v29_v8 = vmul.f32 %v80_v2, %v68_v1  ;;  %v30_v9 = vmul.f32 %v81_v3, %v68_v1  ;;  %v31_v10 = vmul.f32 %v84_v6, %v68_v1  ;;  %v32_v11 = vmul.f32 %v85_v7, %v68_v1 }
   0x6   :  { %v40_v12 = vadd.f32 %v69_v5, %v29_v8  ;;  %v41_v13 = vadd.f32 %v69_v5, %v30_v9  ;;  %v42_v14 = vadd.f32 %v69_v5, %v31_v10  ;;  %v43_v15 = vadd.f32 %v69_v5, %v32_v11 }
   0x8   :  { %v89_v16 = vpack.c.bf16 %v41_v13, %v40_v12  ;;  %v94_v17 = vpack.c.bf16 %v43_v15, %v42_v14 }
   0xa   :  { %90 = vst [vmem:[%s139_s3] sm:$0xff] %v89_v16   ;;  %97 = vst [vmem:[%s139_s3 + $0x8] sm:$0xff] %v94_v17  }

// kernel: _lambda_.24
= control target key start
LH: loop header
LB: loop body
LE: loop exit
PB: predicated region body
PF: predicated region fallthrough
CT: control target
= control target key end

     0   :  { %v278_v50 = vlaneseq  ;;  %s516_s1 = inlined_call_operand.vmem [shape: bf16[256,128], index: 1, kind: input, shape index: {}]   ;;  %s517_s0 = inlined_call_operand.vmem [shape: bf16[32,256], index: 0, kind: input, shape index: {}]   ;;  %s518_s2 = inlined_call_operand.vmem [shape: f32[1,128], index: 2, kind: input, shape index: {}]   ;;  %s519_s3 = inlined_call_operand.vmem [shape: bf16[32,128], index: 3, kind: output, shape index: {0}]   ;;  %s520_s4 = inlined_call_operand.vmem [shape: f32[1,8,128], index: 4, kind: output, shape index: {1}]  }
   0x1   :  { %v397_v0 = vld [vmem:[%s516_s1 + $0x40] sm:$0xff]   ;;  %v399_v2 = vld [vmem:[%s516_s1 + $0x48] sm:$0xff]   ;;  %v401_v4 = vld [vmem:[%s516_s1 + $0x50] sm:$0xff]  }
   0x2   :  { %v398_v1 = vld [vmem:[%s516_s1] sm:$0xff]   ;;  %353 = vmatprep.subr.bf16.mxu0 %v397_v0  ;;  %381 = vmatprep.subr.bf16.mxu1 %v397_v0  ;;  %v400_v3 = vld [vmem:[%s516_s1 + $0x8] sm:$0xff]   ;;  %v402_v5 = vld [vmem:[%s516_s1 + $0x10] sm:$0xff]   ;;  %v279_v55 = vshrl.u32 %v278_v50, 7 }
   0x3   :  { %354 = vmatpush3.bf16.msra.mxu0 %v398_v1  ;;  %389 = vmatpush3.bf16.msra.mxu1 %v398_v1  ;;  %v403_v6 = vld [vmem:[%s516_s1 + $0x58] sm:$0xff]   ;;  %v405_v8 = vld [vmem:[%s516_s1 + $0x60] sm:$0xff]   ;;  %v407_v10 = vld [vmem:[%s516_s1 + $0x68] sm:$0xff]  }
   0x4   :  { %355 = vmatprep.subr.bf16.mxu0 %v399_v2  ;;  %382 = vmatprep.subr.bf16.mxu1 %v399_v2  ;;  %v404_v7 = vld [vmem:[%s516_s1 + $0x18] sm:$0xff]   ;;  %v406_v9 = vld [vmem:[%s516_s1 + $0x20] sm:$0xff]   ;;  %v408_v13 = vld [vmem:[%s516_s1 + $0x28] sm:$0xff]   ;;  %vm280_vm0 = vcmp.eq.s32.totalorder %v279_v55, 0  ;;  %vm282_vm1 = vcmp.eq.s32.totalorder %v279_v55, 1 }
   0x5   :  { %v415_v11 = vld [vmem:[%s517_s0 + $0x4] ss:$8 sps:$4 sm:$0xff]   ;;  %v418_v12 = vld [vmem:[%s517_s0 + $0x14] ss:$8 sps:$4 sm:$0xff]   ;;  %v413_v18 = vld [vmem:[%s517_s0] ss:$8 sps:$4 sm:$0xff]  }
   0x6   :  { %v409_v14 = vld [vmem:[%s516_s1 + $0x70] sm:$0xff]   ;;  %213 = vmatprep.mubr.bf16.mxu0 %v415_v11  ;;  %221 = vmatprep.mubr.bf16.mxu1 %v418_v12  ;;  %v411_v16 = vld [vmem:[%s516_s1 + $0x78] sm:$0xff]   ;;  %v333_v23 = vld [vmem:[%s518_s2] ss:$0 sm:$0xff] }
   0x7   :  { %356 = vmatpush3.bf16.msra.mxu0 %v400_v3  ;;  %390 = vmatpush3.bf16.msra.mxu1 %v400_v3  ;;  %v410_v15 = vld [vmem:[%s516_s1 + $0x30] sm:$0xff]   ;;  %v412_v17 = vld [vmem:[%s516_s1 + $0x38] sm:$0xff]  }
   0x8   :  { %357 = vmatprep.subr.bf16.mxu0 %v401_v4  ;;  %383 = vmatprep.subr.bf16.mxu1 %v401_v4  ;;  %v416_v19 = vld [vmem:[%s517_s0 + $0x10] ss:$8 sps:$4 sm:$0xff]  }
   0xb   :  { %358 = vmatpush3.bf16.msra.mxu0 %v402_v5  ;;  %391 = vmatpush3.bf16.msra.mxu1 %v402_v5 }
   0xc   :  { %359 = vmatprep.subr.bf16.mxu0 %v403_v6  ;;  %384 = vmatprep.subr.bf16.mxu1 %v403_v6 }
   0xf   :  { %360 = vmatpush3.bf16.msra.mxu0 %v404_v7  ;;  %392 = vmatpush3.bf16.msra.mxu1 %v404_v7 }
  0x10   :  { %361 = vmatprep.subr.bf16.mxu0 %v405_v8  ;;  %385 = vmatprep.subr.bf16.mxu1 %v405_v8 }
  0x13   :  { %362 = vmatpush3.bf16.msra.mxu0 %v406_v9  ;;  %393 = vmatpush3.bf16.msra.mxu1 %v406_v9 }
  0x14   :  { %363 = vmatprep.subr.bf16.mxu0 %v407_v10  ;;  %386 = vmatprep.subr.bf16.mxu1 %v407_v10 }
  0x17   :  { %364 = vmatpush3.bf16.msra.mxu0 %v408_v13  ;;  %394 = vmatpush3.bf16.msra.mxu1 %v408_v13 }
  0x18   :  { %365 = vmatprep.subr.bf16.mxu0 %v409_v14  ;;  %387 = vmatprep.subr.bf16.mxu1 %v409_v14 }
  0x1b   :  { %366 = vmatpush3.bf16.msra.mxu0 %v410_v15  ;;  %395 = vmatpush3.bf16.msra.mxu1 %v410_v15 }
  0x1c   :  { %367 = vmatprep.subr.bf16.mxu0 %v411_v16  ;;  %388 = vmatprep.subr.bf16.mxu1 %v411_v16 }
  0x1f   :  { %368 = vmatpush3.bf16.msra.mxu0 %v412_v17  ;;  %396 = vmatpush3.bf16.msra.mxu1 %v412_v17 }
  0x22   :  { %214 = vmatmul.mubr.bf16.vlgmr.msra.gmra.mrb[0].mxu0 %v413_v18  ;;  %222 = vmatmul.mubr.bf16.vlgmr.msra.gmra.mrb[0].mxu1 %v416_v19 }
  0xf5   :  { %v369_v20 = vpop.f32.mrb[0].mxu0  ;;  %v375_v21 = vpop.f32.mrb[0].mxu1 }
  0xf6   :  { %v370_v22 = vpop.f32.mrb[1].mxu0  ;;  %v376_v24 = vpop.f32.mrb[1].mxu1 }
  0xf7   :  { %v371_v25 = vadd.f32 %v370_v22, %v369_v20  ;;  %v372_v26 = vpop.f32.mrb[2].mxu0  ;;  %v377_v27 = vadd.f32 %v376_v24, %v375_v21  ;;  %v378_v28 = vpop.f32.mrb[2].mxu1 }
  0xf8   :  { %v373_v29 = vpop.f32.mrb[3].mxu0  ;;  %v379_v30 = vpop.f32.mrb[3].mxu1 }
  0xf9   :  { %v252_v31 = vadd.f32 %v371_v25, %v333_v23  ;;  %v254_v32 = vadd.f32 %v377_v27, %v333_v23  ;;  %v374_v33 = vadd.f32 %v373_v29, %v372_v26  ;;  %v380_v34 = vadd.f32 %v379_v30, %v378_v28 }
  0xfb   :  { %v253_v35 = vadd.f32 %v374_v33, %v333_v23  ;;  %v255_v36 = vadd.f32 %v380_v34, %v333_v23  ;;  %v265_v37 = vmul.f32 %v252_v31, %v252_v31  ;;  %v267_v38 = vmul.f32 %v254_v32, %v254_v32 }
  0xfd   :  { %v256_v39 = vadd.f32 %v253_v35, %v252_v31  ;;  %v266_v40 = vmul.f32 %v253_v35, %v253_v35  ;;  %v345_v41 = vpack.c.bf16 %v253_v35, %v252_v31  ;;  %v350_v42 = vpack.c.bf16 %v255_v36, %v254_v32 }
  0xfe   :  { %v268_v46 = vmul.f32 %v255_v36, %v255_v36 }
  0xff   :  { %v269_v43 = vadd.f32 %v266_v40, %v265_v37  ;;  %346 = vst [vmem:[%s519_s3] sm:$0xff] %v345_v41   ;;  %v257_v44 = vadd.f32 %v256_v39, %v254_v32  ;;  %352 = vst [vmem:[%s519_s3 + $0x8] sm:$0xff] %v350_v42  }
 0x101   :  { %v258_v45 = vadd.f32 %v257_v44, %v255_v36  ;;  %v270_v47 = vadd.f32 %v269_v43, %v267_v38 }
 0x103   :  { %v259_v48 = vrot.slane %v258_v45, 4  ;;  %v271_v49 = vadd.f32 %v270_v47, %v268_v46 }
 0x105   :  { %v260_v51 = vadd.f32 %v259_v48, %v258_v45  ;;  %v272_v52 = vrot.slane %v271_v49, 4 }
 0x107   :  { %v261_v53 = vrot.slane %v260_v51, 2  ;;  %v273_v54 = vadd.f32 %v272_v52, %v271_v49 }
 0x109   :  { %v262_v56 = vadd.f32 %v261_v53, %v260_v51  ;;  %v274_v57 = vrot.slane %v273_v54, 2 }
 0x10b   :  { %v263_v58 = vrot.slane %v262_v56, 1  ;;  %v275_v59 = vadd.f32 %v274_v57, %v273_v54 }
 0x10d   :  { %v264_v60 = vadd.f32 %v263_v58, %v262_v56  ;;  %v276_v61 = vrot.slane %v275_v59, 1 }
 0x10f   :  { %v277_v62 = vadd.f32 %v276_v61, %v275_v59  ;;  %v281_v63 = vsel %vm280_vm0, %v264_v60, 0.0 }
 0x111   :  { %v283_v0 = vsel %vm282_vm1, %v277_v62, %v281_v63 }
 0x112   :  { %284 = vst [vmem:[%s520_s4] sm:$0xff] %v283_v0 }

// kernel: _lambda_.27
= control target key start
LH: loop header
LB: loop body
LE: loop exit
PB: predicated region body
PF: predicated region fallthrough
CT: control target
= control target key end

     0   :  { %s97_s0 = inlined_call_operand.vmem [shape: bf16[16,128], index: 0, kind: input, shape index: {}]   ;;  %s98_s1 = inlined_call_operand.vmem [shape: f32[1,128], index: 1, kind: input, shape index: {}]   ;;  %s99_s2 = inlined_call_operand.vmem [shape: f32[1,128], index: 2, kind: input, shape index: {}]   ;;  %s100_s3 = inlined_call_operand.vmem [shape: bf16[16,128], index: 3, kind: output, shape index: {}]  }
   0x1   :  { %v57_v0 = vld [vmem:[%s97_s0] sm:$0xff]  }
   0x2   :  { %v50_v1 = vld [vmem:[%s98_s1] ss:$0 sm:$0xff]  ;;  %v58_v2 = vunpack.c.l.bf16 %v57_v0  ;;  %v59_v3 = vunpack.c.h.bf16 %v57_v0 }
   0x3   :  { %v51_v4 = vld [vmem:[%s99_s2] ss:$0 sm:$0xff] }
   0x4   :  { %v25_v5 = vmul.f32 %v58_v2, %v50_v1  ;;  %v26_v6 = vmul.f32 %v59_v3, %v50_v1 }
   0x6   :  { %v34_v7 = vadd.f32 %v51_v4, %v25_v5  ;;  %v35_v8 = vadd.f32 %v51_v4, %v26_v6 }
   0x8   :  { %v63_v9 = vpack.c.bf16 %v35_v8, %v34_v7 }
   0xa   :  { %64 = vst [vmem:[%s100_s3] sm:$0xff] %v63_v9  }

// kernel: _lambda_.26
= control target key start
LH: loop header
LB: loop body
LE: loop exit
PB: predicated region body
PF: predicated region fallthrough
CT: control target
= control target key end

     0   :  { %v587_v51 = vmov 0.0   ;;  %v406_v53 = vlaneseq  ;;  %s730_s1 = inlined_call_operand.vmem [shape: bf16[512,128], index: 1, kind: input, shape index: {}]   ;;  %s731_s0 = inlined_call_operand.vmem [shape: bf16[16,512], index: 0, kind: input, shape index: {}]   ;;  %s732_s2 = inlined_call_operand.vmem [shape: f32[1,128], index: 2, kind: input, shape index: {}]   ;;  %s733_s3 = inlined_call_operand.vmem [shape: bf16[16,128], index: 3, kind: output, shape index: {0}]   ;;  %s734_s4 = inlined_call_operand.vmem [shape: f32[1,8,128], index: 4, kind: output, shape index: {1}]  }
   0x1   :  { %v549_v0 = vld [vmem:[%s730_s1 + $0x40] sm:$0xff]   ;;  %v553_v4 = vld [vmem:[%s730_s1 + $0x48] sm:$0xff]   ;;  %v557_v8 = vld [vmem:[%s730_s1 + $0x50] sm:$0xff]  }
   0x2   :  { %v550_v1 = vld [vmem:[%s730_s1 + $0xc0] sm:$0xff]   ;;  %504 = vmatprep.subr.bf16.mxu0 %v549_v0  ;;  %v554_v5 = vld [vmem:[%s730_s1 + $0xc8] sm:$0xff]   ;;  %v558_v9 = vld [vmem:[%s730_s1 + $0xd0] sm:$0xff]   ;;  %v407_v58 = vshrl.u32 %v406_v53, 7 }
   0x3   :  { %v551_v2 = vld [vmem:[%s730_s1] sm:$0xff]   ;;  %526 = vmatprep.subr.bf16.mxu1 %v550_v1  ;;  %v555_v6 = vld [vmem:[%s730_s1 + $0x8] sm:$0xff]   ;;  %v559_v10 = vld [vmem:[%s730_s1 + $0x10] sm:$0xff]  }
   0x4   :  { %v552_v3 = vld [vmem:[%s730_s1 + $0x80] sm:$0xff]   ;;  %505 = vmatpush3.bf16.msra.mxu0 %v551_v2  ;;  %v556_v7 = vld [vmem:[%s730_s1 + $0x88] sm:$0xff]   ;;  %v560_v11 = vld [vmem:[%s730_s1 + $0x90] sm:$0xff]   ;;  %vm436_vm0 = vcmp.eq.s32.totalorder %v407_v58, 0  ;;  %vm438_vm1 = vcmp.eq.s32.totalorder %v407_v58, 1 }
   0x5   :  { %527 = vmatpush3.bf16.msra.mxu1 %v552_v3  ;;  %506 = vmatprep.subr.bf16.mxu0 %v553_v4  ;;  %v561_v12 = vld [vmem:[%s730_s1 + $0x58] sm:$0xff]   ;;  %v565_v16 = vld [vmem:[%s730_s1 + $0x60] sm:$0xff]   ;;  %v569_v20 = vld [vmem:[%s730_s1 + $0x68] sm:$0xff]  }
   0x6   :  { %528 = vmatprep.subr.bf16.mxu1 %v554_v5  ;;  %v562_v13 = vld [vmem:[%s730_s1 + $0xd8] sm:$0xff]   ;;  %v566_v17 = vld [vmem:[%s730_s1 + $0xe0] sm:$0xff]   ;;  %v570_v21 = vld [vmem:[%s730_s1 + $0xe8] sm:$0xff]  }
   0x7   :  { %v563_v14 = vld [vmem:[%s730_s1 + $0x18] sm:$0xff]   ;;  %v567_v18 = vld [vmem:[%s730_s1 + $0x20] sm:$0xff]   ;;  %v571_v22 = vld [vmem:[%s730_s1 + $0x28] sm:$0xff]  }
   0x8   :  { %507 = vmatpush3.bf16.msra.mxu0 %v555_v6  ;;  %v564_v15 = vld [vmem:[%s730_s1 + $0x98] sm:$0xff]   ;;  %v568_v19 = vld [vmem:[%s730_s1 + $0xa0] sm:$0xff]   ;;  %v572_v23 = vld [vmem:[%s730_s1 + $0xa8] sm:$0xff]  }
   0x9   :  { %529 = vmatpush3.bf16.msra.mxu1 %v556_v7  ;;  %508 = vmatprep.subr.bf16.mxu0 %v557_v8  ;;  %v573_v24 = vld [vmem:[%s730_s1 + $0x70] sm:$0xff]   ;;  %v577_v28 = vld [vmem:[%s730_s1 + $0x78] sm:$0xff]   ;;  %v495_v45 = vld [vmem:[%s732_s2] ss:$0 sm:$0xff] }
   0xa   :  { %530 = vmatprep.subr.bf16.mxu1 %v558_v9  ;;  %v574_v25 = vld [vmem:[%s730_s1 + $0xf0] sm:$0xff]   ;;  %v578_v29 = vld [vmem:[%s730_s1 + $0xf8] sm:$0xff]  }
   0xb   :  { %v575_v26 = vld [vmem:[%s730_s1 + $0x30] sm:$0xff]   ;;  %v579_v30 = vld [vmem:[%s730_s1 + $0x38] sm:$0xff]  }
   0xc   :  { %509 = vmatpush3.bf16.msra.mxu0 %v559_v10  ;;  %v576_v27 = vld [vmem:[%s730_s1 + $0xb0] sm:$0xff]   ;;  %v580_v31 = vld [vmem:[%s730_s1 + $0xb8] sm:$0xff]  }
   0xd   :  { %531 = vmatpush3.bf16.msra.mxu1 %v560_v11  ;;  %510 = vmatprep.subr.bf16.mxu0 %v561_v12  ;;  %v581_v32 = vld [vmem:[%s731_s0] ss:$16 sps:$4 sm:$0xff]   ;;  %v583_v33 = vld [vmem:[%s731_s0 + $0x4] ss:$16 sps:$4 sm:$0xff]   ;;  %v584_v34 = vld [vmem:[%s731_s0 + $0x8] ss:$16 sps:$4 sm:$0xff]  }
   0xe   :  { %532 = vmatprep.subr.bf16.mxu1 %v562_v13  ;;  %v586_v35 = vld [vmem:[%s731_s0 + $0xc] ss:$16 sps:$4 sm:$0xff]   ;;  %338 = vmatprep.mubr.bf16.mxu0 %v583_v33 }
   0xf   :  { %379 = vmatprep.mubr.bf16.mxu1 %v586_v35 }
  0x10   :  { %511 = vmatpush3.bf16.msra.mxu0 %v563_v14 }
  0x11   :  { %533 = vmatpush3.bf16.msra.mxu1 %v564_v15  ;;  %512 = vmatprep.subr.bf16.mxu0 %v565_v16 }
  0x12   :  { %534 = vmatprep.subr.bf16.mxu1 %v566_v17 }
  0x14   :  { %513 = vmatpush3.bf16.msra.mxu0 %v567_v18 }
  0x15   :  { %535 = vmatpush3.bf16.msra.mxu1 %v568_v19  ;;  %514 = vmatprep.subr.bf16.mxu0 %v569_v20 }
  0x16   :  { %536 = vmatprep.subr.bf16.mxu1 %v570_v21 }
  0x18   :  { %515 = vmatpush3.bf16.msra.mxu0 %v571_v22 }
  0x19   :  { %537 = vmatpush3.bf16.msra.mxu1 %v572_v23  ;;  %516 = vmatprep.subr.bf16.mxu0 %v573_v24 }
  0x1a   :  { %538 = vmatprep.subr.bf16.mxu1 %v574_v25 }
  0x1c   :  { %517 = vmatpush3.bf16.msra.mxu0 %v575_v26 }
  0x1d   :  { %539 = vmatpush3.bf16.msra.mxu1 %v576_v27  ;;  %518 = vmatprep.subr.bf16.mxu0 %v577_v28 }
  0x1e   :  { %540 = vmatprep.subr.bf16.mxu1 %v578_v29 }
  0x20   :  { %519 = vmatpush3.bf16.msra.mxu0 %v579_v30 }
  0x21   :  { %541 = vmatpush3.bf16.msra.mxu1 %v580_v31 }
  0x23   :  { %339 = vmatmul.mubr.bf16.vlgmr.msra.gmra.mrb[0].mxu0 %v581_v32 }
  0x24   :  { %380 = vmatmul.mubr.bf16.vlgmr.msra.gmra.mrb[0].mxu1 %v584_v34 }
  0xf6   :  { %v520_v36 = vpop.f32.mrb[0].mxu0 }
  0xf7   :  { %v542_v37 = vpop.f32.mrb[0].mxu1  ;;  %v521_v38 = vpop.f32.mrb[1].mxu0 }
  0xf8   :  { %v522_v39 = vadd.f32 %v521_v38, %v520_v36  ;;  %v543_v40 = vpop.f32.mrb[1].mxu1  ;;  %v523_v41 = vpop.f32.mrb[2].mxu0 }
  0xf9   :  { %v544_v42 = vadd.f32 %v543_v40, %v542_v37  ;;  %v545_v43 = vpop.f32.mrb[2].mxu1  ;;  %v524_v44 = vpop.f32.mrb[3].mxu0 }
  0xfa   :  { %v546_v46 = vpop.f32.mrb[3].mxu1 }
  0xfb   :  { %v382_v47 = vadd.f32 %v544_v42, %v522_v39 }
  0xfd   :  { %v404_v48 = vadd.f32 %v495_v45, %v382_v47 }
  0xff   :  { %v421_v49 = vrot.slane %v404_v48, 4  ;;  %v427_v50 = vmul.f32 %v404_v48, %v404_v48  ;;  %v502_v52 = vpack.c.bf16 %v587_v51, %v404_v48 }
 0x101   :  { %v422_v54 = vadd.f32 %v421_v49, %v404_v48  ;;  %v430_v55 = vrot.slane %v427_v50, 4  ;;  %503 = vst [vmem:[%s733_s3] sm:$0xff] %v502_v52  }
 0x103   :  { %v423_v56 = vrot.slane %v422_v54, 2  ;;  %v431_v57 = vadd.f32 %v430_v55, %v427_v50 }
 0x105   :  { %v424_v59 = vadd.f32 %v423_v56, %v422_v54  ;;  %v432_v60 = vrot.slane %v431_v57, 2 }
 0x107   :  { %v425_v61 = vrot.slane %v424_v59, 1  ;;  %v433_v62 = vadd.f32 %v432_v60, %v431_v57 }
 0x109   :  { %v426_v63 = vadd.f32 %v425_v61, %v424_v59  ;;  %v434_v0 = vrot.slane %v433_v62, 1 }
 0x10b   :  { %v435_v1 = vadd.f32 %v434_v0, %v433_v62  ;;  %v437_v2 = vsel %vm436_vm0, %v426_v63, 0.0 }
 0x10d   :  { %v439_v3 = vsel %vm438_vm1, %v435_v1, %v437_v2 }
 0x10e   :  { %440 = vst [vmem:[%s734_s4] sm:$0xff] %v439_v3 }

// kernel: _lambda_.30
= control target key start
LH: loop header
LB: loop body
LE: loop exit
PB: predicated region body
PF: predicated region fallthrough
CT: control target
= control target key end

     0   :  { %v49_v0 = vmov 0.0   ;;  %vm19_vm0 = vcmask 1043456   ;;  %s86_s1 = inlined_call_operand.vmem [shape: f32[1,128], index: 1, kind: output, shape index: {0}]   ;;  %s87_s2 = inlined_call_operand.vmem [shape: f32[1,128], index: 2, kind: output, shape index: {1}]   ;;  %s88_s0 = inlined_call_operand.vmem [shape: bf16[4,128], index: 0, kind: input, shape index: {}]  }
   0x1   :  { %14 = vst [vmem:[%s86_s1] sm:$0x1] %v49_v0  ;;  %15 = vst [vmem:[%s87_s2] sm:$0x1] %v49_v0  ;;  %v16_v1 = vld [vmem:[%s88_s0] sm:$0x3] }
   0x2   :  { %v17_v2 = vunpack.c.l.bf16 %v16_v1 }
   0x4   :  { %v20_v3 = vsel %vm19_vm0, %v17_v2, 0.0  ;;  %v30_v4 = vmul.f32 %v17_v2, %v17_v2 }
   0x5   :  { %v21_v5 = vrot.slane %v20_v3, 4 }
   0x6   :  { %v31_v6 = vsel %vm19_vm0, %v30_v4, 0.0 }
   0x7   :  { %v22_v7 = vadd.f32 %v21_v5, %v20_v3  ;;  %v32_v8 = vrot.slane %v31_v6, 4 }
   0x8   :  { %v18_v15 = vld [vmem:[%s86_s1] sm:$0x1] }
   0x9   :  { %v23_v9 = vrot.slane %v22_v7, 2  ;;  %v33_v10 = vadd.f32 %v32_v8, %v31_v6  ;;  %v29_v18 = vld [vmem:[%s87_s2] sm:$0x1] }
   0xb   :  { %v24_v11 = vadd.f32 %v23_v9, %v22_v7  ;;  %v34_v12 = vrot.slane %v33_v10, 2 }
   0xd   :  { %v25_v13 = vrot.slane %v24_v11, 1  ;;  %v35_v14 = vadd.f32 %v34_v12, %v33_v10 }
   0xf   :  { %v26_v16 = vadd.f32 %v25_v13, %v24_v11  ;;  %v36_v17 = vrot.slane %v35_v14, 1 }
  0x11   :  { %v27_v19 = vadd.f32 %v26_v16, %v18_v15  ;;  %v37_v20 = vadd.f32 %v36_v17, %v35_v14 }
  0x13   :  { %28 = vst [vmem:[%s86_s1] sm:$0x1] %v27_v19  ;;  %v38_v21 = vadd.f32 %v37_v20, %v29_v18 }
  0x15   :  { %39 = vst [vmem:[%s87_s2] sm:$0x1] %v38_v21 }

// kernel: _lambda_.29
= control target key start
LH: loop header
LB: loop body
LE: loop exit
PB: predicated region body
PF: predicated region fallthrough
CT: control target
= control target key end

     0   :  { %s1092_s12 = smov 0   ;;  %s1094_s13 = smov 0   ;;  %s1287_s0 = inlined_call_operand.vmem [shape: bf16[16,128], index: 0, kind: input, shape index: {}]   ;;  %s1288_s1 = inlined_call_operand.vmem [shape: bf16[128,1024], index: 1, kind: input, shape index: {}]   ;;  %s1289_s2 = inlined_call_operand.vmem [shape: f32[1,1024], index: 2, kind: input, shape index: {}]   ;;  %s1290_s3 = inlined_call_operand.vmem [shape: bf16[16,1024], index: 3, kind: output, shape index: {}]  }
   0x1   :  { %s1096_s14 = smov 0   ;;  %s1098_s15 = smov 0  }
   0x2   :  { %s1100_s16 = smov 0  }
   0x3 LB: > { %s28_s17 = sadd.s32 1, %s1064_s15  ;;  %s879_s18 = sadd.s32 4294967295, %s1068_s16   ;;  %s1068_s16 = sphi %s1100_s16, %s13_s16   ;;  %s1064_s15 = sphi %s1098_s15, %s1295_s15   ;;  %s1060_s14 = sphi %s1096_s14, %s1294_s14   ;;  %s1056_s13 = sphi %s1094_s13, %s1293_s13   ;;  %s1052_s12 = sphi %s1092_s12, %s1292_s12  }
   0x4   : > { %p30_p0 = scmp.ge.s32.totalorder %s28_s17, 2  ;;  %p76_p1 = scmp.ne.s32.totalorder %s1056_s13, %s1052_s12 }
   0x5   : > { %p77_p2 = scmp.eq.s32.totalorder %s1068_s16, 0  ;;  %p134_p4 = scmp.eq.s32.totalorder %s879_s18, 1 }
   0x6   : > { %s1297_s17 = smov (%p30_p0, %s28_s17), 0  ;;  %s69_s20 = sadd.s32 1, %s1056_s13 }
   0x7   : > { %p78_p3 = por %p77_p2, %p76_p1  ;;  %s65_s19 = ssub.s32 %s1064_s15, %s1297_s17 }
   0x8   : > { %p67_p5 = scmp.eq.s32.totalorder %s65_s19, 0  ;;  %p1127_p6 = por %p134_p4, %p76_p1 }
   0x9   : > { %p883_p7 = scmp.ge.s32.totalorder %s1068_s16, 2 }
   0xa   : > { %s1132_s22 = scalar_select %p67_p5, %s1056_s13, %s69_s20  }
   0xb   : > { %168 = sbr.rel (%p883_p7) target bundleno = 38 (0x26), region = 20 }
  0x12   : > { %171 = sbr.rel (!%p78_p3) target bundleno = 38 (0x26), region = 24  ;;  %s173_s23 = sand.u32 (%p78_p3), 1, %s1056_s13  }
  0x13   : > { %s933_s24 = sshll.u32 (%p78_p3), %s1064_s15, 4  ;;  %s884_s25 = sshll.u32 (%p78_p3), %s173_s23, 8 }
  0x14   : > { %s1140_s28 = scalar_lea.vmem (%p78_p3), %s1288_s1, %s933_s24  ;;  %s1145_s29 = scalar_lea.vmem (%p78_p3), [#allocation3], %s884_s25 }
  0x15   : > { %v194_v0 = vld [vmem:[%s1140_s28] sm:$0xff] (%p78_p3)  ;;  %v196_v1 = vld [vmem:[%s1140_s28 + $0x8] sm:$0xff] (%p78_p3) }
  0x16   : > { %v198_v2 = vld [vmem:[%s1140_s28 + $0x20] sm:$0xff] (%p78_p3)  ;;  %195 = vst [vmem:[%s1145_s29] sm:$0xff] (%p78_p3), %v194_v0  ;;  %197 = vst [vmem:[%s1145_s29 + $0x8] sm:$0xff] (%p78_p3), %v196_v1  ;;  %v200_v3 = vld [vmem:[%s1140_s28 + $0x28] sm:$0xff] (%p78_p3) }
  0x17   : > { %199 = vst [vmem:[%s1145_s29 + $0x10] sm:$0xff] (%p78_p3), %v198_v2  ;;  %v202_v4 = vld [vmem:[%s1140_s28 + $0x40] sm:$0xff] (%p78_p3)  ;;  %v204_v5 = vld [vmem:[%s1140_s28 + $0x48] sm:$0xff] (%p78_p3)  ;;  %201 = vst [vmem:[%s1145_s29 + $0x18] sm:$0xff] (%p78_p3), %v200_v3 }
  0x18   : > { %203 = vst [vmem:[%s1145_s29 + $0x20] sm:$0xff] (%p78_p3), %v202_v4  ;;  %205 = vst [vmem:[%s1145_s29 + $0x28] sm:$0xff] (%p78_p3), %v204_v5  ;;  %v206_v6 = vld [vmem:[%s1140_s28 + $0x60] sm:$0xff] (%p78_p3)  ;;  %v208_v7 = vld [vmem:[%s1140_s28 + $0x68] sm:$0xff] (%p78_p3) }
  0x19   : > { %v210_v8 = vld [vmem:[%s1140_s28 + $0x80] sm:$0xff]  ;;  %207 = vst [vmem:[%s1145_s29 + $0x30] sm:$0xff] %v206_v6  ;;  %209 = vst [vmem:[%s1145_s29 + $0x38] sm:$0xff] %v208_v7  ;;  %v212_v9 = vld [vmem:[%s1140_s28 + $0x88] sm:$0xff] }
  0x1a   : > { %211 = vst [vmem:[%s1145_s29 + $0x40] sm:$0xff] %v210_v8  ;;  %v214_v10 = vld [vmem:[%s1140_s28 + $0xa0] sm:$0xff]  ;;  %v216_v11 = vld [vmem:[%s1140_s28 + $0xa8] sm:$0xff]  ;;  %213 = vst [vmem:[%s1145_s29 + $0x48] sm:$0xff] %v212_v9 }
  0x1b   : > { %215 = vst [vmem:[%s1145_s29 + $0x50] sm:$0xff] %v214_v10  ;;  %217 = vst [vmem:[%s1145_s29 + $0x58] sm:$0xff] %v216_v11  ;;  %v218_v12 = vld [vmem:[%s1140_s28 + $0xc0] sm:$0xff]  ;;  %v220_v13 = vld [vmem:[%s1140_s28 + $0xc8] sm:$0xff] }
  0x1c   : > { %v222_v14 = vld [vmem:[%s1140_s28 + $0xe0] sm:$0xff]  ;;  %219 = vst [vmem:[%s1145_s29 + $0x60] sm:$0xff] %v218_v12  ;;  %221 = vst [vmem:[%s1145_s29 + $0x68] sm:$0xff] %v220_v13  ;;  %v224_v15 = vld [vmem:[%s1140_s28 + $0xe8] sm:$0xff] }
  0x1d   : > { %223 = vst [vmem:[%s1145_s29 + $0x70] sm:$0xff] %v222_v14  ;;  %v226_v16 = vld [vmem:[%s1140_s28 + $0x100] sm:$0xff]  ;;  %v228_v17 = vld [vmem:[%s1140_s28 + $0x108] sm:$0xff]  ;;  %225 = vst [vmem:[%s1145_s29 + $0x78] sm:$0xff] %v224_v15 }
  0x1e   : > { %227 = vst [vmem:[%s1145_s29 + $0x80] sm:$0xff] %v226_v16  ;;  %229 = vst [vmem:[%s1145_s29 + $0x88] sm:$0xff] %v228_v17  ;;  %v230_v18 = vld [vmem:[%s1140_s28 + $0x120] sm:$0xff]  ;;  %v232_v19 = vld [vmem:[%s1140_s28 + $0x128] sm:$0xff] }
  0x1f   : > { %v234_v20 = vld [vmem:[%s1140_s28 + $0x140] sm:$0xff]  ;;  %231 = vst [vmem:[%s1145_s29 + $0x90] sm:$0xff] %v230_v18  ;;  %233 = vst [vmem:[%s1145_s29 + $0x98] sm:$0xff] %v232_v19  ;;  %v236_v21 = vld [vmem:[%s1140_s28 + $0x148] sm:$0xff] }
  0x20   : > { %235 = vst [vmem:[%s1145_s29 + $0xa0] sm:$0xff] %v234_v20  ;;  %v238_v22 = vld [vmem:[%s1140_s28 + $0x160] sm:$0xff]  ;;  %v240_v23 = vld [vmem:[%s1140_s28 + $0x168] sm:$0xff]  ;;  %237 = vst [vmem:[%s1145_s29 + $0xa8] sm:$0xff] %v236_v21 }
  0x21   : > { %239 = vst [vmem:[%s1145_s29 + $0xb0] sm:$0xff] %v238_v22  ;;  %241 = vst [vmem:[%s1145_s29 + $0xb8] sm:$0xff] %v240_v23  ;;  %v242_v24 = vld [vmem:[%s1140_s28 + $0x180] sm:$0xff]  ;;  %v244_v25 = vld [vmem:[%s1140_s28 + $0x188] sm:$0xff] }
  0x22   : > { %v246_v26 = vld [vmem:[%s1140_s28 + $0x1a0] sm:$0xff]  ;;  %243 = vst [vmem:[%s1145_s29 + $0xc0] sm:$0xff] %v242_v24  ;;  %245 = vst [vmem:[%s1145_s29 + $0xc8] sm:$0xff] %v244_v25  ;;  %v248_v27 = vld [vmem:[%s1140_s28 + $0x1a8] sm:$0xff] }
  0x23   : > { %247 = vst [vmem:[%s1145_s29 + $0xd0] sm:$0xff] %v246_v26  ;;  %v250_v28 = vld [vmem:[%s1140_s28 + $0x1c0] sm:$0xff]  ;;  %v252_v29 = vld [vmem:[%s1140_s28 + $0x1c8] sm:$0xff]  ;;  %249 = vst [vmem:[%s1145_s29 + $0xd8] sm:$0xff] %v248_v27 }
  0x24   : > { %251 = vst [vmem:[%s1145_s29 + $0xe0] sm:$0xff] %v250_v28  ;;  %253 = vst [vmem:[%s1145_s29 + $0xe8] sm:$0xff] %v252_v29  ;;  %v254_v30 = vld [vmem:[%s1140_s28 + $0x1e0] sm:$0xff]  ;;  %v256_v31 = vld [vmem:[%s1140_s28 + $0x1e8] sm:$0xff] }
  0x25   : > { %255 = vst [vmem:[%s1145_s29 + $0xf0] sm:$0xff] %v254_v30  ;;  %257 = vst [vmem:[%s1145_s29 + $0xf8] sm:$0xff] %v256_v31 }
  0x26 PF: > { %p887_p8 = scmp.ge.s32.totalorder %s1068_s16, 1  ;;  %p270_p9 = scmp.lt.s32.totalorder %s1068_s16, 3 }
  0x28   : > { %p271_p10 = pnand %p887_p8, %p270_p9 }
  0x29   : > { %s277_s30 = sand.u32 (!%p271_p10), 1, %s1052_s12   ;;  %v1070_v32 = vmov (!%p271_p10), 0   ;;  %v1029_v1 = vld [vmem:[%s1287_s0] sm:$0xff] (!%p271_p10)   ;;  %v1071_v2 = vmov (!%p271_p10), 0.0|0.0   ;;  %s890_s10 = sshll.u32 (!%p271_p10), %s1060_s14, 2  ;;  %v666_v3 = vlaneseq (!%p271_p10) }
  0x2a   : > { %274 = sbr.rel (%p271_p10) target bundleno = 304 (0x130), region = 51  ;;  %s888_s4 = sshll.u32 (!%p271_p10), %s277_s30, 8  ;;  %583 = vmatprep.mubr.bf16.mxu0 (!%p271_p10), %v1070_v32  ;;  %626 = vmatprep.mubr.bf16.mxu1 (!%p271_p10), %v1070_v32 }
  0x2b   : > { %s1213_s5 = scalar_lea.vmem (!%p271_p10), [#allocation3], %s888_s4  ;;  %s889_s8 = sshll.u32 (!%p271_p10), %s277_s30, 5  ;;  %v667_v4 = vshrl.u32 (!%p271_p10), %v666_v3, 7 }
  0x2c   : > { %v981_v33 = vld [vmem:[%s1213_s5 + $0x4] ss:$16 sps:$4 sm:$0xff] (!%p271_p10)   ;;  %v983_v34 = vld [vmem:[%s1213_s5 + $0xc] ss:$16 sps:$4 sm:$0xff] (!%p271_p10)   ;;  %v985_v35 = vld [vmem:[%s1213_s5] ss:$16 sps:$4 sm:$0xff] (!%p271_p10)  }
  0x2d   : > { %551 = vmatprep.subr.bf16.mxu0 (!%p271_p10), %v981_v33  ;;  %v986_v36 = vld [vmem:[%s1213_s5 + $0x8] ss:$16 sps:$4 sm:$0xff] (!%p271_p10)   ;;  %594 = vmatprep.subr.bf16.mxu1 (!%p271_p10), %v983_v34  ;;  %v987_v37 = vld [vmem:[%s1213_s5 + $0x24] ss:$16 sps:$4 sm:$0xff] (!%p271_p10)   ;;  %v989_v38 = vld [vmem:[%s1213_s5 + $0x2c] ss:$16 sps:$4 sm:$0xff] (!%p271_p10)  }
  0x2e   : > { %552 = vmatpush1.bf16.msra.mxu0 (!%p271_p10), %v985_v35  ;;  %595 = vmatpush1.bf16.msra.mxu1 (!%p271_p10), %v986_v36  ;;  %v991_v39 = vld [vmem:[%s1213_s5 + $0x20] ss:$16 sps:$4 sm:$0xff] (!%p271_p10)   ;;  %v992_v40 = vld [vmem:[%s1213_s5 + $0x28] ss:$16 sps:$4 sm:$0xff] (!%p271_p10)   ;;  %v993_v41 = vld [vmem:[%s1213_s5 + $0x44] ss:$16 sps:$4 sm:$0xff] (!%p271_p10)  }
  0x2f   : > { %553 = vmatprep.subr.bf16.mxu0 (!%p271_p10), %v987_v37  ;;  %596 = vmatprep.subr.bf16.mxu1 (!%p271_p10), %v989_v38  ;;  %v995_v42 = vld [vmem:[%s1213_s5 + $0x4c] ss:$16 sps:$4 sm:$0xff] (!%p271_p10)   ;;  %v997_v43 = vld [vmem:[%s1213_s5 + $0x40] ss:$16 sps:$4 sm:$0xff] (!%p271_p10)   ;;  %v998_v44 = vld [vmem:[%s1213_s5 + $0x48] ss:$16 sps:$4 sm:$0xff] (!%p271_p10)  }
  0x30   : > { %v999_v45 = vld [vmem:[%s1213_s5 + $0x64] ss:$16 sps:$4 sm:$0xff] (!%p271_p10)   ;;  %v1001_v46 = vld [vmem:[%s1213_s5 + $0x6c] ss:$16 sps:$4 sm:$0xff] (!%p271_p10)   ;;  %v1003_v47 = vld [vmem:[%s1213_s5 + $0x60] ss:$16 sps:$4 sm:$0xff] (!%p271_p10)  }
  0x31   : > { %v1004_v48 = vld [vmem:[%s1213_s5 + $0x68] ss:$16 sps:$4 sm:$0xff]   ;;  %v1005_v49 = vld [vmem:[%s1213_s5 + $0x84] ss:$16 sps:$4 sm:$0xff]   ;;  %v1007_v50 = vld [vmem:[%s1213_s5 + $0x8c] ss:$16 sps:$4 sm:$0xff]  }
  0x32   : > { %554 = vmatpush1.bf16.msra.mxu0 %v991_v39  ;;  %597 = vmatpush1.bf16.msra.mxu1 %v992_v40  ;;  %v1009_v51 = vld [vmem:[%s1213_s5 + $0x80] ss:$16 sps:$4 sm:$0xff]   ;;  %v1010_v52 = vld [vmem:[%s1213_s5 + $0x88] ss:$16 sps:$4 sm:$0xff]   ;;  %v1011_v53 = vld [vmem:[%s1213_s5 + $0xa4] ss:$16 sps:$4 sm:$0xff]  }
  0x33   : > { %555 = vmatprep.subr.bf16.mxu0 %v993_v41  ;;  %598 = vmatprep.subr.bf16.mxu1 %v995_v42  ;;  %v1013_v54 = vld [vmem:[%s1213_s5 + $0xac] ss:$16 sps:$4 sm:$0xff]   ;;  %v1015_v55 = vld [vmem:[%s1213_s5 + $0xa0] ss:$16 sps:$4 sm:$0xff]   ;;  %v1016_v56 = vld [vmem:[%s1213_s5 + $0xa8] ss:$16 sps:$4 sm:$0xff]  }
  0x34   : > { %v1017_v57 = vld [vmem:[%s1213_s5 + $0xc4] ss:$16 sps:$4 sm:$0xff]   ;;  %v1019_v58 = vld [vmem:[%s1213_s5 + $0xcc] ss:$16 sps:$4 sm:$0xff]   ;;  %v1021_v59 = vld [vmem:[%s1213_s5 + $0xc0] ss:$16 sps:$4 sm:$0xff]  }
  0x35   : > { %v1022_v60 = vld [vmem:[%s1213_s5 + $0xc8] ss:$16 sps:$4 sm:$0xff]   ;;  %v1023_v61 = vld [vmem:[%s1213_s5 + $0xe4] ss:$16 sps:$4 sm:$0xff]   ;;  %v1025_v62 = vld [vmem:[%s1213_s5 + $0xec] ss:$16 sps:$4 sm:$0xff]  }
  0x36   : > { %556 = vmatpush1.bf16.msra.mxu0 %v997_v43  ;;  %599 = vmatpush1.bf16.msra.mxu1 %v998_v44  ;;  %v1027_v63 = vld [vmem:[%s1213_s5 + $0xe0] ss:$16 sps:$4 sm:$0xff]   ;;  %v1028_v0 = vld [vmem:[%s1213_s5 + $0xe8] ss:$16 sps:$4 sm:$0xff]   ;;  %s1252_s9 = scalar_lea.vmem [#allocation4], %s889_s8  ;;  %p323_p11 = scmp.lt.s32.totalorder %s890_s10, 7 }
  0x37   : > { %557 = vmatprep.subr.bf16.mxu0 %v999_v45  ;;  %600 = vmatprep.subr.bf16.mxu1 %v1001_v46  ;;  %740 = vst [vmem:[%s1252_s9 + $0x10] sm:$0xff] %v1071_v2  ;;  %741 = vst [vmem:[%s1252_s9 + $0x18] sm:$0xff] %v1071_v2  ;;  %v668_v5 = vsub.s32 0, %v667_v4  ;;  %v676_v6 = vsub.s32 2, %v667_v4  ;;  %v672_v8 = vsub.s32 1, %v667_v4  ;;  %v680_v9 = vsub.s32 3, %v667_v4 }
  0x38   : > { %s1299_s10 = smov (!%p323_p11, %s890_s10), 7  ;;  %vm700_vm0 = vcmp.lt.s32.totalorder %v667_v4, 2  ;;  %s938_s12 = sshll.u32 (%p1127_p6), %s1060_s14, 4 }
  0x39   : > { %s325_s19 = scalar_lea.vmem %s1289_s2, %s1299_s10  ;;  %s754_s24 = scalar_lea.vmem (%p1127_p6), %s1290_s3, %s938_s12 }
  0x3a   : > { %558 = vmatpush1.bf16.msra.mxu0 %v1003_v47  ;;  %601 = vmatpush1.bf16.msra.mxu1 %v1004_v48  ;;  %v664_v7 = vld [vmem:[%s325_s19] sm:$0xf] }
  0x3b   : > { %559 = vmatprep.subr.bf16.mxu0 %v1005_v49  ;;  %602 = vmatprep.subr.bf16.mxu1 %v1007_v50  ;;  %v669_v10 = vrot.slane %v664_v7, %v668_v5  ;;  %v677_v11 = vrot.slane %v664_v7, %v676_v6  ;;  %v673_v12 = vrot.slane %v664_v7, %v672_v8 }
  0x3c   : > { %v681_v13 = vrot.slane %v664_v7, %v680_v9 }
  0x3e   : > { %560 = vmatpush1.bf16.msra.mxu0 %v1009_v51  ;;  %603 = vmatpush1.bf16.msra.mxu1 %v1010_v52  ;;  %v771_v34 = vld [vmem:[%s1252_s9 + $0x10] sm:$0xff] (%p1127_p6)  ;;  %v773_v35 = vld [vmem:[%s1252_s9 + $0x18] sm:$0xff] (%p1127_p6) }
  0x3f   : > { %561 = vmatprep.subr.bf16.mxu0 %v1011_v53  ;;  %604 = vmatprep.subr.bf16.mxu1 %v1013_v54  ;;  %772 = vst [vmem:[%s754_s24 + $0x20] sm:$0xff] (%p1127_p6), %v771_v34  ;;  %774 = vst [vmem:[%s754_s24 + $0x28] sm:$0xff] (%p1127_p6), %v773_v35 }
  0x42   : > { %562 = vmatpush1.bf16.msra.mxu0 %v1015_v55  ;;  %605 = vmatpush1.bf16.msra.mxu1 %v1016_v56 }
  0x43   : > { %563 = vmatprep.subr.bf16.mxu0 %v1017_v57  ;;  %606 = vmatprep.subr.bf16.mxu1 %v1019_v58 }
  0x46   : > { %564 = vmatpush1.bf16.msra.mxu0 %v1021_v59  ;;  %607 = vmatpush1.bf16.msra.mxu1 %v1022_v60 }
  0x47   : > { %565 = vmatprep.subr.bf16.mxu0 %v1023_v61  ;;  %608 = vmatprep.subr.bf16.mxu1 %v1025_v62 }
  0x4a   : > { %566 = vmatpush1.bf16.msra.mxu0 %v1027_v63  ;;  %609 = vmatpush1.bf16.msra.mxu1 %v1028_v0 }
  0x4d   : > { %584 = vmatmul.mubr.bf16.vlgmr.msra.gmra.mrb[0].mxu0 %v1029_v1  ;;  %627 = vmatmul.mubr.bf16.vlgmr.msra.gmra.mrb[0].mxu1 %v1029_v1 }
 0x120   : > { %v585_v14 = vpop.f32.mrb[0].mxu0  ;;  %v628_v15 = vpop.f32.mrb[0].mxu1 }
 0x121   : > { %v686_v16 = vadd.f32 %v669_v10, %v585_v14  ;;  %v688_v17 = vadd.f32 %v677_v11, %v628_v15  ;;  %v587_v18 = vpop.f32.mrb[1].mxu0  ;;  %v630_v19 = vpop.f32.mrb[1].mxu1  ;;  %748 = sbr.rel (!%p1127_p6) target bundleno = 304 (0x130), region = 67 }
 0x122   : > { %v687_v20 = vadd.f32 %v673_v12, %v587_v18  ;;  %v689_v21 = vadd.f32 %v681_v13, %v630_v19  ;;  %v589_v22 = vpop.f32.mrb[2].mxu0  ;;  %v632_v23 = vpop.f32.mrb[2].mxu1 }
 0x123   : > { %v706_v24 = vsel %vm700_vm0, %v686_v16, 0.0  ;;  %v708_v25 = vsel %vm700_vm0, %v688_v17, 0.0  ;;  %v591_v26 = vpop.f32.mrb[3].mxu0  ;;  %v634_v27 = vpop.f32.mrb[3].mxu1 }
 0x124   : > { %v707_v28 = vsel %vm700_vm0, %v687_v20, 0.0  ;;  %v709_v29 = vsel %vm700_vm0, %v689_v21, 0.0 }
 0x125   : > { %v934_v30 = vpack.c.bf16 %v707_v28, %v706_v24  ;;  %v935_v31 = vpack.c.bf16 %v709_v29, %v708_v25 }
 0x127   : > { %738 = vst [vmem:[%s1252_s9] sm:$0xff] %v934_v30  ;;  %739 = vst [vmem:[%s1252_s9 + $0x8] sm:$0xff] %v935_v31 }
 0x12e   : > { %v767_v32 = vld [vmem:[%s1252_s9] sm:$0xff]  ;;  %v769_v33 = vld [vmem:[%s1252_s9 + $0x8] sm:$0xff] }
 0x12f   : > { %768 = vst [vmem:[%s754_s24] sm:$0xff] %v767_v32  ;;  %770 = vst [vmem:[%s754_s24 + $0x8] sm:$0xff] %v769_v33 }
 0x130 PF: > { %s13_s16 = sadd.s32 1, %s1068_s16   ;;  %s1292_s12 = smov %s1056_s13 }
 0x131   : > { %p10_p12 = scmp.ge.s32.totalorder %s13_s16, 4   ;;  %s1293_s13 = smov %s1132_s22 }
 0x132   : > { %s1294_s14 = smov %s1064_s15  ;;  %s1295_s15 = smov %s1297_s17 }
 0x133   :  { %12 = sbr.rel (!%p10_p12) target bundleno = 3 (0x3), region = 127 }

// kernel: _lambda_.28
= control target key start
LH: loop header
LB: loop body
LE: loop exit
PB: predicated region body
PF: predicated region fallthrough
CT: control target
= control target key end

     0   :  { %s1271_s1 = inlined_call_operand.vmem [shape: bf16[1024,128], index: 1, kind: input, shape index: {}]   ;;  %s1272_s0 = inlined_call_operand.vmem [shape: bf16[16,1024], index: 0, kind: input, shape index: {}]   ;;  %s1273_s2 = inlined_call_operand.vmem [shape: f32[1,128], index: 2, kind: input, shape index: {}]   ;;  %s1274_s3 = inlined_call_operand.vmem [shape: bf16[16,128], index: 3, kind: output, shape index: {}]  }
   0x1   :  { %v964_v0 = vld [vmem:[%s1271_s1 + $0x40] sm:$0xff]   ;;  %v968_v4 = vld [vmem:[%s1271_s1 + $0x48] sm:$0xff]   ;;  %v972_v8 = vld [vmem:[%s1271_s1 + $0x50] sm:$0xff]  }
   0x2   :  { %v965_v1 = vld [vmem:[%s1271_s1 + $0xc0] sm:$0xff]   ;;  %875 = vmatprep.subr.bf16.mxu0 %v964_v0  ;;  %v969_v5 = vld [vmem:[%s1271_s1 + $0xc8] sm:$0xff]   ;;  %v973_v9 = vld [vmem:[%s1271_s1 + $0xd0] sm:$0xff]  }
   0x3   :  { %v966_v2 = vld [vmem:[%s1271_s1] sm:$0xff]   ;;  %897 = vmatprep.subr.bf16.mxu1 %v965_v1  ;;  %v970_v6 = vld [vmem:[%s1271_s1 + $0x8] sm:$0xff]   ;;  %v974_v10 = vld [vmem:[%s1271_s1 + $0x10] sm:$0xff]  }
   0x4   :  { %v967_v3 = vld [vmem:[%s1271_s1 + $0x80] sm:$0xff]   ;;  %876 = vmatpush3.bf16.msra.mxu0 %v966_v2  ;;  %v971_v7 = vld [vmem:[%s1271_s1 + $0x88] sm:$0xff]   ;;  %v975_v11 = vld [vmem:[%s1271_s1 + $0x90] sm:$0xff]  }
   0x5   :  { %898 = vmatpush3.bf16.msra.mxu1 %v967_v3  ;;  %877 = vmatprep.subr.bf16.mxu0 %v968_v4  ;;  %v976_v12 = vld [vmem:[%s1271_s1 + $0x58] sm:$0xff]   ;;  %v980_v16 = vld [vmem:[%s1271_s1 + $0x60] sm:$0xff]   ;;  %v984_v20 = vld [vmem:[%s1271_s1 + $0x68] sm:$0xff]  }
   0x6   :  { %899 = vmatprep.subr.bf16.mxu1 %v969_v5  ;;  %v977_v13 = vld [vmem:[%s1271_s1 + $0xd8] sm:$0xff]   ;;  %v981_v17 = vld [vmem:[%s1271_s1 + $0xe0] sm:$0xff]   ;;  %v985_v21 = vld [vmem:[%s1271_s1 + $0xe8] sm:$0xff]  }
   0x7   :  { %v978_v14 = vld [vmem:[%s1271_s1 + $0x18] sm:$0xff]   ;;  %v982_v18 = vld [vmem:[%s1271_s1 + $0x20] sm:$0xff]   ;;  %v986_v22 = vld [vmem:[%s1271_s1 + $0x28] sm:$0xff]  }
   0x8   :  { %878 = vmatpush3.bf16.msra.mxu0 %v970_v6  ;;  %v979_v15 = vld [vmem:[%s1271_s1 + $0x98] sm:$0xff]   ;;  %v983_v19 = vld [vmem:[%s1271_s1 + $0xa0] sm:$0xff]   ;;  %v987_v23 = vld [vmem:[%s1271_s1 + $0xa8] sm:$0xff]  }
   0x9   :  { %900 = vmatpush3.bf16.msra.mxu1 %v971_v7  ;;  %879 = vmatprep.subr.bf16.mxu0 %v972_v8  ;;  %v988_v24 = vld [vmem:[%s1271_s1 + $0x70] sm:$0xff]   ;;  %v992_v28 = vld [vmem:[%s1271_s1 + $0x78] sm:$0xff]   ;;  %v24_v32 = vld [vmem:[%s1272_s0] sm:$0xff] }
   0xa   :  { %901 = vmatprep.subr.bf16.mxu1 %v973_v9  ;;  %v989_v25 = vld [vmem:[%s1271_s1 + $0xf0] sm:$0xff]   ;;  %v993_v29 = vld [vmem:[%s1271_s1 + $0xf8] sm:$0xff]   ;;  %v28_v33 = vld [vmem:[%s1272_s0 + $0x20] sm:$0xff] }
   0xb   :  { %v990_v26 = vld [vmem:[%s1271_s1 + $0x30] sm:$0xff]   ;;  %v994_v30 = vld [vmem:[%s1271_s1 + $0x38] sm:$0xff]   ;;  %v25_v34 = vld [vmem:[%s1272_s0 + $0x8] sm:$0xff]  ;;  %v794_v35 = vcombine.low %v24_v32, %v28_v33  ;;  %v795_v36 = vcombine.high %v24_v32, %v28_v33 }
   0xc   :  { %880 = vmatpush3.bf16.msra.mxu0 %v974_v10  ;;  %v991_v27 = vld [vmem:[%s1271_s1 + $0xb0] sm:$0xff]   ;;  %v995_v31 = vld [vmem:[%s1271_s1 + $0xb8] sm:$0xff]   ;;  %v29_v37 = vld [vmem:[%s1272_s0 + $0x28] sm:$0xff] }
   0xd   :  { %902 = vmatpush3.bf16.msra.mxu1 %v975_v11  ;;  %881 = vmatprep.subr.bf16.mxu0 %v976_v12  ;;  %v796_v38 = vcombine.low %v25_v34, %v29_v37  ;;  %v797_v39 = vcombine.high %v25_v34, %v29_v37  ;;  %v996_v40 = vld [vmem:[%s1271_s1 + $0x140] sm:$0xff]   ;;  %v1000_v44 = vld [vmem:[%s1271_s1 + $0x148] sm:$0xff]   ;;  %v1004_v48 = vld [vmem:[%s1271_s1 + $0x150] sm:$0xff]  }
   0xe   :  { %903 = vmatprep.subr.bf16.mxu1 %v977_v13  ;;  %616 = vmatprep.mubr.bf16.mxu0 %v795_v36  ;;  %v997_v41 = vld [vmem:[%s1271_s1 + $0x1c0] sm:$0xff]   ;;  %v1001_v45 = vld [vmem:[%s1271_s1 + $0x1c8] sm:$0xff]   ;;  %v1005_v49 = vld [vmem:[%s1271_s1 + $0x1d0] sm:$0xff]  }
   0xf   :  { %657 = vmatprep.mubr.bf16.mxu1 %v797_v39  ;;  %v998_v42 = vld [vmem:[%s1271_s1 + $0x100] sm:$0xff]   ;;  %v1002_v46 = vld [vmem:[%s1271_s1 + $0x108] sm:$0xff]   ;;  %v1006_v50 = vld [vmem:[%s1271_s1 + $0x110] sm:$0xff]  }
  0x10   :  { %882 = vmatpush3.bf16.msra.mxu0 %v978_v14  ;;  %v999_v43 = vld [vmem:[%s1271_s1 + $0x180] sm:$0xff]   ;;  %v1003_v47 = vld [vmem:[%s1271_s1 + $0x188] sm:$0xff]   ;;  %v1007_v51 = vld [vmem:[%s1271_s1 + $0x190] sm:$0xff]  }
  0x11   :  { %904 = vmatpush3.bf16.msra.mxu1 %v979_v15  ;;  %883 = vmatprep.subr.bf16.mxu0 %v980_v16  ;;  %v1008_v52 = vld [vmem:[%s1271_s1 + $0x158] sm:$0xff]   ;;  %v1012_v56 = vld [vmem:[%s1271_s1 + $0x160] sm:$0xff]   ;;  %v1016_v60 = vld [vmem:[%s1271_s1 + $0x168] sm:$0xff]  }
  0x12   :  { %905 = vmatprep.subr.bf16.mxu1 %v981_v17  ;;  %v1009_v53 = vld [vmem:[%s1271_s1 + $0x1d8] sm:$0xff]   ;;  %v1013_v57 = vld [vmem:[%s1271_s1 + $0x1e0] sm:$0xff]   ;;  %v1017_v61 = vld [vmem:[%s1271_s1 + $0x1e8] sm:$0xff]  }
  0x13   :  { %v1010_v54 = vld [vmem:[%s1271_s1 + $0x118] sm:$0xff]   ;;  %v1014_v58 = vld [vmem:[%s1271_s1 + $0x120] sm:$0xff]   ;;  %v1018_v62 = vld [vmem:[%s1271_s1 + $0x128] sm:$0xff]  }
  0x14   :  { %884 = vmatpush3.bf16.msra.mxu0 %v982_v18  ;;  %v1011_v55 = vld [vmem:[%s1271_s1 + $0x198] sm:$0xff]   ;;  %v1015_v59 = vld [vmem:[%s1271_s1 + $0x1a0] sm:$0xff]   ;;  %v1019_v63 = vld [vmem:[%s1271_s1 + $0x1a8] sm:$0xff]  }
  0x15   :  { %906 = vmatpush3.bf16.msra.mxu1 %v983_v19  ;;  %885 = vmatprep.subr.bf16.mxu0 %v984_v20  ;;  %v1020_v0 = vld [vmem:[%s1271_s1 + $0x170] sm:$0xff]   ;;  %v1024_v4 = vld [vmem:[%s1271_s1 + $0x178] sm:$0xff]  }
  0x16   :  { %907 = vmatprep.subr.bf16.mxu1 %v985_v21  ;;  %v1021_v1 = vld [vmem:[%s1271_s1 + $0x1f0] sm:$0xff]   ;;  %v1025_v5 = vld [vmem:[%s1271_s1 + $0x1f8] sm:$0xff]  }
  0x17   :  { %v1022_v2 = vld [vmem:[%s1271_s1 + $0x130] sm:$0xff]   ;;  %v1026_v6 = vld [vmem:[%s1271_s1 + $0x138] sm:$0xff]  }
  0x18   :  { %886 = vmatpush3.bf16.msra.mxu0 %v986_v22  ;;  %v1023_v3 = vld [vmem:[%s1271_s1 + $0x1b0] sm:$0xff]   ;;  %v1027_v7 = vld [vmem:[%s1271_s1 + $0x1b8] sm:$0xff]  }
  0x19   :  { %908 = vmatpush3.bf16.msra.mxu1 %v987_v23  ;;  %887 = vmatprep.subr.bf16.mxu0 %v988_v24  ;;  %v26_v8 = vld [vmem:[%s1272_s0 + $0x10] sm:$0xff]  ;;  %v27_v12 = vld [vmem:[%s1272_s0 + $0x18] sm:$0xff] }
  0x1a   :  { %909 = vmatprep.subr.bf16.mxu1 %v989_v25  ;;  %v30_v9 = vld [vmem:[%s1272_s0 + $0x30] sm:$0xff]  ;;  %v31_v13 = vld [vmem:[%s1272_s0 + $0x38] sm:$0xff] }
  0x1b   :  { %v798_v10 = vcombine.low %v26_v8, %v30_v9  ;;  %v799_v11 = vcombine.high %v26_v8, %v30_v9  ;;  %v800_v14 = vcombine.low %v27_v12, %v31_v13  ;;  %v801_v15 = vcombine.high %v27_v12, %v31_v13 }
  0x1c   :  { %888 = vmatpush3.bf16.msra.mxu0 %v990_v26 }
  0x1d   :  { %910 = vmatpush3.bf16.msra.mxu1 %v991_v27  ;;  %889 = vmatprep.subr.bf16.mxu0 %v992_v28  ;;  %v766_v27 = vlaneseq }
  0x1e   :  { %911 = vmatprep.subr.bf16.mxu1 %v993_v29 }
  0x20   :  { %890 = vmatpush3.bf16.msra.mxu0 %v994_v30 }
  0x21   :  { %912 = vmatpush3.bf16.msra.mxu1 %v995_v31  ;;  %919 = vmatprep.subr.bf16.mxu0 %v996_v40  ;;  %v866_v40 = vld [vmem:[%s1273_s2] ss:$0 sm:$0xff] }
  0x22   :  { %941 = vmatprep.subr.bf16.mxu1 %v997_v41 }
  0x23   :  { %617 = vmatmul.mubr.bf16.vlgmr.msra.gmra.mrb[0].mxu0 %v794_v35  ;;  %v767_v35 = vshrl.u32 %v766_v27, 7 }
  0x24   :  { %658 = vmatmul.mubr.bf16.vlgmr.msra.gmra.mrb[0].mxu1 %v796_v38  ;;  %920 = vmatpush3.bf16.msra.mxu0 %v998_v42 }
  0x25   :  { %942 = vmatpush3.bf16.msra.mxu1 %v999_v43  ;;  %921 = vmatprep.subr.bf16.mxu0 %v1000_v44  ;;  %vm772_vm0 = vcmp.lt.s32.totalorder %v767_v35, 2  ;;  %v1028_v44 = vmov 0.0  }
  0x26   :  { %943 = vmatprep.subr.bf16.mxu1 %v1001_v45  ;;  %698 = vmatprep.mubr.bf16.mxu0 %v799_v11 }
  0x27   :  { %739 = vmatprep.mubr.bf16.mxu1 %v801_v15 }
  0x28   :  { %922 = vmatpush3.bf16.msra.mxu0 %v1002_v46 }
  0x29   :  { %944 = vmatpush3.bf16.msra.mxu1 %v1003_v47  ;;  %923 = vmatprep.subr.bf16.mxu0 %v1004_v48 }
  0x2a   :  { %945 = vmatprep.subr.bf16.mxu1 %v1005_v49 }
  0x2c   :  { %924 = vmatpush3.bf16.msra.mxu0 %v1006_v50 }
  0x2d   :  { %946 = vmatpush3.bf16.msra.mxu1 %v1007_v51  ;;  %925 = vmatprep.subr.bf16.mxu0 %v1008_v52 }
  0x2e   :  { %947 = vmatprep.subr.bf16.mxu1 %v1009_v53 }
  0x30   :  { %926 = vmatpush3.bf16.msra.mxu0 %v1010_v54 }
  0x31   :  { %948 = vmatpush3.bf16.msra.mxu1 %v1011_v55  ;;  %927 = vmatprep.subr.bf16.mxu0 %v1012_v56 }
  0x32   :  { %949 = vmatprep.subr.bf16.mxu1 %v1013_v57 }
  0x34   :  { %928 = vmatpush3.bf16.msra.mxu0 %v1014_v58 }
  0x35   :  { %950 = vmatpush3.bf16.msra.mxu1 %v1015_v59  ;;  %929 = vmatprep.subr.bf16.mxu0 %v1016_v60 }
  0x36   :  { %951 = vmatprep.subr.bf16.mxu1 %v1017_v61 }
  0x38   :  { %930 = vmatpush3.bf16.msra.mxu0 %v1018_v62 }
  0x39   :  { %952 = vmatpush3.bf16.msra.mxu1 %v1019_v63  ;;  %931 = vmatprep.subr.bf16.mxu0 %v1020_v0 }
  0x3a   :  { %953 = vmatprep.subr.bf16.mxu1 %v1021_v1 }
  0x3c   :  { %932 = vmatpush3.bf16.msra.mxu0 %v1022_v2 }
  0x3d   :  { %954 = vmatpush3.bf16.msra.mxu1 %v1023_v3  ;;  %933 = vmatprep.subr.bf16.mxu0 %v1024_v4 }
  0x3e   :  { %955 = vmatprep.subr.bf16.mxu1 %v1025_v5 }
  0x40   :  { %934 = vmatpush3.bf16.msra.mxu0 %v1026_v6 }
  0x41   :  { %956 = vmatpush3.bf16.msra.mxu1 %v1027_v7 }
  0x43   :  { %699 = vmatmul.mubr.bf16.vlgmr.msra.gmra.mrb[4].mxu0 %v798_v10 }
  0x44   :  { %740 = vmatmul.mubr.bf16.vlgmr.msra.gmra.mrb[4].mxu1 %v800_v14 }
  0xf6   :  { %v891_v16 = vpop.f32.mrb[0].mxu0 }
  0xf7   :  { %v913_v17 = vpop.f32.mrb[0].mxu1  ;;  %v892_v18 = vpop.f32.mrb[1].mxu0 }
  0xf8   :  { %v893_v19 = vadd.f32 %v892_v18, %v891_v16  ;;  %v914_v20 = vpop.f32.mrb[1].mxu1  ;;  %v894_v21 = vpop.f32.mrb[2].mxu0 }
  0xf9   :  { %v915_v22 = vadd.f32 %v914_v20, %v913_v17  ;;  %v916_v23 = vpop.f32.mrb[2].mxu1  ;;  %v895_v24 = vpop.f32.mrb[3].mxu0 }
  0xfa   :  { %v917_v25 = vpop.f32.mrb[3].mxu1 }
  0xfb   :  { %v660_v26 = vadd.f32 %v915_v22, %v893_v19 }
 0x116   :  { %v935_v28 = vpop.f32.mrb[4].mxu0 }
 0x117   :  { %v957_v29 = vpop.f32.mrb[4].mxu1  ;;  %v936_v30 = vpop.f32.mrb[5].mxu0 }
 0x118   :  { %v937_v31 = vadd.f32 %v936_v30, %v935_v28  ;;  %v958_v32 = vpop.f32.mrb[5].mxu1  ;;  %v938_v33 = vpop.f32.mrb[6].mxu0 }
 0x119   :  { %v959_v34 = vadd.f32 %v958_v32, %v957_v29  ;;  %v960_v36 = vpop.f32.mrb[6].mxu1  ;;  %v939_v37 = vpop.f32.mrb[7].mxu0 }
 0x11a   :  { %v701_v38 = vadd.f32 %v937_v31, %v660_v26  ;;  %v961_v39 = vpop.f32.mrb[7].mxu1 }
 0x11c   :  { %v742_v41 = vadd.f32 %v959_v34, %v701_v38 }
 0x11e   :  { %v764_v42 = vadd.f32 %v866_v40, %v742_v41 }
 0x120   :  { %v778_v43 = vsel %vm772_vm0, %v764_v42, 0.0 }
 0x121   :  { %v873_v45 = vpack.c.bf16 %v1028_v44, %v778_v43 }
 0x123   :  { %874 = vst [vmem:[%s1274_s3] sm:$0xff] %v873_v45  }

// kernel: _lambda_.31
= control target key start
LH: loop header
LB: loop body
LE: loop exit
PB: predicated region body
PF: predicated region fallthrough
CT: control target
= control target key end

     0   :  { %s72_s0 = inlined_call_operand.vmem [shape: bf16[4,128], index: 0, kind: input, shape index: {}]   ;;  %s73_s1 = inlined_call_operand.vmem [shape: f32[1,128], index: 1, kind: input, shape index: {}]   ;;  %s74_s2 = inlined_call_operand.vmem [shape: f32[1,128], index: 2, kind: input, shape index: {}]   ;;  %s75_s3 = inlined_call_operand.vmem [shape: bf16[4,128], index: 3, kind: output, shape index: {}]  }
   0x1   :  { %v14_v0 = vld [vmem:[%s72_s0] sm:$0x3] }
   0x2   :  { %v38_v1 = vld [vmem:[%s73_s1] ss:$0 sm:$0xff]  ;;  %v15_v2 = vunpack.c.l.bf16 %v14_v0 }
   0x3   :  { %v39_v3 = vld [vmem:[%s74_s2] ss:$0 sm:$0xff] }
   0x4   :  { %v23_v4 = vmul.f32 %v38_v1, %v15_v2 }
   0x6   :  { %v31_v5 = vadd.f32 %v39_v3, %v23_v4 }
   0x8   :  { %v32_v6 = vpack.c.bf16 %v31_v5, %v31_v5 }
   0xa   :  { %33 = vst [vmem:[%s75_s3] sm:$0x3] %v32_v6 }

// kernel: _lambda_.32
= control target key start
LH: loop header
LB: loop body
LE: loop exit
PB: predicated region body
PF: predicated region fallthrough
CT: control target
= control target key end

     0   :  { %v523_v1 = vmov 0   ;;  %v524_v34 = vmov 0.0|0.0   ;;  %v351_v35 = vlaneseq  ;;  %s659_s1 = inlined_call_operand.vmem [shape: bf16[128,512], index: 1, kind: input, shape index: {}]   ;;  %s660_s0 = inlined_call_operand.vmem [shape: bf16[16,128], index: 0, kind: input, shape index: {}]   ;;  %s661_s3 = inlined_call_operand.vmem [shape: bf16[16,512], index: 3, kind: output, shape index: {}]   ;;  %s662_s2 = inlined_call_operand.vmem [shape: f32[1,512], index: 2, kind: input, shape index: {}]  }
   0x1   :  { %v474_v0 = vld [vmem:[%s659_s1 + $0x4] ss:$16 sps:$4 sm:$0xff]   ;;  %268 = vmatprep.mubr.bf16.mxu0 %v523_v1  ;;  %311 = vmatprep.mubr.bf16.mxu1 %v523_v1  ;;  %v476_v2 = vld [vmem:[%s659_s1 + $0xc] ss:$16 sps:$4 sm:$0xff]   ;;  %v478_v3 = vld [vmem:[%s659_s1] ss:$16 sps:$4 sm:$0xff]  }
   0x2   :  { %236 = vmatprep.subr.bf16.mxu0 %v474_v0  ;;  %v479_v4 = vld [vmem:[%s659_s1 + $0x8] ss:$16 sps:$4 sm:$0xff]   ;;  %279 = vmatprep.subr.bf16.mxu1 %v476_v2  ;;  %v480_v5 = vld [vmem:[%s659_s1 + $0x24] ss:$16 sps:$4 sm:$0xff]   ;;  %v482_v6 = vld [vmem:[%s659_s1 + $0x2c] ss:$16 sps:$4 sm:$0xff]  }
   0x3   :  { %237 = vmatpush1.bf16.msra.mxu0 %v478_v3  ;;  %280 = vmatpush1.bf16.msra.mxu1 %v479_v4  ;;  %v484_v7 = vld [vmem:[%s659_s1 + $0x20] ss:$16 sps:$4 sm:$0xff]   ;;  %v485_v8 = vld [vmem:[%s659_s1 + $0x28] ss:$16 sps:$4 sm:$0xff]   ;;  %v486_v9 = vld [vmem:[%s659_s1 + $0x44] ss:$16 sps:$4 sm:$0xff]  }
   0x4   :  { %238 = vmatprep.subr.bf16.mxu0 %v480_v5  ;;  %281 = vmatprep.subr.bf16.mxu1 %v482_v6  ;;  %v488_v10 = vld [vmem:[%s659_s1 + $0x4c] ss:$16 sps:$4 sm:$0xff]   ;;  %v490_v11 = vld [vmem:[%s659_s1 + $0x40] ss:$16 sps:$4 sm:$0xff]   ;;  %v491_v12 = vld [vmem:[%s659_s1 + $0x48] ss:$16 sps:$4 sm:$0xff]  }
   0x5   :  { %v492_v13 = vld [vmem:[%s659_s1 + $0x64] ss:$16 sps:$4 sm:$0xff]   ;;  %v494_v14 = vld [vmem:[%s659_s1 + $0x6c] ss:$16 sps:$4 sm:$0xff]   ;;  %v496_v15 = vld [vmem:[%s659_s1 + $0x60] ss:$16 sps:$4 sm:$0xff]  }
   0x6   :  { %v497_v16 = vld [vmem:[%s659_s1 + $0x68] ss:$16 sps:$4 sm:$0xff]   ;;  %v498_v17 = vld [vmem:[%s659_s1 + $0x84] ss:$16 sps:$4 sm:$0xff]   ;;  %v500_v18 = vld [vmem:[%s659_s1 + $0x8c] ss:$16 sps:$4 sm:$0xff]  }
   0x7   :  { %239 = vmatpush1.bf16.msra.mxu0 %v484_v7  ;;  %282 = vmatpush1.bf16.msra.mxu1 %v485_v8  ;;  %v502_v19 = vld [vmem:[%s659_s1 + $0x80] ss:$16 sps:$4 sm:$0xff]   ;;  %v503_v20 = vld [vmem:[%s659_s1 + $0x88] ss:$16 sps:$4 sm:$0xff]   ;;  %v504_v21 = vld [vmem:[%s659_s1 + $0xa4] ss:$16 sps:$4 sm:$0xff]  }
   0x8   :  { %240 = vmatprep.subr.bf16.mxu0 %v486_v9  ;;  %283 = vmatprep.subr.bf16.mxu1 %v488_v10  ;;  %v506_v22 = vld [vmem:[%s659_s1 + $0xac] ss:$16 sps:$4 sm:$0xff]   ;;  %v508_v23 = vld [vmem:[%s659_s1 + $0xa0] ss:$16 sps:$4 sm:$0xff]   ;;  %v509_v24 = vld [vmem:[%s659_s1 + $0xa8] ss:$16 sps:$4 sm:$0xff]  }
   0x9   :  { %v510_v25 = vld [vmem:[%s659_s1 + $0xc4] ss:$16 sps:$4 sm:$0xff]   ;;  %v512_v26 = vld [vmem:[%s659_s1 + $0xcc] ss:$16 sps:$4 sm:$0xff]   ;;  %v514_v27 = vld [vmem:[%s659_s1 + $0xc0] ss:$16 sps:$4 sm:$0xff]  }
   0xa   :  { %v515_v28 = vld [vmem:[%s659_s1 + $0xc8] ss:$16 sps:$4 sm:$0xff]   ;;  %v516_v29 = vld [vmem:[%s659_s1 + $0xe4] ss:$16 sps:$4 sm:$0xff]   ;;  %v518_v30 = vld [vmem:[%s659_s1 + $0xec] ss:$16 sps:$4 sm:$0xff]  }
   0xb   :  { %241 = vmatpush1.bf16.msra.mxu0 %v490_v11  ;;  %284 = vmatpush1.bf16.msra.mxu1 %v491_v12  ;;  %v520_v31 = vld [vmem:[%s659_s1 + $0xe0] ss:$16 sps:$4 sm:$0xff]   ;;  %v521_v32 = vld [vmem:[%s659_s1 + $0xe8] ss:$16 sps:$4 sm:$0xff]   ;;  %425 = vst [vmem:[%s661_s3 + $0x10] sm:$0xff] %v524_v34  ;;  %426 = vst [vmem:[%s661_s3 + $0x18] sm:$0xff] %v524_v34 }
   0xc   :  { %242 = vmatprep.subr.bf16.mxu0 %v492_v13  ;;  %285 = vmatprep.subr.bf16.mxu1 %v494_v14  ;;  %v522_v33 = vld [vmem:[%s660_s0] sm:$0xff]   ;;  %v352_v36 = vshrl.u32 %v351_v35, 7 }
   0xd   :  { %v349_v39 = vld [vmem:[%s662_s2] sm:$0xf] }
   0xe   :  { %v353_v37 = vsub.s32 0, %v352_v36  ;;  %v361_v38 = vsub.s32 2, %v352_v36  ;;  %v357_v40 = vsub.s32 1, %v352_v36  ;;  %v365_v41 = vsub.s32 3, %v352_v36 }
   0xf   :  { %243 = vmatpush1.bf16.msra.mxu0 %v496_v15  ;;  %286 = vmatpush1.bf16.msra.mxu1 %v497_v16 }
  0x10   :  { %244 = vmatprep.subr.bf16.mxu0 %v498_v17  ;;  %287 = vmatprep.subr.bf16.mxu1 %v500_v18  ;;  %v354_v42 = vrot.slane %v349_v39, %v353_v37  ;;  %v362_v43 = vrot.slane %v349_v39, %v361_v38  ;;  %v358_v44 = vrot.slane %v349_v39, %v357_v40 }
  0x11   :  { %v366_v45 = vrot.slane %v349_v39, %v365_v41 }
  0x13   :  { %245 = vmatpush1.bf16.msra.mxu0 %v502_v19  ;;  %288 = vmatpush1.bf16.msra.mxu1 %v503_v20 }
  0x14   :  { %246 = vmatprep.subr.bf16.mxu0 %v504_v21  ;;  %289 = vmatprep.subr.bf16.mxu1 %v506_v22 }
  0x17   :  { %247 = vmatpush1.bf16.msra.mxu0 %v508_v23  ;;  %290 = vmatpush1.bf16.msra.mxu1 %v509_v24 }
  0x18   :  { %248 = vmatprep.subr.bf16.mxu0 %v510_v25  ;;  %291 = vmatprep.subr.bf16.mxu1 %v512_v26 }
  0x1b   :  { %249 = vmatpush1.bf16.msra.mxu0 %v514_v27  ;;  %292 = vmatpush1.bf16.msra.mxu1 %v515_v28 }
  0x1c   :  { %250 = vmatprep.subr.bf16.mxu0 %v516_v29  ;;  %293 = vmatprep.subr.bf16.mxu1 %v518_v30 }
  0x1f   :  { %251 = vmatpush1.bf16.msra.mxu0 %v520_v31  ;;  %294 = vmatpush1.bf16.msra.mxu1 %v521_v32 }
  0x22   :  { %269 = vmatmul.mubr.bf16.vlgmr.msra.gmra.mrb[0].mxu0 %v522_v33  ;;  %312 = vmatmul.mubr.bf16.vlgmr.msra.gmra.mrb[0].mxu1 %v522_v33 }
  0xf5   :  { %v270_v46 = vpop.f32.mrb[0].mxu0  ;;  %v313_v47 = vpop.f32.mrb[0].mxu1 }
  0xf6   :  { %v371_v48 = vadd.f32 %v354_v42, %v270_v46  ;;  %v373_v49 = vadd.f32 %v362_v43, %v313_v47  ;;  %v272_v50 = vpop.f32.mrb[1].mxu0  ;;  %v315_v51 = vpop.f32.mrb[1].mxu1 }
  0xf7   :  { %v372_v52 = vadd.f32 %v358_v44, %v272_v50  ;;  %v374_v53 = vadd.f32 %v366_v45, %v315_v51  ;;  %v274_v54 = vpop.f32.mrb[2].mxu0  ;;  %v317_v55 = vpop.f32.mrb[2].mxu1 }
  0xf8   :  { %v276_v56 = vpop.f32.mrb[3].mxu0  ;;  %v319_v57 = vpop.f32.mrb[3].mxu1 }
  0xf9   :  { %v468_v58 = vpack.c.bf16 %v372_v52, %v371_v48  ;;  %v469_v59 = vpack.c.bf16 %v374_v53, %v373_v49 }
  0xfb   :  { %423 = vst [vmem:[%s661_s3] sm:$0xff] %v468_v58  ;;  %424 = vst [vmem:[%s661_s3 + $0x8] sm:$0xff] %v469_v59 }

// kernel: _lambda_.34
= control target key start
LH: loop header
LB: loop body
LE: loop exit
PB: predicated region body
PF: predicated region fallthrough
CT: control target
= control target key end

     0   :  { %s72_s0 = inlined_call_operand.vmem [shape: bf16[8,128], index: 0, kind: input, shape index: {}]   ;;  %s73_s1 = inlined_call_operand.vmem [shape: f32[1,128], index: 1, kind: input, shape index: {}]   ;;  %s74_s2 = inlined_call_operand.vmem [shape: f32[1,128], index: 2, kind: input, shape index: {}]   ;;  %s75_s3 = inlined_call_operand.vmem [shape: bf16[8,128], index: 3, kind: output, shape index: {}]  }
   0x1   :  { %v14_v0 = vld [vmem:[%s72_s0] sm:$0xf] }
   0x2   :  { %v38_v1 = vld [vmem:[%s73_s1] ss:$0 sm:$0xff]  ;;  %v15_v2 = vunpack.c.l.bf16 %v14_v0 }
   0x3   :  { %v39_v3 = vld [vmem:[%s74_s2] ss:$0 sm:$0xff] }
   0x4   :  { %v23_v4 = vmul.f32 %v38_v1, %v15_v2 }
   0x6   :  { %v31_v5 = vadd.f32 %v39_v3, %v23_v4 }
   0x8   :  { %v32_v6 = vpack.c.bf16 %v31_v5, %v31_v5 }
   0xa   :  { %33 = vst [vmem:[%s75_s3] sm:$0xf] %v32_v6 }

// kernel: _lambda_.33
= control target key start
LH: loop header
LB: loop body
LE: loop exit
PB: predicated region body
PF: predicated region fallthrough
CT: control target
= control target key end

     0   :  { %v46_v0 = vmov 0.0   ;;  %s83_s1 = inlined_call_operand.vmem [shape: f32[1,128], index: 1, kind: output, shape index: {0}]   ;;  %s84_s2 = inlined_call_operand.vmem [shape: f32[1,128], index: 2, kind: output, shape index: {1}]   ;;  %s85_s0 = inlined_call_operand.vmem [shape: bf16[8,128], index: 0, kind: input, shape index: {}]  }
   0x1   :  { %14 = vst [vmem:[%s83_s1] sm:$0x1] %v46_v0  ;;  %15 = vst [vmem:[%s84_s2] sm:$0x1] %v46_v0  ;;  %v16_v1 = vld [vmem:[%s85_s0] sm:$0xf] }
   0x2   :  { %v17_v2 = vunpack.c.l.bf16 %v16_v1 }
   0x4   :  { %v19_v3 = vrot.slane %v17_v2, 4  ;;  %v28_v4 = vmul.f32 %v17_v2, %v17_v2 }
   0x6   :  { %v20_v5 = vadd.f32 %v19_v3, %v17_v2  ;;  %v29_v6 = vrot.slane %v28_v4, 4 }
   0x8   :  { %v21_v7 = vrot.slane %v20_v5, 2  ;;  %v30_v8 = vadd.f32 %v29_v6, %v28_v4  ;;  %v18_v13 = vld [vmem:[%s83_s1] sm:$0x1] }
   0x9   :  { %v27_v16 = vld [vmem:[%s84_s2] sm:$0x1] }
   0xa   :  { %v22_v9 = vadd.f32 %v21_v7, %v20_v5  ;;  %v31_v10 = vrot.slane %v30_v8, 2 }
   0xc   :  { %v23_v11 = vrot.slane %v22_v9, 1  ;;  %v32_v12 = vadd.f32 %v31_v10, %v30_v8 }
   0xe   :  { %v24_v14 = vadd.f32 %v23_v11, %v22_v9  ;;  %v33_v15 = vrot.slane %v32_v12, 1 }
  0x10   :  { %v25_v17 = vadd.f32 %v24_v14, %v18_v13  ;;  %v34_v18 = vadd.f32 %v33_v15, %v32_v12 }
  0x12   :  { %26 = vst [vmem:[%s83_s1] sm:$0x1] %v25_v17  ;;  %v35_v19 = vadd.f32 %v34_v18, %v27_v16 }
  0x14   :  { %36 = vst [vmem:[%s84_s2] sm:$0x1] %v35_v19 }

// kernel: _lambda_.35
= control target key start
LH: loop header
LB: loop body
LE: loop exit
PB: predicated region body
PF: predicated region fallthrough
CT: control target
= control target key end

     0   :  { %v348_v1 = vmov 0   ;;  %v229_v19 = vlaneseq  ;;  %s438_s1 = inlined_call_operand.vmem [shape: bf16[128,256], index: 1, kind: input, shape index: {}]   ;;  %s439_s0 = inlined_call_operand.vmem [shape: bf16[32,128], index: 0, kind: input, shape index: {}]   ;;  %s440_s2 = inlined_call_operand.vmem [shape: f32[1,256], index: 2, kind: input, shape index: {}]   ;;  %s441_s3 = inlined_call_operand.vmem [shape: bf16[32,256], index: 3, kind: output, shape index: {}]  }
   0x1   :  { %v322_v0 = vld [vmem:[%s438_s1 + $0x4] ss:$8 sps:$4 sm:$0xff]   ;;  %179 = vmatprep.mubr.bf16.mxu0 %v348_v1  ;;  %189 = vmatprep.mubr.bf16.mxu1 %v348_v1  ;;  %v324_v2 = vld [vmem:[%s438_s1] ss:$8 sps:$4 sm:$0xff]   ;;  %v325_v3 = vld [vmem:[%s438_s1 + $0x14] ss:$8 sps:$4 sm:$0xff]  }
   0x2   :  { %147 = vmatprep.subr.bf16.mxu0 %v322_v0  ;;  %305 = vmatprep.subr.bf16.mxu1 %v322_v0  ;;  %v327_v4 = vld [vmem:[%s438_s1 + $0x10] ss:$8 sps:$4 sm:$0xff]   ;;  %v328_v5 = vld [vmem:[%s438_s1 + $0x24] ss:$8 sps:$4 sm:$0xff]   ;;  %v330_v6 = vld [vmem:[%s438_s1 + $0x20] ss:$8 sps:$4 sm:$0xff]  }
   0x3   :  { %148 = vmatpush1.bf16.msra.mxu0 %v324_v2  ;;  %313 = vmatpush1.bf16.msra.mxu1 %v324_v2  ;;  %v331_v7 = vld [vmem:[%s438_s1 + $0x34] ss:$8 sps:$4 sm:$0xff]   ;;  %v333_v8 = vld [vmem:[%s438_s1 + $0x30] ss:$8 sps:$4 sm:$0xff]   ;;  %v334_v9 = vld [vmem:[%s438_s1 + $0x44] ss:$8 sps:$4 sm:$0xff]  }
   0x4   :  { %149 = vmatprep.subr.bf16.mxu0 %v325_v3  ;;  %306 = vmatprep.subr.bf16.mxu1 %v325_v3  ;;  %v336_v10 = vld [vmem:[%s438_s1 + $0x40] ss:$8 sps:$4 sm:$0xff]   ;;  %v337_v11 = vld [vmem:[%s438_s1 + $0x54] ss:$8 sps:$4 sm:$0xff]   ;;  %v339_v12 = vld [vmem:[%s438_s1 + $0x50] ss:$8 sps:$4 sm:$0xff]  }
   0x5   :  { %v340_v13 = vld [vmem:[%s438_s1 + $0x64] ss:$8 sps:$4 sm:$0xff]   ;;  %v342_v14 = vld [vmem:[%s438_s1 + $0x60] ss:$8 sps:$4 sm:$0xff]   ;;  %v343_v15 = vld [vmem:[%s438_s1 + $0x74] ss:$8 sps:$4 sm:$0xff]  }
   0x6   :  { %v345_v16 = vld [vmem:[%s438_s1 + $0x70] ss:$8 sps:$4 sm:$0xff]   ;;  %v346_v17 = vld [vmem:[%s439_s0] sm:$0xff]   ;;  %v347_v18 = vld [vmem:[%s439_s0 + $0x8] sm:$0xff]   ;;  %v230_v20 = vshrl.u32 %v229_v19, 7 }
   0x7   :  { %150 = vmatpush1.bf16.msra.mxu0 %v327_v4  ;;  %314 = vmatpush1.bf16.msra.mxu1 %v327_v4  ;;  %v227_v22 = vld [vmem:[%s440_s2] sm:$0x3] }
   0x8   :  { %151 = vmatprep.subr.bf16.mxu0 %v328_v5  ;;  %307 = vmatprep.subr.bf16.mxu1 %v328_v5  ;;  %v231_v21 = vsub.s32 0, %v230_v20  ;;  %v235_v23 = vsub.s32 1, %v230_v20 }
   0xa   :  { %v232_v24 = vrot.slane %v227_v22, %v231_v21  ;;  %v236_v25 = vrot.slane %v227_v22, %v235_v23 }
   0xb   :  { %152 = vmatpush1.bf16.msra.mxu0 %v330_v6  ;;  %315 = vmatpush1.bf16.msra.mxu1 %v330_v6 }
   0xc   :  { %153 = vmatprep.subr.bf16.mxu0 %v331_v7  ;;  %308 = vmatprep.subr.bf16.mxu1 %v331_v7 }
   0xf   :  { %154 = vmatpush1.bf16.msra.mxu0 %v333_v8  ;;  %316 = vmatpush1.bf16.msra.mxu1 %v333_v8 }
  0x10   :  { %155 = vmatprep.subr.bf16.mxu0 %v334_v9  ;;  %309 = vmatprep.subr.bf16.mxu1 %v334_v9 }
  0x13   :  { %156 = vmatpush1.bf16.msra.mxu0 %v336_v10  ;;  %317 = vmatpush1.bf16.msra.mxu1 %v336_v10 }
  0x14   :  { %157 = vmatprep.subr.bf16.mxu0 %v337_v11  ;;  %310 = vmatprep.subr.bf16.mxu1 %v337_v11 }
  0x17   :  { %158 = vmatpush1.bf16.msra.mxu0 %v339_v12  ;;  %318 = vmatpush1.bf16.msra.mxu1 %v339_v12 }
  0x18   :  { %159 = vmatprep.subr.bf16.mxu0 %v340_v13  ;;  %311 = vmatprep.subr.bf16.mxu1 %v340_v13 }
  0x1b   :  { %160 = vmatpush1.bf16.msra.mxu0 %v342_v14  ;;  %319 = vmatpush1.bf16.msra.mxu1 %v342_v14 }
  0x1c   :  { %161 = vmatprep.subr.bf16.mxu0 %v343_v15  ;;  %312 = vmatprep.subr.bf16.mxu1 %v343_v15 }
  0x1f   :  { %162 = vmatpush1.bf16.msra.mxu0 %v345_v16  ;;  %320 = vmatpush1.bf16.msra.mxu1 %v345_v16 }
  0x22   :  { %180 = vmatmul.mubr.bf16.vlgmr.msra.gmra.mrb[0].mxu0 %v346_v17  ;;  %190 = vmatmul.mubr.bf16.vlgmr.msra.gmra.mrb[0].mxu1 %v347_v18 }
  0xf5   :  { %v181_v26 = vpop.f32.mrb[0].mxu0  ;;  %v191_v27 = vpop.f32.mrb[0].mxu1 }
  0xf6   :  { %v239_v28 = vadd.f32 %v232_v24, %v181_v26  ;;  %v243_v29 = vadd.f32 %v232_v24, %v191_v27  ;;  %v183_v30 = vpop.f32.mrb[1].mxu0  ;;  %v193_v31 = vpop.f32.mrb[1].mxu1 }
  0xf7   :  { %v240_v32 = vadd.f32 %v236_v25, %v183_v30  ;;  %v244_v33 = vadd.f32 %v236_v25, %v193_v31  ;;  %v185_v34 = vpop.f32.mrb[2].mxu0  ;;  %v195_v35 = vpop.f32.mrb[2].mxu1 }
  0xf8   :  { %v241_v36 = vadd.f32 %v232_v24, %v185_v34  ;;  %v245_v37 = vadd.f32 %v232_v24, %v195_v35  ;;  %v187_v38 = vpop.f32.mrb[3].mxu0  ;;  %v197_v39 = vpop.f32.mrb[3].mxu1 }
  0xf9   :  { %v301_v40 = vpack.c.bf16 %v240_v32, %v239_v28  ;;  %v303_v41 = vpack.c.bf16 %v244_v33, %v243_v29  ;;  %v242_v42 = vadd.f32 %v236_v25, %v187_v38  ;;  %v246_v43 = vadd.f32 %v236_v25, %v197_v39 }
  0xfb   :  { %271 = vst [vmem:[%s441_s3] sm:$0xff] %v301_v40  ;;  %273 = vst [vmem:[%s441_s3 + $0x10] sm:$0xff] %v303_v41  ;;  %v302_v44 = vpack.c.bf16 %v242_v42, %v241_v36  ;;  %v304_v45 = vpack.c.bf16 %v246_v43, %v245_v37 }
  0xfd   :  { %272 = vst [vmem:[%s441_s3 + $0x8] sm:$0xff] %v302_v44  ;;  %274 = vst [vmem:[%s441_s3 + $0x18] sm:$0xff] %v304_v45 }

// kernel: _lambda_.36
= control target key start
LH: loop header
LB: loop body
LE: loop exit
PB: predicated region body
PF: predicated region fallthrough
CT: control target
= control target key end

     0   :  { %v55_v0 = vmov 0.0   ;;  %s92_s1 = inlined_call_operand.vmem [shape: f32[1,128], index: 1, kind: output, shape index: {0}]   ;;  %s93_s2 = inlined_call_operand.vmem [shape: f32[1,128], index: 2, kind: output, shape index: {1}]   ;;  %s94_s0 = inlined_call_operand.vmem [shape: bf16[16,128], index: 0, kind: input, shape index: {}]  }
   0x1   :  { %14 = vst [vmem:[%s92_s1] sm:$0x1] %v55_v0  ;;  %15 = vst [vmem:[%s93_s2] sm:$0x1] %v55_v0  ;;  %v51_v1 = vld [vmem:[%s94_s0] sm:$0xff]  }
   0x2   :  { %v52_v2 = vunpack.c.l.bf16 %v51_v1  ;;  %v53_v3 = vunpack.c.h.bf16 %v51_v1 }
   0x4   :  { %v21_v4 = vadd.f32 %v53_v3, %v52_v2  ;;  %v31_v5 = vmul.f32 %v52_v2, %v52_v2  ;;  %v32_v6 = vmul.f32 %v53_v3, %v53_v3 }
   0x6   :  { %v22_v7 = vrot.slane %v21_v4, 4  ;;  %v33_v8 = vadd.f32 %v32_v6, %v31_v5 }
   0x8   :  { %v23_v9 = vadd.f32 %v22_v7, %v21_v4  ;;  %v34_v10 = vrot.slane %v33_v8, 4  ;;  %v20_v17 = vld [vmem:[%s92_s1] sm:$0x1] }
   0x9   :  { %v30_v20 = vld [vmem:[%s93_s2] sm:$0x1] }
   0xa   :  { %v24_v11 = vrot.slane %v23_v9, 2  ;;  %v35_v12 = vadd.f32 %v34_v10, %v33_v8 }
   0xc   :  { %v25_v13 = vadd.f32 %v24_v11, %v23_v9  ;;  %v36_v14 = vrot.slane %v35_v12, 2 }
   0xe   :  { %v26_v15 = vrot.slane %v25_v13, 1  ;;  %v37_v16 = vadd.f32 %v36_v14, %v35_v12 }
  0x10   :  { %v27_v18 = vadd.f32 %v26_v15, %v25_v13  ;;  %v38_v19 = vrot.slane %v37_v16, 1 }
  0x12   :  { %v28_v21 = vadd.f32 %v27_v18, %v20_v17  ;;  %v39_v22 = vadd.f32 %v38_v19, %v37_v16 }
  0x14   :  { %29 = vst [vmem:[%s92_s1] sm:$0x1] %v28_v21  ;;  %v40_v23 = vadd.f32 %v39_v22, %v30_v20 }
  0x16   :  { %41 = vst [vmem:[%s93_s2] sm:$0x1] %v40_v23 }

// kernel: _lambda_.38
= control target key start
LH: loop header
LB: loop body
LE: loop exit
PB: predicated region body
PF: predicated region fallthrough
CT: control target
= control target key end

     0   :  { %s705_s1 = inlined_call_operand.vmem [shape: bf16[128,128], index: 1, kind: input, shape index: {}]   ;;  %s706_s0 = inlined_call_operand.vmem [shape: bf16[128,128], index: 0, kind: input, shape index: {}]   ;;  %s707_s2 = inlined_call_operand.vmem [shape: f32[1,128], index: 2, kind: input, shape index: {}]   ;;  %s708_s3 = inlined_call_operand.vmem [shape: bf16[128,128], index: 3, kind: output, shape index: {}]  }
   0x1   :  { %v594_v0 = vld [vmem:[%s705_s1] sm:$0xff]   ;;  %v595_v1 = vld [vmem:[%s705_s1 + $0x8] sm:$0xff]   ;;  %v596_v2 = vld [vmem:[%s705_s1 + $0x10] sm:$0xff]  }
   0x2   :  { %546 = vmatprep.subr.bf16.mxu0 %v594_v0  ;;  %578 = vmatprep.subr.bf16.mxu1 %v594_v0  ;;  %v597_v3 = vld [vmem:[%s705_s1 + $0x18] sm:$0xff]   ;;  %v602_v4 = vld [vmem:[%s706_s0] sm:$0xff]   ;;  %v599_v7 = vld [vmem:[%s705_s1 + $0x28] sm:$0xff]  }
   0x3   :  { %547 = vmatpush3.bf16.msra.mxu0 %v594_v0  ;;  %586 = vmatpush3.bf16.msra.mxu1 %v594_v0  ;;  %v603_v5 = vld [vmem:[%s706_s0 + $0x20] sm:$0xff]   ;;  %v600_v8 = vld [vmem:[%s705_s1 + $0x30] sm:$0xff]   ;;  %v601_v9 = vld [vmem:[%s705_s1 + $0x38] sm:$0xff]  }
   0x4   :  { %548 = vmatprep.subr.bf16.mxu0 %v595_v1  ;;  %579 = vmatprep.subr.bf16.mxu1 %v595_v1  ;;  %v598_v6 = vld [vmem:[%s705_s1 + $0x20] sm:$0xff]   ;;  %v604_v10 = vld [vmem:[%s706_s0 + $0x8] sm:$0xff]   ;;  %v606_v12 = vld [vmem:[%s706_s0 + $0x10] sm:$0xff]  }
   0x5   :  { %562 = vmatprep.mubr.bf16.mxu0 %v602_v4  ;;  %570 = vmatprep.mubr.bf16.mxu1 %v603_v5  ;;  %v605_v11 = vld [vmem:[%s706_s0 + $0x28] sm:$0xff]   ;;  %v607_v13 = vld [vmem:[%s706_s0 + $0x30] sm:$0xff]   ;;  %v608_v14 = vld [vmem:[%s706_s0 + $0x18] sm:$0xff]  }
   0x6   :  { %v609_v15 = vld [vmem:[%s706_s0 + $0x38] sm:$0xff]   ;;  %v450_v17 = vld [vmem:[%s707_s2] ss:$0 sm:$0xff] }
   0x7   :  { %549 = vmatpush3.bf16.msra.mxu0 %v595_v1  ;;  %587 = vmatpush3.bf16.msra.mxu1 %v595_v1 }
   0x8   :  { %550 = vmatprep.subr.bf16.mxu0 %v596_v2  ;;  %580 = vmatprep.subr.bf16.mxu1 %v596_v2 }
   0xb   :  { %551 = vmatpush3.bf16.msra.mxu0 %v596_v2  ;;  %588 = vmatpush3.bf16.msra.mxu1 %v596_v2 }
   0xc   :  { %552 = vmatprep.subr.bf16.mxu0 %v597_v3  ;;  %581 = vmatprep.subr.bf16.mxu1 %v597_v3 }
   0xf   :  { %553 = vmatpush3.bf16.msra.mxu0 %v597_v3  ;;  %589 = vmatpush3.bf16.msra.mxu1 %v597_v3 }
  0x10   :  { %554 = vmatprep.subr.bf16.mxu0 %v598_v6  ;;  %582 = vmatprep.subr.bf16.mxu1 %v598_v6 }
  0x13   :  { %555 = vmatpush3.bf16.msra.mxu0 %v598_v6  ;;  %590 = vmatpush3.bf16.msra.mxu1 %v598_v6 }
  0x14   :  { %556 = vmatprep.subr.bf16.mxu0 %v599_v7  ;;  %583 = vmatprep.subr.bf16.mxu1 %v599_v7 }
  0x17   :  { %557 = vmatpush3.bf16.msra.mxu0 %v599_v7  ;;  %591 = vmatpush3.bf16.msra.mxu1 %v599_v7 }
  0x18   :  { %558 = vmatprep.subr.bf16.mxu0 %v600_v8  ;;  %584 = vmatprep.subr.bf16.mxu1 %v600_v8 }
  0x1b   :  { %559 = vmatpush3.bf16.msra.mxu0 %v600_v8  ;;  %592 = vmatpush3.bf16.msra.mxu1 %v600_v8 }
  0x1c   :  { %560 = vmatprep.subr.bf16.mxu0 %v601_v9  ;;  %585 = vmatprep.subr.bf16.mxu1 %v601_v9 }
  0x1f   :  { %561 = vmatpush3.bf16.msra.mxu0 %v601_v9  ;;  %593 = vmatpush3.bf16.msra.mxu1 %v601_v9 }
  0x22   :  { %563 = vmatmul.mubr.bf16.vlgmr.msra.gmra.mrb[0].mxu0 %v604_v10  ;;  %571 = vmatmul.mubr.bf16.vlgmr.msra.gmra.mrb[0].mxu1 %v605_v11 }
  0x23   :  { %566 = vmatprep.mubr.bf16.mxu0 %v606_v12  ;;  %574 = vmatprep.mubr.bf16.mxu1 %v607_v13 }
  0x2a   :  { %567 = vmatmul.mubr.bf16.gmra.mrb[4].mxu0 %v608_v14  ;;  %575 = vmatmul.mubr.bf16.gmra.mrb[4].mxu1 %v609_v15 }
  0xf5   :  { %v564_v16 = vpop.f32.mrb[0].mxu0  ;;  %v572_v18 = vpop.f32.mrb[0].mxu1 }
  0xf6   :  { %v213_v19 = vpop.f32.mrb[1].mxu0  ;;  %v245_v20 = vpop.f32.mrb[1].mxu1  ;;  %v336_v23 = vadd.f32 %v564_v16, %v450_v17  ;;  %v344_v24 = vadd.f32 %v572_v18, %v450_v17 }
  0xf7   :  { %v565_v21 = vpop.f32.mrb[2].mxu0  ;;  %v573_v22 = vpop.f32.mrb[2].mxu1  ;;  %v334_v29 = vadd.f32 %v450_v17, %v213_v19  ;;  %v342_v30 = vadd.f32 %v450_v17, %v245_v20 }
  0xf8   :  { %v337_v25 = vadd.f32 %v565_v21, %v450_v17  ;;  %v345_v26 = vadd.f32 %v573_v22, %v450_v17  ;;  %v216_v27 = vpop.f32.mrb[3].mxu0  ;;  %v248_v28 = vpop.f32.mrb[3].mxu1 }
  0xf9   :  { %v335_v31 = vadd.f32 %v450_v17, %v216_v27  ;;  %v343_v32 = vadd.f32 %v450_v17, %v248_v28 }
  0xfa   :  { %v491_v33 = vpack.c.bf16 %v337_v25, %v336_v23  ;;  %v511_v34 = vpack.c.bf16 %v345_v26, %v344_v24 }
  0xfb   :  { %v486_v35 = vpack.c.bf16 %v335_v31, %v334_v29  ;;  %v506_v36 = vpack.c.bf16 %v343_v32, %v342_v30 }
  0xfc   :  { %523 = vst [vmem:[%s708_s3 + $0x8] sm:$0xff] %v491_v33   ;;  %527 = vst [vmem:[%s708_s3 + $0x28] sm:$0xff] %v511_v34  }
  0xfd   :  { %487 = vst [vmem:[%s708_s3] sm:$0xff] %v486_v35   ;;  %526 = vst [vmem:[%s708_s3 + $0x20] sm:$0xff] %v506_v36   ;;  %v568_v37 = vpop.f32.mrb[4].mxu0  ;;  %v576_v38 = vpop.f32.mrb[4].mxu1 }
  0xfe   :  { %v229_v39 = vpop.f32.mrb[5].mxu0  ;;  %v261_v40 = vpop.f32.mrb[5].mxu1  ;;  %v340_v43 = vadd.f32 %v568_v37, %v450_v17  ;;  %v348_v44 = vadd.f32 %v576_v38, %v450_v17 }
  0xff   :  { %v569_v41 = vpop.f32.mrb[6].mxu0  ;;  %v577_v42 = vpop.f32.mrb[6].mxu1  ;;  %v338_v49 = vadd.f32 %v450_v17, %v229_v39  ;;  %v346_v50 = vadd.f32 %v450_v17, %v261_v40 }
 0x100   :  { %v341_v45 = vadd.f32 %v569_v41, %v450_v17  ;;  %v349_v46 = vadd.f32 %v577_v42, %v450_v17  ;;  %v232_v47 = vpop.f32.mrb[7].mxu0  ;;  %v264_v48 = vpop.f32.mrb[7].mxu1 }
 0x101   :  { %v339_v51 = vadd.f32 %v450_v17, %v232_v47  ;;  %v347_v52 = vadd.f32 %v450_v17, %v264_v48 }
 0x102   :  { %v501_v53 = vpack.c.bf16 %v341_v45, %v340_v43  ;;  %v521_v54 = vpack.c.bf16 %v349_v46, %v348_v44 }
 0x103   :  { %v496_v55 = vpack.c.bf16 %v339_v51, %v338_v49  ;;  %v516_v56 = vpack.c.bf16 %v347_v52, %v346_v50 }
 0x104   :  { %525 = vst [vmem:[%s708_s3 + $0x18] sm:$0xff] %v501_v53   ;;  %529 = vst [vmem:[%s708_s3 + $0x38] sm:$0xff] %v521_v54  }
 0x105   :  { %524 = vst [vmem:[%s708_s3 + $0x10] sm:$0xff] %v496_v55   ;;  %528 = vst [vmem:[%s708_s3 + $0x30] sm:$0xff] %v516_v56  }

// kernel: _lambda_.39
= control target key start
LH: loop header
LB: loop body
LE: loop exit
PB: predicated region body
PF: predicated region fallthrough
CT: control target
= control target key end

     0   :  { %v70_v0 = vmov 0.0   ;;  %s110_s1 = inlined_call_operand.vmem [shape: f32[1,128], index: 1, kind: output, shape index: {0}]   ;;  %s111_s2 = inlined_call_operand.vmem [shape: f32[1,128], index: 2, kind: output, shape index: {1}]   ;;  %s112_s0 = inlined_call_operand.vmem [shape: bf16[32,128], index: 0, kind: input, shape index: {}]  }
   0x1   :  { %14 = vst [vmem:[%s110_s1] sm:$0x1] %v70_v0  ;;  %15 = vst [vmem:[%s111_s2] sm:$0x1] %v70_v0  ;;  %v61_v1 = vld [vmem:[%s112_s0] sm:$0xff]   ;;  %v68_v2 = vld [vmem:[%s112_s0 + $0x8] sm:$0xff]  }
   0x2   :  { %v62_v3 = vunpack.c.l.bf16 %v61_v1  ;;  %v63_v4 = vunpack.c.h.bf16 %v61_v1  ;;  %v66_v5 = vunpack.c.l.bf16 %v68_v2  ;;  %v67_v6 = vunpack.c.h.bf16 %v68_v2 }
   0x4   :  { %v25_v7 = vadd.f32 %v63_v4, %v62_v3  ;;  %v37_v8 = vmul.f32 %v62_v3, %v62_v3  ;;  %v38_v9 = vmul.f32 %v63_v4, %v63_v4  ;;  %v39_v10 = vmul.f32 %v66_v5, %v66_v5 }
   0x5   :  { %v40_v12 = vmul.f32 %v67_v6, %v67_v6 }
   0x6   :  { %v26_v11 = vadd.f32 %v66_v5, %v25_v7  ;;  %v41_v13 = vadd.f32 %v38_v9, %v37_v8 }
   0x8   :  { %v27_v14 = vadd.f32 %v67_v6, %v26_v11  ;;  %v42_v15 = vadd.f32 %v41_v13, %v39_v10  ;;  %v24_v26 = vld [vmem:[%s110_s1] sm:$0x1] }
   0x9   :  { %v36_v29 = vld [vmem:[%s111_s2] sm:$0x1] }
   0xa   :  { %v28_v16 = vrot.slane %v27_v14, 4  ;;  %v43_v17 = vadd.f32 %v42_v15, %v40_v12 }
   0xc   :  { %v29_v18 = vadd.f32 %v28_v16, %v27_v14  ;;  %v44_v19 = vrot.slane %v43_v17, 4 }
   0xe   :  { %v30_v20 = vrot.slane %v29_v18, 2  ;;  %v45_v21 = vadd.f32 %v44_v19, %v43_v17 }
  0x10   :  { %v31_v22 = vadd.f32 %v30_v20, %v29_v18  ;;  %v46_v23 = vrot.slane %v45_v21, 2 }
  0x12   :  { %v32_v24 = vrot.slane %v31_v22, 1  ;;  %v47_v25 = vadd.f32 %v46_v23, %v45_v21 }
  0x14   :  { %v33_v27 = vadd.f32 %v32_v24, %v31_v22  ;;  %v48_v28 = vrot.slane %v47_v25, 1 }
  0x16   :  { %v34_v30 = vadd.f32 %v33_v27, %v24_v26  ;;  %v49_v31 = vadd.f32 %v48_v28, %v47_v25 }
  0x18   :  { %35 = vst [vmem:[%s110_s1] sm:$0x1] %v34_v30  ;;  %v50_v32 = vadd.f32 %v49_v31, %v36_v29 }
  0x1a   :  { %51 = vst [vmem:[%s111_s2] sm:$0x1] %v50_v32 }

</bundles_post_ra>
